<compile_context>
chip_gen: v5e
topology: v5e:2x2
jax: 0.10.0
libtpu: 0.0.40
codegen_flags: <defaults>
</compile_context>

<pallas_src>
import math
import functools

import numpy as np
import jax
import jax.numpy as jnp
from jax.experimental import pallas as pl
from jax.experimental.pallas import tpu as pltpu


# ------------------------- small in-kernel helpers --------------------------

def _erf(x):
    # Abramowitz & Stegun 7.1.26 rational approximation (|err| <= 1.5e-7).
    # Built only from exp/mul/add/abs/where so it lowers on every TPU gen.
    a1, a2, a3, a4, a5 = 0.254829592, -0.284496736, 1.421413741, -1.453152027, 1.061405429
    p = 0.3275911
    sgn = jnp.where(x >= 0.0, 1.0, -1.0)
    ax = jnp.abs(x)
    t = 1.0 / (1.0 + p * ax)
    poly = ((((a5 * t + a4) * t + a3) * t + a2) * t + a1) * t
    return sgn * (1.0 - poly * jnp.exp(-ax * ax))


def _gelu_exact(x):
    # torch activation='gelu' (exact erf form)
    return 0.5 * x * (1.0 + _erf(x * 0.7071067811865476))


def _layernorm(x, g, b, eps=1e-5):
    mu = jnp.mean(x, axis=-1, keepdims=True)
    var = jnp.mean(jnp.square(x - mu), axis=-1, keepdims=True)
    return (x - mu) * jax.lax.rsqrt(var + eps) * g + b


def _mm(a, w):
    # MXU matmul: bf16 operands, f32 accumulation.
    return jnp.dot(a.astype(jnp.bfloat16), w.astype(jnp.bfloat16),
                   preferred_element_type=jnp.float32)


# ------------------------------ fused kernel --------------------------------

def _fused_forward_kernel(*refs, B, S, F, D, H, HD, GH, n_enc, n_gru):
    """Entire UltimateHybridModel forward in one kernel (all operands in VMEM)."""
    out_ref = refs[-1]
    it = iter(refs[:-1])

    def nxt():
        return next(it)[...]

    x3 = nxt()                                   # (B, S, F) f32
    pe = nxt()                                   # (B*S, D)  f32 (constant)
    w_in = nxt()                                 # (F, D)   bf16
    b_in = nxt()                                 # (1, D)   f32

    # ----- input projection + positional encoding (dropout = identity) -----
    x2 = x3.reshape(B * S, F)
    xp = _mm(x2, w_in) + b_in + pe               # (B*S, D)

    # ----- transformer encoder (post-norm, exact-erf GELU) -----
    scale = 1.0 / math.sqrt(HD)
    x = xp
    for _ in range(n_enc):
        wqkv = nxt(); bqkv = nxt(); wo = nxt(); bo = nxt()
        ln1g = nxt(); ln1b = nxt()
        w1 = nxt(); b1 = nxt(); w2 = nxt(); b2 = nxt()
        ln2g = nxt(); ln2b = nxt()

        qkv = _mm(x, wqkv) + bqkv                # (B*S, 3D)
        qkv3 = qkv.reshape(B, S, 3 * D)          # leading-dim split only
        head_outs = []
        for hi in range(H):                      # static head loop; batched over B
            qh = qkv3[:, :, hi * HD:(hi + 1) * HD] * scale
            kh = qkv3[:, :, D + hi * HD:D + (hi + 1) * HD]
            vh = qkv3[:, :, 2 * D + hi * HD:2 * D + (hi + 1) * HD]
            s = jnp.einsum("bqd,bkd->bqk",
                           qh.astype(jnp.bfloat16), kh.astype(jnp.bfloat16),
                           preferred_element_type=jnp.float32)
            s = s - jnp.max(s, axis=-1, keepdims=True)
            p = jnp.exp(s)
            p = p * pl.reciprocal(jnp.sum(p, axis=-1, keepdims=True), approx=True)
            head_outs.append(jnp.einsum("bqk,bkd->bqd",
                                        p.astype(jnp.bfloat16),
                                        vh.astype(jnp.bfloat16),
                                        preferred_element_type=jnp.float32))
        attn = jnp.concatenate(head_outs, axis=-1).reshape(B * S, D)
        attn = _mm(attn, wo) + bo
        y = _layernorm(x + attn, ln1g, ln1b)
        ff = _mm(y, w1) + b1
        ff = _gelu_exact(ff)
        ff = _mm(ff, w2) + b2
        x = _layernorm(y + ff, ln2g, ln2b)

    trans_out = xp + x                           # extra residual, (B*S, D)

    # ----- bidirectional GRU: both directions merged into one per-step matmul -----
    # Column order of the merged 6H gate axis: [r_f r_b z_f z_b n_f n_b];
    # merged hidden state layout: [h_f | h_b]  (2H columns).
    cols6 = jax.lax.broadcasted_iota(jnp.int32, (1, 6 * GH), 1)
    fwd6 = (cols6 % (2 * GH)) < GH
    cols2 = jax.lax.broadcasted_iota(jnp.int32, (1, 2 * GH), 1)
    fwd2 = cols2 < GH

    # Reorder rows (b, t) -> (t, b) once so every per-step access below is a
    # contiguous, lane-dense sublane row-slice.
    x_tb = jnp.concatenate(
        [trans_out[b * S + t:b * S + t + 1, :] for t in range(S) for b in range(B)],
        axis=0)

    layer_in = x_tb                              # (S*B, In), row index = t*B + b
    gru_last = None
    for li in range(n_gru):
        wih = nxt(); bih = nxt(); whh = nxt(); bhh = nxt()
        # input projection for BOTH directions hoisted out of the time loop
        gi = _mm(layer_in, wih) + bih            # (S*B, 6H)
        h = jnp.zeros((B, 2 * GH), jnp.float32)
        hs = []
        for i in range(S):                       # fully unrolled static recurrence
            a = gi[i * B:(i + 1) * B, :]                 # fwd inputs at time i
            c = gi[(S - 1 - i) * B:(S - i) * B, :]       # bwd inputs at time S-1-i
            gi_t = jnp.where(fwd6, a, c)                 # (B, 6H)
            gh = _mm(h, whh) + bhh                       # one matmul for both dirs
            r = jax.nn.sigmoid(gi_t[:, :2 * GH] + gh[:, :2 * GH])
            z = jax.nn.sigmoid(gi_t[:, 2 * GH:4 * GH] + gh[:, 2 * GH:4 * GH])
            n = jnp.tanh(gi_t[:, 4 * GH:] + r * gh[:, 4 * GH:])
            h = (1.0 - z) * n + z * h
            hs.append(h)                                 # trajectory lives in vregs
        # gru_output[:, t, :] = [h_f(t) | h_b(t)]; the bwd state for time t was
        # produced at loop step S-1-t.  Last-timestep output of this layer:
        gru_last = jnp.where(fwd2, hs[S - 1], hs[0])     # (B, 2H)
        if li + 1 < n_gru:
            layer_in = jnp.concatenate(
                [jnp.where(fwd2, hs[t], hs[S - 1 - t]) for t in range(S)], axis=0)

    # ----- temporal attention over the transformer output -----
    ta_w = nxt(); ta_b = nxt(); ta_v = nxt()
    uh = jnp.tanh(_mm(trans_out, ta_w) + ta_b)           # (B*S, D)
    ctx_rows = []
    for b in range(B):                                   # tiny static batch loop
        f = trans_out[b * S:(b + 1) * S, :]              # (S, D)
        sc = jnp.sum(uh[b * S:(b + 1) * S, :] * ta_v, axis=-1, keepdims=True)
        sc = sc - jnp.max(sc, axis=0, keepdims=True)
        p = jnp.exp(sc)
        p = p * pl.reciprocal(jnp.sum(p, axis=0, keepdims=True), approx=True)
        ctx_rows.append(jnp.sum(p * f, axis=0, keepdims=True))
    ctx = jnp.concatenate(ctx_rows, axis=0)              # (B, D)

    # ----- output head: concat + Linear + BatchNorm(eval) + ReLU + Linear -----
    hw1 = nxt(); hb1 = nxt()
    bng = nxt(); bnb = nxt(); bnm = nxt(); bnv = nxt()
    hw2 = nxt(); hb2 = nxt()
    fused = jnp.concatenate([gru_last, ctx], axis=-1)    # (B, 2H + D)
    h1 = _mm(fused, hw1) + hb1
    h1 = (h1 - bnm) * jax.lax.rsqrt(bnv + 1e-5) * bng + bnb
    h1 = jnp.maximum(h1, 0.0)
    out_ref[...] = _mm(h1, hw2) + hb2                    # (B, out_seq_len)


# ------------------------------ host wrapper --------------------------------

def positional_encoding_np(seq_len, d_model):
    position = np.arange(seq_len, dtype=np.float32)[:, None]
    div_term = np.exp(np.arange(0, d_model, 2, dtype=np.float32)
                      * (-math.log(10000.0) / d_model))
    pe = np.zeros((seq_len, d_model), np.float32)
    pe[:, 0::2] = np.sin(position * div_term)
    pe[:, 1::2] = np.cos(position * div_term)
    return pe


def forward(params, x, cfg):
    B, S, F = x.shape
    D = cfg["model_dim"]
    H = cfg["num_heads"]
    GH = cfg["gru_hidden"]
    out_len = cfg["output_seq_len"]
    n_enc = cfg["num_encoder_layers"]
    n_gru = cfg["gru_layers"]

    # trace-time numpy constant -> no per-call XLA glue for the PE add
    pe_tiled = np.tile(positional_encoding_np(S, D), (B, 1)).astype(np.float32)

    args = [x, pe_tiled, params["inp_w_t"], params["inp_b"]]
    for lp in params["enc_layers"]:
        args += [lp["in_proj_w_t"], lp["in_proj_b"], lp["out_proj_w_t"], lp["out_proj_b"],
                 lp["ln1_g"], lp["ln1_b"], lp["lin1_w_t"], lp["lin1_b"],
                 lp["lin2_w_t"], lp["lin2_b"], lp["ln2_g"], lp["ln2_b"]]
    for lp in params["gru"]:
        args += [lp["wih_t"], lp["bih"], lp["whh_t"], lp["bhh"]]
    args += [params["ta_w_t"], params["ta_b"], params["ta_v"],
             params["out1_w_t"], params["out1_b"],
             params["bn_g"], params["bn_b"], params["bn_mean"], params["bn_var"],
             params["out2_w_t"], params["out2_b"]]

    kern = functools.partial(_fused_forward_kernel, B=B, S=S, F=F, D=D, H=H,
                             HD=D // H, GH=GH, n_enc=n_enc, n_gru=n_gru)
    # Total VMEM footprint is << 1 MiB, so no vmem_limit_bytes is needed even
    # on v7x (64 MiB physical); re-derive only if model_dim/seq/batch scale.
    return pl.pallas_call(
        kern,
        out_shape=jax.ShapeDtypeStruct((B, out_len), jnp.float32),
        in_specs=[pl.BlockSpec(memory_space=pltpu.MemorySpace.VMEM)
                  for _ in range(len(args))],
        out_specs=pl.BlockSpec(memory_space=pltpu.MemorySpace.VMEM),
    )(*args)


# ----------------------------- Parameter init -------------------------------

def init_params(key, cfg):
    F = cfg["n_features"]
    D = cfg["model_dim"]
    GH = cfg["gru_hidden"]
    L = cfg["num_encoder_layers"]
    GL = cfg["gru_layers"]
    out_len = cfg["output_seq_len"]
    fused_dim = 2 * GH + D
    half = fused_dim // 2

    keys = iter(jax.random.split(key, 256))

    def xavier(out_dim, in_dim):
        a = math.sqrt(6.0 / (in_dim + out_dim))
        return jax.random.uniform(next(keys), (out_dim, in_dim), jnp.float32, -a, a)

    def row(n):
        return jnp.zeros((1, n), jnp.float32)

    def ones_row(n):
        return jnp.ones((1, n), jnp.float32)

    bf = lambda w: w.astype(jnp.bfloat16)        # matmul weights stored bf16

    params = {"inp_w_t": bf(xavier(D, F).T), "inp_b": row(D)}

    enc = []
    for _ in range(L):
        enc.append({
            "in_proj_w_t": bf(xavier(3 * D, D).T), "in_proj_b": row(3 * D),
            "out_proj_w_t": bf(xavier(D, D).T), "out_proj_b": row(D),
            "lin1_w_t": bf(xavier(4 * D, D).T), "lin1_b": row(4 * D),
            "lin2_w_t": bf(xavier(D, 4 * D).T), "lin2_b": row(D),
            "ln1_g": ones_row(D), "ln1_b": row(D),
            "ln2_g": ones_row(D), "ln2_b": row(D),
        })
    params["enc_layers"] = enc

    gru = []
    for layer in range(GL):
        in_size = D if layer == 0 else 2 * GH
        wih_t = [xavier(3 * GH, in_size).T for _ in range(2)]   # (In, 3H), cols [r z n]
        whh_t = [xavier(3 * GH, GH).T for _ in range(2)]        # (H, 3H)
        # merged gate axis order: [r_f r_b z_f z_b n_f n_b]
        wih_cat = jnp.concatenate(
            [wih_t[d][:, g * GH:(g + 1) * GH] for g in range(3) for d in range(2)],
            axis=1)                                             # (In, 6H)
        # block-structured Whh: fwd rows (0:H) feed only fwd columns, bwd rows
        # (H:2H) only bwd columns -> one (B,2H)@(2H,6H) matmul serves both dirs.
        whh_bd = jnp.zeros((2 * GH, 6 * GH), jnp.float32)
        for g in range(3):
            for d in range(2):
                c0 = (2 * g + d) * GH
                whh_bd = whh_bd.at[d * GH:(d + 1) * GH, c0:c0 + GH].set(
                    whh_t[d][:, g * GH:(g + 1) * GH])
        gru.append({
            "wih_t": bf(wih_cat),
            "bih": row(6 * GH),
            "whh_t": bf(whh_bd),
            "bhh": row(6 * GH),
        })
    params["gru"] = gru

    params["ta_w_t"] = bf(xavier(D, D).T)
    params["ta_b"] = row(D)
    params["ta_v"] = jax.random.uniform(next(keys), (1, D), jnp.float32)  # torch.rand

    params["out1_w_t"] = bf(xavier(half, fused_dim).T)
    params["out1_b"] = row(half)
    params["bn_g"] = ones_row(half)
    params["bn_b"] = row(half)
    params["bn_mean"] = row(half)
    params["bn_var"] = ones_row(half)
    params["out2_w_t"] = bf(xavier(out_len, half).T)
    params["out2_b"] = row(out_len)
    return params


# --------------------------------- Driver -----------------------------------

if __name__ == "__main__":
    cfg = dict(
        n_features=4,
        model_dim=32,
        num_heads=4,
        num_encoder_layers=2,
        gru_hidden=16,
        gru_layers=2,
        dropout=0.1,          # eval mode -> identity
        output_seq_len=3,
    )
    B, S = 2, 8

    key = jax.random.PRNGKey(0)
    pkey, xkey = jax.random.split(key)
    params = init_params(pkey, cfg)
    x = jax.random.normal(xkey, (B, S, cfg["n_features"]), jnp.float32)

    fwd = jax.jit(functools.partial(forward, cfg=cfg))
    pred = fwd(params, x)
    pred = jax.block_until_ready(pred)

    assert pred.shape == (B, cfg["output_seq_len"])
    assert bool(jnp.all(jnp.isfinite(pred)))
    print("KERNEL_OK")
</pallas_src>

<mosaic_0001>
module attributes {stable_mosaic.version = 11 : i64} {
  func.func @_fused_forward_kernel(%arg0: memref<2x8x4xf32, #tpu.memory_space<vmem>>, %arg1: memref<16x32xf32, #tpu.memory_space<vmem>>, %arg2: memref<4x32xbf16, #tpu.memory_space<vmem>>, %arg3: memref<1x32xf32, #tpu.memory_space<vmem>>, %arg4: memref<32x96xbf16, #tpu.memory_space<vmem>>, %arg5: memref<1x96xf32, #tpu.memory_space<vmem>>, %arg6: memref<32x32xbf16, #tpu.memory_space<vmem>>, %arg7: memref<1x32xf32, #tpu.memory_space<vmem>>, %arg8: memref<1x32xf32, #tpu.memory_space<vmem>>, %arg9: memref<1x32xf32, #tpu.memory_space<vmem>>, %arg10: memref<32x128xbf16, #tpu.memory_space<vmem>>, %arg11: memref<1x128xf32, #tpu.memory_space<vmem>>, %arg12: memref<128x32xbf16, #tpu.memory_space<vmem>>, %arg13: memref<1x32xf32, #tpu.memory_space<vmem>>, %arg14: memref<1x32xf32, #tpu.memory_space<vmem>>, %arg15: memref<1x32xf32, #tpu.memory_space<vmem>>, %arg16: memref<32x96xbf16, #tpu.memory_space<vmem>>, %arg17: memref<1x96xf32, #tpu.memory_space<vmem>>, %arg18: memref<32x32xbf16, #tpu.memory_space<vmem>>, %arg19: memref<1x32xf32, #tpu.memory_space<vmem>>, %arg20: memref<1x32xf32, #tpu.memory_space<vmem>>, %arg21: memref<1x32xf32, #tpu.memory_space<vmem>>, %arg22: memref<32x128xbf16, #tpu.memory_space<vmem>>, %arg23: memref<1x128xf32, #tpu.memory_space<vmem>>, %arg24: memref<128x32xbf16, #tpu.memory_space<vmem>>, %arg25: memref<1x32xf32, #tpu.memory_space<vmem>>, %arg26: memref<1x32xf32, #tpu.memory_space<vmem>>, %arg27: memref<1x32xf32, #tpu.memory_space<vmem>>, %arg28: memref<32x96xbf16, #tpu.memory_space<vmem>>, %arg29: memref<1x96xf32, #tpu.memory_space<vmem>>, %arg30: memref<32x96xbf16, #tpu.memory_space<vmem>>, %arg31: memref<1x96xf32, #tpu.memory_space<vmem>>, %arg32: memref<32x96xbf16, #tpu.memory_space<vmem>>, %arg33: memref<1x96xf32, #tpu.memory_space<vmem>>, %arg34: memref<32x96xbf16, #tpu.memory_space<vmem>>, %arg35: memref<1x96xf32, #tpu.memory_space<vmem>>, %arg36: memref<32x32xbf16, #tpu.memory_space<vmem>>, %arg37: memref<1x32xf32, #tpu.memory_space<vmem>>, %arg38: memref<1x32xf32, #tpu.memory_space<vmem>>, %arg39: memref<64x32xbf16, #tpu.memory_space<vmem>>, %arg40: memref<1x32xf32, #tpu.memory_space<vmem>>, %arg41: memref<1x32xf32, #tpu.memory_space<vmem>>, %arg42: memref<1x32xf32, #tpu.memory_space<vmem>>, %arg43: memref<1x32xf32, #tpu.memory_space<vmem>>, %arg44: memref<1x32xf32, #tpu.memory_space<vmem>>, %arg45: memref<32x3xbf16, #tpu.memory_space<vmem>>, %arg46: memref<1x3xf32, #tpu.memory_space<vmem>>, %arg47: memref<2x3xf32, #tpu.memory_space<vmem>>) attributes {dimension_semantics = [], scalar_prefetch = 0 : i64, scratch_operands = 0 : i64, tpu.core_type = #tpu.core_type<tc>} {
    %c0 = arith.constant 0 : index
    %c0_0 = arith.constant 0 : index
    %c0_1 = arith.constant 0 : index
    %0 = vector.load %arg0[%c0, %c0_0, %c0_1] : memref<2x8x4xf32, #tpu.memory_space<vmem>>, vector<2x8x4xf32>
    %c0_2 = arith.constant 0 : index
    %c0_3 = arith.constant 0 : index
    %1 = vector.load %arg1[%c0_2, %c0_3] : memref<16x32xf32, #tpu.memory_space<vmem>>, vector<16x32xf32>
    %c0_4 = arith.constant 0 : index
    %c0_5 = arith.constant 0 : index
    %2 = vector.load %arg2[%c0_4, %c0_5] : memref<4x32xbf16, #tpu.memory_space<vmem>>, vector<4x32xbf16>
    %c0_6 = arith.constant 0 : index
    %c0_7 = arith.constant 0 : index
    %3 = vector.load %arg3[%c0_6, %c0_7] : memref<1x32xf32, #tpu.memory_space<vmem>>, vector<1x32xf32>
    %4 = vector.shape_cast %0 : vector<2x8x4xf32> to vector<16x4xf32>
    %5 = arith.truncf %4 : vector<16x4xf32> to vector<16x4xbf16>
    %cst = arith.constant dense<0.000000e+00> : vector<16x32xf32>
    %6 = tpu.matmul %5, %2, %cst {dimension_numbers = #tpu.dot_dimension_numbers<[1], [0], [0], [1], [0, 0, 1, 1], [], []>} : vector<16x4xbf16>, vector<4x32xbf16>, vector<16x32xf32> -> vector<16x32xf32>
    %7 = vector.broadcast %3 : vector<1x32xf32> to vector<16x32xf32>
    %8 = arith.addf %6, %7 : vector<16x32xf32>
    %9 = arith.addf %8, %1 : vector<16x32xf32>
    %c0_8 = arith.constant 0 : index
    %c0_9 = arith.constant 0 : index
    %10 = vector.load %arg4[%c0_8, %c0_9] : memref<32x96xbf16, #tpu.memory_space<vmem>>, vector<32x96xbf16>
    %c0_10 = arith.constant 0 : index
    %c0_11 = arith.constant 0 : index
    %11 = vector.load %arg5[%c0_10, %c0_11] : memref<1x96xf32, #tpu.memory_space<vmem>>, vector<1x96xf32>
    %c0_12 = arith.constant 0 : index
    %c0_13 = arith.constant 0 : index
    %12 = vector.load %arg6[%c0_12, %c0_13] : memref<32x32xbf16, #tpu.memory_space<vmem>>, vector<32x32xbf16>
    %c0_14 = arith.constant 0 : index
    %c0_15 = arith.constant 0 : index
    %13 = vector.load %arg7[%c0_14, %c0_15] : memref<1x32xf32, #tpu.memory_space<vmem>>, vector<1x32xf32>
    %c0_16 = arith.constant 0 : index
    %c0_17 = arith.constant 0 : index
    %14 = vector.load %arg8[%c0_16, %c0_17] : memref<1x32xf32, #tpu.memory_space<vmem>>, vector<1x32xf32>
    %c0_18 = arith.constant 0 : index
    %c0_19 = arith.constant 0 : index
    %15 = vector.load %arg9[%c0_18, %c0_19] : memref<1x32xf32, #tpu.memory_space<vmem>>, vector<1x32xf32>
    %c0_20 = arith.constant 0 : index
    %c0_21 = arith.constant 0 : index
    %16 = vector.load %arg10[%c0_20, %c0_21] : memref<32x128xbf16, #tpu.memory_space<vmem>>, vector<32x128xbf16>
    %c0_22 = arith.constant 0 : index
    %c0_23 = arith.constant 0 : index
    %17 = vector.load %arg11[%c0_22, %c0_23] : memref<1x128xf32, #tpu.memory_space<vmem>>, vector<1x128xf32>
    %c0_24 = arith.constant 0 : index
    %c0_25 = arith.constant 0 : index
    %18 = vector.load %arg12[%c0_24, %c0_25] : memref<128x32xbf16, #tpu.memory_space<vmem>>, vector<128x32xbf16>
    %c0_26 = arith.constant 0 : index
    %c0_27 = arith.constant 0 : index
    %19 = vector.load %arg13[%c0_26, %c0_27] : memref<1x32xf32, #tpu.memory_space<vmem>>, vector<1x32xf32>
    %c0_28 = arith.constant 0 : index
    %c0_29 = arith.constant 0 : index
    %20 = vector.load %arg14[%c0_28, %c0_29] : memref<1x32xf32, #tpu.memory_space<vmem>>, vector<1x32xf32>
    %c0_30 = arith.constant 0 : index
    %c0_31 = arith.constant 0 : index
    %21 = vector.load %arg15[%c0_30, %c0_31] : memref<1x32xf32, #tpu.memory_space<vmem>>, vector<1x32xf32>
    %22 = arith.truncf %9 : vector<16x32xf32> to vector<16x32xbf16>
    %cst_32 = arith.constant dense<0.000000e+00> : vector<16x96xf32>
    %23 = tpu.matmul %22, %10, %cst_32 {dimension_numbers = #tpu.dot_dimension_numbers<[1], [0], [0], [1], [0, 0, 1, 1], [], []>} : vector<16x32xbf16>, vector<32x96xbf16>, vector<16x96xf32> -> vector<16x96xf32>
    %24 = vector.broadcast %11 : vector<1x96xf32> to vector<16x96xf32>
    %25 = arith.addf %23, %24 : vector<16x96xf32>
    %26 = vector.shape_cast %25 : vector<16x96xf32> to vector<2x8x96xf32>
    %27 = vector.extract_strided_slice %26 {offsets = [0, 0, 0], sizes = [2, 8, 8], strides = [1, 1, 1]} : vector<2x8x96xf32> to vector<2x8x8xf32>
    %cst_33 = arith.constant 0.353553385 : f32
    %28 = vector.broadcast %cst_33 : f32 to vector<2x8x8xf32>
    %29 = arith.mulf %27, %28 : vector<2x8x8xf32>
    %30 = vector.extract_strided_slice %26 {offsets = [0, 0, 32], sizes = [2, 8, 8], strides = [1, 1, 1]} : vector<2x8x96xf32> to vector<2x8x8xf32>
    %31 = vector.extract_strided_slice %26 {offsets = [0, 0, 64], sizes = [2, 8, 8], strides = [1, 1, 1]} : vector<2x8x96xf32> to vector<2x8x8xf32>
    %32 = arith.truncf %29 : vector<2x8x8xf32> to vector<2x8x8xbf16>
    %33 = arith.truncf %30 : vector<2x8x8xf32> to vector<2x8x8xbf16>
    "tpu.trace_start"() <{level = 10 : i32, message = "bqd,bkd->bqk"}> : () -> ()
    %cst_34 = arith.constant dense<0.000000e+00> : vector<2x8x8xf32>
    %34 = tpu.matmul %32, %33, %cst_34 {dimension_numbers = #tpu.dot_dimension_numbers<[2], [2], [1], [1], [0, 0, 0, 1, 1, 1], [0], [0]>} : vector<2x8x8xbf16>, vector<2x8x8xbf16>, vector<2x8x8xf32> -> vector<2x8x8xf32>
    "tpu.trace_stop"() : () -> ()
    %cst_35 = arith.constant dense<0xFF800000> : vector<2x8xf32>
    %35 = vector.multi_reduction <maximumf>, %34, %cst_35 [2] : vector<2x8x8xf32> to vector<2x8xf32>
    %36 = vector.shape_cast %35 : vector<2x8xf32> to vector<2x8x1xf32>
    %37 = vector.broadcast %36 : vector<2x8x1xf32> to vector<2x8x8xf32>
    %38 = arith.subf %34, %37 : vector<2x8x8xf32>
    %39 = math.exp %38 : vector<2x8x8xf32>
    %cst_36 = arith.constant dense<0.000000e+00> : vector<2x8xf32>
    %40 = vector.multi_reduction <add>, %39, %cst_36 [2] : vector<2x8x8xf32> to vector<2x8xf32>
    %41 = vector.shape_cast %40 : vector<2x8xf32> to vector<2x8x1xf32>
    %42 = tpu.reciprocal %41 {approx = true} : vector<2x8x1xf32> -> vector<2x8x1xf32>
    %43 = vector.broadcast %42 : vector<2x8x1xf32> to vector<2x8x8xf32>
    %44 = arith.mulf %39, %43 : vector<2x8x8xf32>
    %45 = arith.truncf %44 : vector<2x8x8xf32> to vector<2x8x8xbf16>
    %46 = arith.truncf %31 : vector<2x8x8xf32> to vector<2x8x8xbf16>
    "tpu.trace_start"() <{level = 10 : i32, message = "bqk,bkd->bqd"}> : () -> ()
    %cst_37 = arith.constant dense<0.000000e+00> : vector<2x8x8xf32>
    %47 = tpu.matmul %45, %46, %cst_37 {dimension_numbers = #tpu.dot_dimension_numbers<[2], [1], [1], [2], [0, 0, 0, 1, 1, 2], [0], [0]>} : vector<2x8x8xbf16>, vector<2x8x8xbf16>, vector<2x8x8xf32> -> vector<2x8x8xf32>
    "tpu.trace_stop"() : () -> ()
    %48 = vector.extract_strided_slice %26 {offsets = [0, 0, 8], sizes = [2, 8, 8], strides = [1, 1, 1]} : vector<2x8x96xf32> to vector<2x8x8xf32>
    %cst_38 = arith.constant 0.353553385 : f32
    %49 = vector.broadcast %cst_38 : f32 to vector<2x8x8xf32>
    %50 = arith.mulf %48, %49 : vector<2x8x8xf32>
    %51 = vector.extract_strided_slice %26 {offsets = [0, 0, 40], sizes = [2, 8, 8], strides = [1, 1, 1]} : vector<2x8x96xf32> to vector<2x8x8xf32>
    %52 = vector.extract_strided_slice %26 {offsets = [0, 0, 72], sizes = [2, 8, 8], strides = [1, 1, 1]} : vector<2x8x96xf32> to vector<2x8x8xf32>
    %53 = arith.truncf %50 : vector<2x8x8xf32> to vector<2x8x8xbf16>
    %54 = arith.truncf %51 : vector<2x8x8xf32> to vector<2x8x8xbf16>
    "tpu.trace_start"() <{level = 10 : i32, message = "bqd,bkd->bqk"}> : () -> ()
    %cst_39 = arith.constant dense<0.000000e+00> : vector<2x8x8xf32>
    %55 = tpu.matmul %53, %54, %cst_39 {dimension_numbers = #tpu.dot_dimension_numbers<[2], [2], [1], [1], [0, 0, 0, 1, 1, 1], [0], [0]>} : vector<2x8x8xbf16>, vector<2x8x8xbf16>, vector<2x8x8xf32> -> vector<2x8x8xf32>
    "tpu.trace_stop"() : () -> ()
    %cst_40 = arith.constant dense<0xFF800000> : vector<2x8xf32>
    %56 = vector.multi_reduction <maximumf>, %55, %cst_40 [2] : vector<2x8x8xf32> to vector<2x8xf32>
    %57 = vector.shape_cast %56 : vector<2x8xf32> to vector<2x8x1xf32>
    %58 = vector.broadcast %57 : vector<2x8x1xf32> to vector<2x8x8xf32>
    %59 = arith.subf %55, %58 : vector<2x8x8xf32>
    %60 = math.exp %59 : vector<2x8x8xf32>
    %cst_41 = arith.constant dense<0.000000e+00> : vector<2x8xf32>
    %61 = vector.multi_reduction <add>, %60, %cst_41 [2] : vector<2x8x8xf32> to vector<2x8xf32>
    %62 = vector.shape_cast %61 : vector<2x8xf32> to vector<2x8x1xf32>
    %63 = tpu.reciprocal %62 {approx = true} : vector<2x8x1xf32> -> vector<2x8x1xf32>
    %64 = vector.broadcast %63 : vector<2x8x1xf32> to vector<2x8x8xf32>
    %65 = arith.mulf %60, %64 : vector<2x8x8xf32>
    %66 = arith.truncf %65 : vector<2x8x8xf32> to vector<2x8x8xbf16>
    %67 = arith.truncf %52 : vector<2x8x8xf32> to vector<2x8x8xbf16>
    "tpu.trace_start"() <{level = 10 : i32, message = "bqk,bkd->bqd"}> : () -> ()
    %cst_42 = arith.constant dense<0.000000e+00> : vector<2x8x8xf32>
    %68 = tpu.matmul %66, %67, %cst_42 {dimension_numbers = #tpu.dot_dimension_numbers<[2], [1], [1], [2], [0, 0, 0, 1, 1, 2], [0], [0]>} : vector<2x8x8xbf16>, vector<2x8x8xbf16>, vector<2x8x8xf32> -> vector<2x8x8xf32>
    "tpu.trace_stop"() : () -> ()
    %69 = vector.extract_strided_slice %26 {offsets = [0, 0, 16], sizes = [2, 8, 8], strides = [1, 1, 1]} : vector<2x8x96xf32> to vector<2x8x8xf32>
    %cst_43 = arith.constant 0.353553385 : f32
    %70 = vector.broadcast %cst_43 : f32 to vector<2x8x8xf32>
    %71 = arith.mulf %69, %70 : vector<2x8x8xf32>
    %72 = vector.extract_strided_slice %26 {offsets = [0, 0, 48], sizes = [2, 8, 8], strides = [1, 1, 1]} : vector<2x8x96xf32> to vector<2x8x8xf32>
    %73 = vector.extract_strided_slice %26 {offsets = [0, 0, 80], sizes = [2, 8, 8], strides = [1, 1, 1]} : vector<2x8x96xf32> to vector<2x8x8xf32>
    %74 = arith.truncf %71 : vector<2x8x8xf32> to vector<2x8x8xbf16>
    %75 = arith.truncf %72 : vector<2x8x8xf32> to vector<2x8x8xbf16>
    "tpu.trace_start"() <{level = 10 : i32, message = "bqd,bkd->bqk"}> : () -> ()
    %cst_44 = arith.constant dense<0.000000e+00> : vector<2x8x8xf32>
    %76 = tpu.matmul %74, %75, %cst_44 {dimension_numbers = #tpu.dot_dimension_numbers<[2], [2], [1], [1], [0, 0, 0, 1, 1, 1], [0], [0]>} : vector<2x8x8xbf16>, vector<2x8x8xbf16>, vector<2x8x8xf32> -> vector<2x8x8xf32>
    "tpu.trace_stop"() : () -> ()
    %cst_45 = arith.constant dense<0xFF800000> : vector<2x8xf32>
    %77 = vector.multi_reduction <maximumf>, %76, %cst_45 [2] : vector<2x8x8xf32> to vector<2x8xf32>
    %78 = vector.shape_cast %77 : vector<2x8xf32> to vector<2x8x1xf32>
    %79 = vector.broadcast %78 : vector<2x8x1xf32> to vector<2x8x8xf32>
    %80 = arith.subf %76, %79 : vector<2x8x8xf32>
    %81 = math.exp %80 : vector<2x8x8xf32>
    %cst_46 = arith.constant dense<0.000000e+00> : vector<2x8xf32>
    %82 = vector.multi_reduction <add>, %81, %cst_46 [2] : vector<2x8x8xf32> to vector<2x8xf32>
    %83 = vector.shape_cast %82 : vector<2x8xf32> to vector<2x8x1xf32>
    %84 = tpu.reciprocal %83 {approx = true} : vector<2x8x1xf32> -> vector<2x8x1xf32>
    %85 = vector.broadcast %84 : vector<2x8x1xf32> to vector<2x8x8xf32>
    %86 = arith.mulf %81, %85 : vector<2x8x8xf32>
    %87 = arith.truncf %86 : vector<2x8x8xf32> to vector<2x8x8xbf16>
    %88 = arith.truncf %73 : vector<2x8x8xf32> to vector<2x8x8xbf16>
    "tpu.trace_start"() <{level = 10 : i32, message = "bqk,bkd->bqd"}> : () -> ()
    %cst_47 = arith.constant dense<0.000000e+00> : vector<2x8x8xf32>
    %89 = tpu.matmul %87, %88, %cst_47 {dimension_numbers = #tpu.dot_dimension_numbers<[2], [1], [1], [2], [0, 0, 0, 1, 1, 2], [0], [0]>} : vector<2x8x8xbf16>, vector<2x8x8xbf16>, vector<2x8x8xf32> -> vector<2x8x8xf32>
    "tpu.trace_stop"() : () -> ()
    %90 = vector.extract_strided_slice %26 {offsets = [0, 0, 24], sizes = [2, 8, 8], strides = [1, 1, 1]} : vector<2x8x96xf32> to vector<2x8x8xf32>
    %cst_48 = arith.constant 0.353553385 : f32
    %91 = vector.broadcast %cst_48 : f32 to vector<2x8x8xf32>
    %92 = arith.mulf %90, %91 : vector<2x8x8xf32>
    %93 = vector.extract_strided_slice %26 {offsets = [0, 0, 56], sizes = [2, 8, 8], strides = [1, 1, 1]} : vector<2x8x96xf32> to vector<2x8x8xf32>
    %94 = vector.extract_strided_slice %26 {offsets = [0, 0, 88], sizes = [2, 8, 8], strides = [1, 1, 1]} : vector<2x8x96xf32> to vector<2x8x8xf32>
    %95 = arith.truncf %92 : vector<2x8x8xf32> to vector<2x8x8xbf16>
    %96 = arith.truncf %93 : vector<2x8x8xf32> to vector<2x8x8xbf16>
    "tpu.trace_start"() <{level = 10 : i32, message = "bqd,bkd->bqk"}> : () -> ()
    %cst_49 = arith.constant dense<0.000000e+00> : vector<2x8x8xf32>
    %97 = tpu.matmul %95, %96, %cst_49 {dimension_numbers = #tpu.dot_dimension_numbers<[2], [2], [1], [1], [0, 0, 0, 1, 1, 1], [0], [0]>} : vector<2x8x8xbf16>, vector<2x8x8xbf16>, vector<2x8x8xf32> -> vector<2x8x8xf32>
    "tpu.trace_stop"() : () -> ()
    %cst_50 = arith.constant dense<0xFF800000> : vector<2x8xf32>
    %98 = vector.multi_reduction <maximumf>, %97, %cst_50 [2] : vector<2x8x8xf32> to vector<2x8xf32>
    %99 = vector.shape_cast %98 : vector<2x8xf32> to vector<2x8x1xf32>
    %100 = vector.broadcast %99 : vector<2x8x1xf32> to vector<2x8x8xf32>
    %101 = arith.subf %97, %100 : vector<2x8x8xf32>
    %102 = math.exp %101 : vector<2x8x8xf32>
    %cst_51 = arith.constant dense<0.000000e+00> : vector<2x8xf32>
    %103 = vector.multi_reduction <add>, %102, %cst_51 [2] : vector<2x8x8xf32> to vector<2x8xf32>
    %104 = vector.shape_cast %103 : vector<2x8xf32> to vector<2x8x1xf32>
    %105 = tpu.reciprocal %104 {approx = true} : vector<2x8x1xf32> -> vector<2x8x1xf32>
    %106 = vector.broadcast %105 : vector<2x8x1xf32> to vector<2x8x8xf32>
    %107 = arith.mulf %102, %106 : vector<2x8x8xf32>
    %108 = arith.truncf %107 : vector<2x8x8xf32> to vector<2x8x8xbf16>
    %109 = arith.truncf %94 : vector<2x8x8xf32> to vector<2x8x8xbf16>
    "tpu.trace_start"() <{level = 10 : i32, message = "bqk,bkd->bqd"}> : () -> ()
    %cst_52 = arith.constant dense<0.000000e+00> : vector<2x8x8xf32>
    %110 = tpu.matmul %108, %109, %cst_52 {dimension_numbers = #tpu.dot_dimension_numbers<[2], [1], [1], [2], [0, 0, 0, 1, 1, 2], [0], [0]>} : vector<2x8x8xbf16>, vector<2x8x8xbf16>, vector<2x8x8xf32> -> vector<2x8x8xf32>
    "tpu.trace_stop"() : () -> ()
    %111 = tpu.concatenate %47, %68, %89, %110 in 2 : vector<2x8x8xf32>, vector<2x8x8xf32>, vector<2x8x8xf32>, vector<2x8x8xf32> -> vector<2x8x32xf32>
    %112 = vector.shape_cast %111 : vector<2x8x32xf32> to vector<16x32xf32>
    %113 = arith.truncf %112 : vector<16x32xf32> to vector<16x32xbf16>
    %cst_53 = arith.constant dense<0.000000e+00> : vector<16x32xf32>
    %114 = tpu.matmul %113, %12, %cst_53 {dimension_numbers = #tpu.dot_dimension_numbers<[1], [0], [0], [1], [0, 0, 1, 1], [], []>} : vector<16x32xbf16>, vector<32x32xbf16>, vector<16x32xf32> -> vector<16x32xf32>
    %115 = vector.broadcast %13 : vector<1x32xf32> to vector<16x32xf32>
    %116 = arith.addf %114, %115 : vector<16x32xf32>
    %117 = arith.addf %9, %116 : vector<16x32xf32>
    %cst_54 = arith.constant dense<0.000000e+00> : vector<16xf32>
    %118 = vector.multi_reduction <add>, %117, %cst_54 [1] : vector<16x32xf32> to vector<16xf32>
    %119 = vector.shape_cast %118 : vector<16xf32> to vector<16x1xf32>
    %cst_55 = arith.constant 3.200000e+01 : f32
    %120 = vector.broadcast %cst_55 : f32 to vector<16x1xf32>
    %121 = arith.divf %119, %120 : vector<16x1xf32>
    %122 = vector.broadcast %121 : vector<16x1xf32> to vector<16x32xf32>
    %123 = arith.subf %117, %122 : vector<16x32xf32>
    %124 = arith.mulf %123, %123 : vector<16x32xf32>
    %cst_56 = arith.constant dense<0.000000e+00> : vector<16xf32>
    %125 = vector.multi_reduction <add>, %124, %cst_56 [1] : vector<16x32xf32> to vector<16xf32>
    %126 = vector.shape_cast %125 : vector<16xf32> to vector<16x1xf32>
    %cst_57 = arith.constant 3.200000e+01 : f32
    %127 = vector.broadcast %cst_57 : f32 to vector<16x1xf32>
    %128 = arith.divf %126, %127 : vector<16x1xf32>
    %129 = vector.broadcast %121 : vector<16x1xf32> to vector<16x32xf32>
    %130 = arith.subf %117, %129 : vector<16x32xf32>
    %cst_58 = arith.constant 9.99999974E-6 : f32
    %131 = vector.broadcast %cst_58 : f32 to vector<16x1xf32>
    %132 = arith.addf %128, %131 : vector<16x1xf32>
    %133 = math.rsqrt %132 : vector<16x1xf32>
    %134 = vector.broadcast %133 : vector<16x1xf32> to vector<16x32xf32>
    %135 = arith.mulf %130, %134 : vector<16x32xf32>
    %136 = vector.broadcast %14 : vector<1x32xf32> to vector<16x32xf32>
    %137 = arith.mulf %135, %136 : vector<16x32xf32>
    %138 = vector.broadcast %15 : vector<1x32xf32> to vector<16x32xf32>
    %139 = arith.addf %137, %138 : vector<16x32xf32>
    %140 = arith.truncf %139 : vector<16x32xf32> to vector<16x32xbf16>
    %cst_59 = arith.constant dense<0.000000e+00> : vector<16x128xf32>
    %141 = tpu.matmul %140, %16, %cst_59 {dimension_numbers = #tpu.dot_dimension_numbers<[1], [0], [0], [1], [0, 0, 1, 1], [], []>} : vector<16x32xbf16>, vector<32x128xbf16>, vector<16x128xf32> -> vector<16x128xf32>
    %142 = vector.broadcast %17 : vector<1x128xf32> to vector<16x128xf32>
    %143 = arith.addf %141, %142 : vector<16x128xf32>
    %cst_60 = arith.constant 5.000000e-01 : f32
    %144 = vector.broadcast %cst_60 : f32 to vector<16x128xf32>
    %145 = arith.mulf %144, %143 : vector<16x128xf32>
    %cst_61 = arith.constant 0.707106769 : f32
    %146 = vector.broadcast %cst_61 : f32 to vector<16x128xf32>
    %147 = arith.mulf %143, %146 : vector<16x128xf32>
    %cst_62 = arith.constant 0.000000e+00 : f32
    %148 = vector.broadcast %cst_62 : f32 to vector<16x128xf32>
    %149 = arith.cmpf oge, %147, %148 : vector<16x128xf32>
    %cst_63 = arith.constant 1.000000e+00 : f32
    %cst_64 = arith.constant -1.000000e+00 : f32
    %150 = vector.broadcast %cst_63 : f32 to vector<16x128xf32>
    %151 = vector.broadcast %cst_64 : f32 to vector<16x128xf32>
    %152 = arith.select %149, %150, %151 : vector<16x128xi1>, vector<16x128xf32>
    %153 = math.absf %147 : vector<16x128xf32>
    %cst_65 = arith.constant 0.327591091 : f32
    %154 = vector.broadcast %cst_65 : f32 to vector<16x128xf32>
    %155 = arith.mulf %154, %153 : vector<16x128xf32>
    %cst_66 = arith.constant 1.000000e+00 : f32
    %156 = vector.broadcast %cst_66 : f32 to vector<16x128xf32>
    %157 = arith.addf %156, %155 : vector<16x128xf32>
    %cst_67 = arith.constant 1.000000e+00 : f32
    %158 = vector.broadcast %cst_67 : f32 to vector<16x128xf32>
    %159 = arith.divf %158, %157 : vector<16x128xf32>
    %cst_68 = arith.constant 1.06140542 : f32
    %160 = vector.broadcast %cst_68 : f32 to vector<16x128xf32>
    %161 = arith.mulf %160, %159 : vector<16x128xf32>
    %cst_69 = arith.constant -1.45315206 : f32
    %162 = vector.broadcast %cst_69 : f32 to vector<16x128xf32>
    %163 = arith.addf %161, %162 : vector<16x128xf32>
    %164 = arith.mulf %163, %159 : vector<16x128xf32>
    %cst_70 = arith.constant 1.42141378 : f32
    %165 = vector.broadcast %cst_70 : f32 to vector<16x128xf32>
    %166 = arith.addf %164, %165 : vector<16x128xf32>
    %167 = arith.mulf %166, %159 : vector<16x128xf32>
    %cst_71 = arith.constant -0.284496725 : f32
    %168 = vector.broadcast %cst_71 : f32 to vector<16x128xf32>
    %169 = arith.addf %167, %168 : vector<16x128xf32>
    %170 = arith.mulf %169, %159 : vector<16x128xf32>
    %cst_72 = arith.constant 0.254829586 : f32
    %171 = vector.broadcast %cst_72 : f32 to vector<16x128xf32>
    %172 = arith.addf %170, %171 : vector<16x128xf32>
    %173 = arith.mulf %172, %159 : vector<16x128xf32>
    %cst_73 = arith.constant 0.000000e+00 : f32
    %174 = vector.broadcast %cst_73 : f32 to vector<16x128xf32>
    %175 = arith.subf %174, %153 : vector<16x128xf32>
    %176 = arith.mulf %175, %153 : vector<16x128xf32>
    %177 = math.exp %176 : vector<16x128xf32>
    %178 = arith.mulf %173, %177 : vector<16x128xf32>
    %cst_74 = arith.constant 1.000000e+00 : f32
    %179 = vector.broadcast %cst_74 : f32 to vector<16x128xf32>
    %180 = arith.subf %179, %178 : vector<16x128xf32>
    %181 = arith.mulf %152, %180 : vector<16x128xf32>
    %cst_75 = arith.constant 1.000000e+00 : f32
    %182 = vector.broadcast %cst_75 : f32 to vector<16x128xf32>
    %183 = arith.addf %182, %181 : vector<16x128xf32>
    %184 = arith.mulf %145, %183 : vector<16x128xf32>
    %185 = arith.truncf %184 : vector<16x128xf32> to vector<16x128xbf16>
    %cst_76 = arith.constant dense<0.000000e+00> : vector<16x32xf32>
    %186 = tpu.matmul %185, %18, %cst_76 {dimension_numbers = #tpu.dot_dimension_numbers<[1], [0], [0], [1], [0, 0, 1, 1], [], []>} : vector<16x128xbf16>, vector<128x32xbf16>, vector<16x32xf32> -> vector<16x32xf32>
    %187 = vector.broadcast %19 : vector<1x32xf32> to vector<16x32xf32>
    %188 = arith.addf %186, %187 : vector<16x32xf32>
    %189 = arith.addf %139, %188 : vector<16x32xf32>
    %cst_77 = arith.constant dense<0.000000e+00> : vector<16xf32>
    %190 = vector.multi_reduction <add>, %189, %cst_77 [1] : vector<16x32xf32> to vector<16xf32>
    %191 = vector.shape_cast %190 : vector<16xf32> to vector<16x1xf32>
    %cst_78 = arith.constant 3.200000e+01 : f32
    %192 = vector.broadcast %cst_78 : f32 to vector<16x1xf32>
    %193 = arith.divf %191, %192 : vector<16x1xf32>
    %194 = vector.broadcast %193 : vector<16x1xf32> to vector<16x32xf32>
    %195 = arith.subf %189, %194 : vector<16x32xf32>
    %196 = arith.mulf %195, %195 : vector<16x32xf32>
    %cst_79 = arith.constant dense<0.000000e+00> : vector<16xf32>
    %197 = vector.multi_reduction <add>, %196, %cst_79 [1] : vector<16x32xf32> to vector<16xf32>
    %198 = vector.shape_cast %197 : vector<16xf32> to vector<16x1xf32>
    %cst_80 = arith.constant 3.200000e+01 : f32
    %199 = vector.broadcast %cst_80 : f32 to vector<16x1xf32>
    %200 = arith.divf %198, %199 : vector<16x1xf32>
    %201 = vector.broadcast %193 : vector<16x1xf32> to vector<16x32xf32>
    %202 = arith.subf %189, %201 : vector<16x32xf32>
    %cst_81 = arith.constant 9.99999974E-6 : f32
    %203 = vector.broadcast %cst_81 : f32 to vector<16x1xf32>
    %204 = arith.addf %200, %203 : vector<16x1xf32>
    %205 = math.rsqrt %204 : vector<16x1xf32>
    %206 = vector.broadcast %205 : vector<16x1xf32> to vector<16x32xf32>
    %207 = arith.mulf %202, %206 : vector<16x32xf32>
    %208 = vector.broadcast %20 : vector<1x32xf32> to vector<16x32xf32>
    %209 = arith.mulf %207, %208 : vector<16x32xf32>
    %210 = vector.broadcast %21 : vector<1x32xf32> to vector<16x32xf32>
    %211 = arith.addf %209, %210 : vector<16x32xf32>
    %c0_82 = arith.constant 0 : index
    %c0_83 = arith.constant 0 : index
    %212 = vector.load %arg16[%c0_82, %c0_83] : memref<32x96xbf16, #tpu.memory_space<vmem>>, vector<32x96xbf16>
    %c0_84 = arith.constant 0 : index
    %c0_85 = arith.constant 0 : index
    %213 = vector.load %arg17[%c0_84, %c0_85] : memref<1x96xf32, #tpu.memory_space<vmem>>, vector<1x96xf32>
    %c0_86 = arith.constant 0 : index
    %c0_87 = arith.constant 0 : index
    %214 = vector.load %arg18[%c0_86, %c0_87] : memref<32x32xbf16, #tpu.memory_space<vmem>>, vector<32x32xbf16>
    %c0_88 = arith.constant 0 : index
    %c0_89 = arith.constant 0 : index
    %215 = vector.load %arg19[%c0_88, %c0_89] : memref<1x32xf32, #tpu.memory_space<vmem>>, vector<1x32xf32>
    %c0_90 = arith.constant 0 : index
    %c0_91 = arith.constant 0 : index
    %216 = vector.load %arg20[%c0_90, %c0_91] : memref<1x32xf32, #tpu.memory_space<vmem>>, vector<1x32xf32>
    %c0_92 = arith.constant 0 : index
    %c0_93 = arith.constant 0 : index
    %217 = vector.load %arg21[%c0_92, %c0_93] : memref<1x32xf32, #tpu.memory_space<vmem>>, vector<1x32xf32>
    %c0_94 = arith.constant 0 : index
    %c0_95 = arith.constant 0 : index
    %218 = vector.load %arg22[%c0_94, %c0_95] : memref<32x128xbf16, #tpu.memory_space<vmem>>, vector<32x128xbf16>
    %c0_96 = arith.constant 0 : index
    %c0_97 = arith.constant 0 : index
    %219 = vector.load %arg23[%c0_96, %c0_97] : memref<1x128xf32, #tpu.memory_space<vmem>>, vector<1x128xf32>
    %c0_98 = arith.constant 0 : index
    %c0_99 = arith.constant 0 : index
    %220 = vector.load %arg24[%c0_98, %c0_99] : memref<128x32xbf16, #tpu.memory_space<vmem>>, vector<128x32xbf16>
    %c0_100 = arith.constant 0 : index
    %c0_101 = arith.constant 0 : index
    %221 = vector.load %arg25[%c0_100, %c0_101] : memref<1x32xf32, #tpu.memory_space<vmem>>, vector<1x32xf32>
    %c0_102 = arith.constant 0 : index
    %c0_103 = arith.constant 0 : index
    %222 = vector.load %arg26[%c0_102, %c0_103] : memref<1x32xf32, #tpu.memory_space<vmem>>, vector<1x32xf32>
    %c0_104 = arith.constant 0 : index
    %c0_105 = arith.constant 0 : index
    %223 = vector.load %arg27[%c0_104, %c0_105] : memref<1x32xf32, #tpu.memory_space<vmem>>, vector<1x32xf32>
    %224 = arith.truncf %211 : vector<16x32xf32> to vector<16x32xbf16>
    %cst_106 = arith.constant dense<0.000000e+00> : vector<16x96xf32>
    %225 = tpu.matmul %224, %212, %cst_106 {dimension_numbers = #tpu.dot_dimension_numbers<[1], [0], [0], [1], [0, 0, 1, 1], [], []>} : vector<16x32xbf16>, vector<32x96xbf16>, vector<16x96xf32> -> vector<16x96xf32>
    %226 = vector.broadcast %213 : vector<1x96xf32> to vector<16x96xf32>
    %227 = arith.addf %225, %226 : vector<16x96xf32>
    %228 = vector.shape_cast %227 : vector<16x96xf32> to vector<2x8x96xf32>
    %229 = vector.extract_strided_slice %228 {offsets = [0, 0, 0], sizes = [2, 8, 8], strides = [1, 1, 1]} : vector<2x8x96xf32> to vector<2x8x8xf32>
    %cst_107 = arith.constant 0.353553385 : f32
    %230 = vector.broadcast %cst_107 : f32 to vector<2x8x8xf32>
    %231 = arith.mulf %229, %230 : vector<2x8x8xf32>
    %232 = vector.extract_strided_slice %228 {offsets = [0, 0, 32], sizes = [2, 8, 8], strides = [1, 1, 1]} : vector<2x8x96xf32> to vector<2x8x8xf32>
    %233 = vector.extract_strided_slice %228 {offsets = [0, 0, 64], sizes = [2, 8, 8], strides = [1, 1, 1]} : vector<2x8x96xf32> to vector<2x8x8xf32>
    %234 = arith.truncf %231 : vector<2x8x8xf32> to vector<2x8x8xbf16>
    %235 = arith.truncf %232 : vector<2x8x8xf32> to vector<2x8x8xbf16>
    "tpu.trace_start"() <{level = 10 : i32, message = "bqd,bkd->bqk"}> : () -> ()
    %cst_108 = arith.constant dense<0.000000e+00> : vector<2x8x8xf32>
    %236 = tpu.matmul %234, %235, %cst_108 {dimension_numbers = #tpu.dot_dimension_numbers<[2], [2], [1], [1], [0, 0, 0, 1, 1, 1], [0], [0]>} : vector<2x8x8xbf16>, vector<2x8x8xbf16>, vector<2x8x8xf32> -> vector<2x8x8xf32>
    "tpu.trace_stop"() : () -> ()
    %cst_109 = arith.constant dense<0xFF800000> : vector<2x8xf32>
    %237 = vector.multi_reduction <maximumf>, %236, %cst_109 [2] : vector<2x8x8xf32> to vector<2x8xf32>
    %238 = vector.shape_cast %237 : vector<2x8xf32> to vector<2x8x1xf32>
    %239 = vector.broadcast %238 : vector<2x8x1xf32> to vector<2x8x8xf32>
    %240 = arith.subf %236, %239 : vector<2x8x8xf32>
    %241 = math.exp %240 : vector<2x8x8xf32>
    %cst_110 = arith.constant dense<0.000000e+00> : vector<2x8xf32>
    %242 = vector.multi_reduction <add>, %241, %cst_110 [2] : vector<2x8x8xf32> to vector<2x8xf32>
    %243 = vector.shape_cast %242 : vector<2x8xf32> to vector<2x8x1xf32>
    %244 = tpu.reciprocal %243 {approx = true} : vector<2x8x1xf32> -> vector<2x8x1xf32>
    %245 = vector.broadcast %244 : vector<2x8x1xf32> to vector<2x8x8xf32>
    %246 = arith.mulf %241, %245 : vector<2x8x8xf32>
    %247 = arith.truncf %246 : vector<2x8x8xf32> to vector<2x8x8xbf16>
    %248 = arith.truncf %233 : vector<2x8x8xf32> to vector<2x8x8xbf16>
    "tpu.trace_start"() <{level = 10 : i32, message = "bqk,bkd->bqd"}> : () -> ()
    %cst_111 = arith.constant dense<0.000000e+00> : vector<2x8x8xf32>
    %249 = tpu.matmul %247, %248, %cst_111 {dimension_numbers = #tpu.dot_dimension_numbers<[2], [1], [1], [2], [0, 0, 0, 1, 1, 2], [0], [0]>} : vector<2x8x8xbf16>, vector<2x8x8xbf16>, vector<2x8x8xf32> -> vector<2x8x8xf32>
    "tpu.trace_stop"() : () -> ()
    %250 = vector.extract_strided_slice %228 {offsets = [0, 0, 8], sizes = [2, 8, 8], strides = [1, 1, 1]} : vector<2x8x96xf32> to vector<2x8x8xf32>
    %cst_112 = arith.constant 0.353553385 : f32
    %251 = vector.broadcast %cst_112 : f32 to vector<2x8x8xf32>
    %252 = arith.mulf %250, %251 : vector<2x8x8xf32>
    %253 = vector.extract_strided_slice %228 {offsets = [0, 0, 40], sizes = [2, 8, 8], strides = [1, 1, 1]} : vector<2x8x96xf32> to vector<2x8x8xf32>
    %254 = vector.extract_strided_slice %228 {offsets = [0, 0, 72], sizes = [2, 8, 8], strides = [1, 1, 1]} : vector<2x8x96xf32> to vector<2x8x8xf32>
    %255 = arith.truncf %252 : vector<2x8x8xf32> to vector<2x8x8xbf16>
    %256 = arith.truncf %253 : vector<2x8x8xf32> to vector<2x8x8xbf16>
    "tpu.trace_start"() <{level = 10 : i32, message = "bqd,bkd->bqk"}> : () -> ()
    %cst_113 = arith.constant dense<0.000000e+00> : vector<2x8x8xf32>
    %257 = tpu.matmul %255, %256, %cst_113 {dimension_numbers = #tpu.dot_dimension_numbers<[2], [2], [1], [1], [0, 0, 0, 1, 1, 1], [0], [0]>} : vector<2x8x8xbf16>, vector<2x8x8xbf16>, vector<2x8x8xf32> -> vector<2x8x8xf32>
    "tpu.trace_stop"() : () -> ()
    %cst_114 = arith.constant dense<0xFF800000> : vector<2x8xf32>
    %258 = vector.multi_reduction <maximumf>, %257, %cst_114 [2] : vector<2x8x8xf32> to vector<2x8xf32>
    %259 = vector.shape_cast %258 : vector<2x8xf32> to vector<2x8x1xf32>
    %260 = vector.broadcast %259 : vector<2x8x1xf32> to vector<2x8x8xf32>
    %261 = arith.subf %257, %260 : vector<2x8x8xf32>
    %262 = math.exp %261 : vector<2x8x8xf32>
    %cst_115 = arith.constant dense<0.000000e+00> : vector<2x8xf32>
    %263 = vector.multi_reduction <add>, %262, %cst_115 [2] : vector<2x8x8xf32> to vector<2x8xf32>
    %264 = vector.shape_cast %263 : vector<2x8xf32> to vector<2x8x1xf32>
    %265 = tpu.reciprocal %264 {approx = true} : vector<2x8x1xf32> -> vector<2x8x1xf32>
    %266 = vector.broadcast %265 : vector<2x8x1xf32> to vector<2x8x8xf32>
    %267 = arith.mulf %262, %266 : vector<2x8x8xf32>
    %268 = arith.truncf %267 : vector<2x8x8xf32> to vector<2x8x8xbf16>
    %269 = arith.truncf %254 : vector<2x8x8xf32> to vector<2x8x8xbf16>
    "tpu.trace_start"() <{level = 10 : i32, message = "bqk,bkd->bqd"}> : () -> ()
    %cst_116 = arith.constant dense<0.000000e+00> : vector<2x8x8xf32>
    %270 = tpu.matmul %268, %269, %cst_116 {dimension_numbers = #tpu.dot_dimension_numbers<[2], [1], [1], [2], [0, 0, 0, 1, 1, 2], [0], [0]>} : vector<2x8x8xbf16>, vector<2x8x8xbf16>, vector<2x8x8xf32> -> vector<2x8x8xf32>
    "tpu.trace_stop"() : () -> ()
    %271 = vector.extract_strided_slice %228 {offsets = [0, 0, 16], sizes = [2, 8, 8], strides = [1, 1, 1]} : vector<2x8x96xf32> to vector<2x8x8xf32>
    %cst_117 = arith.constant 0.353553385 : f32
    %272 = vector.broadcast %cst_117 : f32 to vector<2x8x8xf32>
    %273 = arith.mulf %271, %272 : vector<2x8x8xf32>
    %274 = vector.extract_strided_slice %228 {offsets = [0, 0, 48], sizes = [2, 8, 8], strides = [1, 1, 1]} : vector<2x8x96xf32> to vector<2x8x8xf32>
    %275 = vector.extract_strided_slice %228 {offsets = [0, 0, 80], sizes = [2, 8, 8], strides = [1, 1, 1]} : vector<2x8x96xf32> to vector<2x8x8xf32>
    %276 = arith.truncf %273 : vector<2x8x8xf32> to vector<2x8x8xbf16>
    %277 = arith.truncf %274 : vector<2x8x8xf32> to vector<2x8x8xbf16>
    "tpu.trace_start"() <{level = 10 : i32, message = "bqd,bkd->bqk"}> : () -> ()
    %cst_118 = arith.constant dense<0.000000e+00> : vector<2x8x8xf32>
    %278 = tpu.matmul %276, %277, %cst_118 {dimension_numbers = #tpu.dot_dimension_numbers<[2], [2], [1], [1], [0, 0, 0, 1, 1, 1], [0], [0]>} : vector<2x8x8xbf16>, vector<2x8x8xbf16>, vector<2x8x8xf32> -> vector<2x8x8xf32>
    "tpu.trace_stop"() : () -> ()
    %cst_119 = arith.constant dense<0xFF800000> : vector<2x8xf32>
    %279 = vector.multi_reduction <maximumf>, %278, %cst_119 [2] : vector<2x8x8xf32> to vector<2x8xf32>
    %280 = vector.shape_cast %279 : vector<2x8xf32> to vector<2x8x1xf32>
    %281 = vector.broadcast %280 : vector<2x8x1xf32> to vector<2x8x8xf32>
    %282 = arith.subf %278, %281 : vector<2x8x8xf32>
    %283 = math.exp %282 : vector<2x8x8xf32>
    %cst_120 = arith.constant dense<0.000000e+00> : vector<2x8xf32>
    %284 = vector.multi_reduction <add>, %283, %cst_120 [2] : vector<2x8x8xf32> to vector<2x8xf32>
    %285 = vector.shape_cast %284 : vector<2x8xf32> to vector<2x8x1xf32>
    %286 = tpu.reciprocal %285 {approx = true} : vector<2x8x1xf32> -> vector<2x8x1xf32>
    %287 = vector.broadcast %286 : vector<2x8x1xf32> to vector<2x8x8xf32>
    %288 = arith.mulf %283, %287 : vector<2x8x8xf32>
    %289 = arith.truncf %288 : vector<2x8x8xf32> to vector<2x8x8xbf16>
    %290 = arith.truncf %275 : vector<2x8x8xf32> to vector<2x8x8xbf16>
    "tpu.trace_start"() <{level = 10 : i32, message = "bqk,bkd->bqd"}> : () -> ()
    %cst_121 = arith.constant dense<0.000000e+00> : vector<2x8x8xf32>
    %291 = tpu.matmul %289, %290, %cst_121 {dimension_numbers = #tpu.dot_dimension_numbers<[2], [1], [1], [2], [0, 0, 0, 1, 1, 2], [0], [0]>} : vector<2x8x8xbf16>, vector<2x8x8xbf16>, vector<2x8x8xf32> -> vector<2x8x8xf32>
    "tpu.trace_stop"() : () -> ()
    %292 = vector.extract_strided_slice %228 {offsets = [0, 0, 24], sizes = [2, 8, 8], strides = [1, 1, 1]} : vector<2x8x96xf32> to vector<2x8x8xf32>
    %cst_122 = arith.constant 0.353553385 : f32
    %293 = vector.broadcast %cst_122 : f32 to vector<2x8x8xf32>
    %294 = arith.mulf %292, %293 : vector<2x8x8xf32>
    %295 = vector.extract_strided_slice %228 {offsets = [0, 0, 56], sizes = [2, 8, 8], strides = [1, 1, 1]} : vector<2x8x96xf32> to vector<2x8x8xf32>
    %296 = vector.extract_strided_slice %228 {offsets = [0, 0, 88], sizes = [2, 8, 8], strides = [1, 1, 1]} : vector<2x8x96xf32> to vector<2x8x8xf32>
    %297 = arith.truncf %294 : vector<2x8x8xf32> to vector<2x8x8xbf16>
    %298 = arith.truncf %295 : vector<2x8x8xf32> to vector<2x8x8xbf16>
    "tpu.trace_start"() <{level = 10 : i32, message = "bqd,bkd->bqk"}> : () -> ()
    %cst_123 = arith.constant dense<0.000000e+00> : vector<2x8x8xf32>
    %299 = tpu.matmul %297, %298, %cst_123 {dimension_numbers = #tpu.dot_dimension_numbers<[2], [2], [1], [1], [0, 0, 0, 1, 1, 1], [0], [0]>} : vector<2x8x8xbf16>, vector<2x8x8xbf16>, vector<2x8x8xf32> -> vector<2x8x8xf32>
    "tpu.trace_stop"() : () -> ()
    %cst_124 = arith.constant dense<0xFF800000> : vector<2x8xf32>
    %300 = vector.multi_reduction <maximumf>, %299, %cst_124 [2] : vector<2x8x8xf32> to vector<2x8xf32>
    %301 = vector.shape_cast %300 : vector<2x8xf32> to vector<2x8x1xf32>
    %302 = vector.broadcast %301 : vector<2x8x1xf32> to vector<2x8x8xf32>
    %303 = arith.subf %299, %302 : vector<2x8x8xf32>
    %304 = math.exp %303 : vector<2x8x8xf32>
    %cst_125 = arith.constant dense<0.000000e+00> : vector<2x8xf32>
    %305 = vector.multi_reduction <add>, %304, %cst_125 [2] : vector<2x8x8xf32> to vector<2x8xf32>
    %306 = vector.shape_cast %305 : vector<2x8xf32> to vector<2x8x1xf32>
    %307 = tpu.reciprocal %306 {approx = true} : vector<2x8x1xf32> -> vector<2x8x1xf32>
    %308 = vector.broadcast %307 : vector<2x8x1xf32> to vector<2x8x8xf32>
    %309 = arith.mulf %304, %308 : vector<2x8x8xf32>
    %310 = arith.truncf %309 : vector<2x8x8xf32> to vector<2x8x8xbf16>
    %311 = arith.truncf %296 : vector<2x8x8xf32> to vector<2x8x8xbf16>
    "tpu.trace_start"() <{level = 10 : i32, message = "bqk,bkd->bqd"}> : () -> ()
    %cst_126 = arith.constant dense<0.000000e+00> : vector<2x8x8xf32>
    %312 = tpu.matmul %310, %311, %cst_126 {dimension_numbers = #tpu.dot_dimension_numbers<[2], [1], [1], [2], [0, 0, 0, 1, 1, 2], [0], [0]>} : vector<2x8x8xbf16>, vector<2x8x8xbf16>, vector<2x8x8xf32> -> vector<2x8x8xf32>
    "tpu.trace_stop"() : () -> ()
    %313 = tpu.concatenate %249, %270, %291, %312 in 2 : vector<2x8x8xf32>, vector<2x8x8xf32>, vector<2x8x8xf32>, vector<2x8x8xf32> -> vector<2x8x32xf32>
    %314 = vector.shape_cast %313 : vector<2x8x32xf32> to vector<16x32xf32>
    %315 = arith.truncf %314 : vector<16x32xf32> to vector<16x32xbf16>
    %cst_127 = arith.constant dense<0.000000e+00> : vector<16x32xf32>
    %316 = tpu.matmul %315, %214, %cst_127 {dimension_numbers = #tpu.dot_dimension_numbers<[1], [0], [0], [1], [0, 0, 1, 1], [], []>} : vector<16x32xbf16>, vector<32x32xbf16>, vector<16x32xf32> -> vector<16x32xf32>
    %317 = vector.broadcast %215 : vector<1x32xf32> to vector<16x32xf32>
    %318 = arith.addf %316, %317 : vector<16x32xf32>
    %319 = arith.addf %211, %318 : vector<16x32xf32>
    %cst_128 = arith.constant dense<0.000000e+00> : vector<16xf32>
    %320 = vector.multi_reduction <add>, %319, %cst_128 [1] : vector<16x32xf32> to vector<16xf32>
    %321 = vector.shape_cast %320 : vector<16xf32> to vector<16x1xf32>
    %cst_129 = arith.constant 3.200000e+01 : f32
    %322 = vector.broadcast %cst_129 : f32 to vector<16x1xf32>
    %323 = arith.divf %321, %322 : vector<16x1xf32>
    %324 = vector.broadcast %323 : vector<16x1xf32> to vector<16x32xf32>
    %325 = arith.subf %319, %324 : vector<16x32xf32>
    %326 = arith.mulf %325, %325 : vector<16x32xf32>
    %cst_130 = arith.constant dense<0.000000e+00> : vector<16xf32>
    %327 = vector.multi_reduction <add>, %326, %cst_130 [1] : vector<16x32xf32> to vector<16xf32>
    %328 = vector.shape_cast %327 : vector<16xf32> to vector<16x1xf32>
    %cst_131 = arith.constant 3.200000e+01 : f32
    %329 = vector.broadcast %cst_131 : f32 to vector<16x1xf32>
    %330 = arith.divf %328, %329 : vector<16x1xf32>
    %331 = vector.broadcast %323 : vector<16x1xf32> to vector<16x32xf32>
    %332 = arith.subf %319, %331 : vector<16x32xf32>
    %cst_132 = arith.constant 9.99999974E-6 : f32
    %333 = vector.broadcast %cst_132 : f32 to vector<16x1xf32>
    %334 = arith.addf %330, %333 : vector<16x1xf32>
    %335 = math.rsqrt %334 : vector<16x1xf32>
    %336 = vector.broadcast %335 : vector<16x1xf32> to vector<16x32xf32>
    %337 = arith.mulf %332, %336 : vector<16x32xf32>
    %338 = vector.broadcast %216 : vector<1x32xf32> to vector<16x32xf32>
    %339 = arith.mulf %337, %338 : vector<16x32xf32>
    %340 = vector.broadcast %217 : vector<1x32xf32> to vector<16x32xf32>
    %341 = arith.addf %339, %340 : vector<16x32xf32>
    %342 = arith.truncf %341 : vector<16x32xf32> to vector<16x32xbf16>
    %cst_133 = arith.constant dense<0.000000e+00> : vector<16x128xf32>
    %343 = tpu.matmul %342, %218, %cst_133 {dimension_numbers = #tpu.dot_dimension_numbers<[1], [0], [0], [1], [0, 0, 1, 1], [], []>} : vector<16x32xbf16>, vector<32x128xbf16>, vector<16x128xf32> -> vector<16x128xf32>
    %344 = vector.broadcast %219 : vector<1x128xf32> to vector<16x128xf32>
    %345 = arith.addf %343, %344 : vector<16x128xf32>
    %cst_134 = arith.constant 5.000000e-01 : f32
    %346 = vector.broadcast %cst_134 : f32 to vector<16x128xf32>
    %347 = arith.mulf %346, %345 : vector<16x128xf32>
    %cst_135 = arith.constant 0.707106769 : f32
    %348 = vector.broadcast %cst_135 : f32 to vector<16x128xf32>
    %349 = arith.mulf %345, %348 : vector<16x128xf32>
    %cst_136 = arith.constant 0.000000e+00 : f32
    %350 = vector.broadcast %cst_136 : f32 to vector<16x128xf32>
    %351 = arith.cmpf oge, %349, %350 : vector<16x128xf32>
    %cst_137 = arith.constant 1.000000e+00 : f32
    %cst_138 = arith.constant -1.000000e+00 : f32
    %352 = vector.broadcast %cst_137 : f32 to vector<16x128xf32>
    %353 = vector.broadcast %cst_138 : f32 to vector<16x128xf32>
    %354 = arith.select %351, %352, %353 : vector<16x128xi1>, vector<16x128xf32>
    %355 = math.absf %349 : vector<16x128xf32>
    %cst_139 = arith.constant 0.327591091 : f32
    %356 = vector.broadcast %cst_139 : f32 to vector<16x128xf32>
    %357 = arith.mulf %356, %355 : vector<16x128xf32>
    %cst_140 = arith.constant 1.000000e+00 : f32
    %358 = vector.broadcast %cst_140 : f32 to vector<16x128xf32>
    %359 = arith.addf %358, %357 : vector<16x128xf32>
    %cst_141 = arith.constant 1.000000e+00 : f32
    %360 = vector.broadcast %cst_141 : f32 to vector<16x128xf32>
    %361 = arith.divf %360, %359 : vector<16x128xf32>
    %cst_142 = arith.constant 1.06140542 : f32
    %362 = vector.broadcast %cst_142 : f32 to vector<16x128xf32>
    %363 = arith.mulf %362, %361 : vector<16x128xf32>
    %cst_143 = arith.constant -1.45315206 : f32
    %364 = vector.broadcast %cst_143 : f32 to vector<16x128xf32>
    %365 = arith.addf %363, %364 : vector<16x128xf32>
    %366 = arith.mulf %365, %361 : vector<16x128xf32>
    %cst_144 = arith.constant 1.42141378 : f32
    %367 = vector.broadcast %cst_144 : f32 to vector<16x128xf32>
    %368 = arith.addf %366, %367 : vector<16x128xf32>
    %369 = arith.mulf %368, %361 : vector<16x128xf32>
    %cst_145 = arith.constant -0.284496725 : f32
    %370 = vector.broadcast %cst_145 : f32 to vector<16x128xf32>
    %371 = arith.addf %369, %370 : vector<16x128xf32>
    %372 = arith.mulf %371, %361 : vector<16x128xf32>
    %cst_146 = arith.constant 0.254829586 : f32
    %373 = vector.broadcast %cst_146 : f32 to vector<16x128xf32>
    %374 = arith.addf %372, %373 : vector<16x128xf32>
    %375 = arith.mulf %374, %361 : vector<16x128xf32>
    %cst_147 = arith.constant 0.000000e+00 : f32
    %376 = vector.broadcast %cst_147 : f32 to vector<16x128xf32>
    %377 = arith.subf %376, %355 : vector<16x128xf32>
    %378 = arith.mulf %377, %355 : vector<16x128xf32>
    %379 = math.exp %378 : vector<16x128xf32>
    %380 = arith.mulf %375, %379 : vector<16x128xf32>
    %cst_148 = arith.constant 1.000000e+00 : f32
    %381 = vector.broadcast %cst_148 : f32 to vector<16x128xf32>
    %382 = arith.subf %381, %380 : vector<16x128xf32>
    %383 = arith.mulf %354, %382 : vector<16x128xf32>
    %cst_149 = arith.constant 1.000000e+00 : f32
    %384 = vector.broadcast %cst_149 : f32 to vector<16x128xf32>
    %385 = arith.addf %384, %383 : vector<16x128xf32>
    %386 = arith.mulf %347, %385 : vector<16x128xf32>
    %387 = arith.truncf %386 : vector<16x128xf32> to vector<16x128xbf16>
    %cst_150 = arith.constant dense<0.000000e+00> : vector<16x32xf32>
    %388 = tpu.matmul %387, %220, %cst_150 {dimension_numbers = #tpu.dot_dimension_numbers<[1], [0], [0], [1], [0, 0, 1, 1], [], []>} : vector<16x128xbf16>, vector<128x32xbf16>, vector<16x32xf32> -> vector<16x32xf32>
    %389 = vector.broadcast %221 : vector<1x32xf32> to vector<16x32xf32>
    %390 = arith.addf %388, %389 : vector<16x32xf32>
    %391 = arith.addf %341, %390 : vector<16x32xf32>
    %cst_151 = arith.constant dense<0.000000e+00> : vector<16xf32>
    %392 = vector.multi_reduction <add>, %391, %cst_151 [1] : vector<16x32xf32> to vector<16xf32>
    %393 = vector.shape_cast %392 : vector<16xf32> to vector<16x1xf32>
    %cst_152 = arith.constant 3.200000e+01 : f32
    %394 = vector.broadcast %cst_152 : f32 to vector<16x1xf32>
    %395 = arith.divf %393, %394 : vector<16x1xf32>
    %396 = vector.broadcast %395 : vector<16x1xf32> to vector<16x32xf32>
    %397 = arith.subf %391, %396 : vector<16x32xf32>
    %398 = arith.mulf %397, %397 : vector<16x32xf32>
    %cst_153 = arith.constant dense<0.000000e+00> : vector<16xf32>
    %399 = vector.multi_reduction <add>, %398, %cst_153 [1] : vector<16x32xf32> to vector<16xf32>
    %400 = vector.shape_cast %399 : vector<16xf32> to vector<16x1xf32>
    %cst_154 = arith.constant 3.200000e+01 : f32
    %401 = vector.broadcast %cst_154 : f32 to vector<16x1xf32>
    %402 = arith.divf %400, %401 : vector<16x1xf32>
    %403 = vector.broadcast %395 : vector<16x1xf32> to vector<16x32xf32>
    %404 = arith.subf %391, %403 : vector<16x32xf32>
    %cst_155 = arith.constant 9.99999974E-6 : f32
    %405 = vector.broadcast %cst_155 : f32 to vector<16x1xf32>
    %406 = arith.addf %402, %405 : vector<16x1xf32>
    %407 = math.rsqrt %406 : vector<16x1xf32>
    %408 = vector.broadcast %407 : vector<16x1xf32> to vector<16x32xf32>
    %409 = arith.mulf %404, %408 : vector<16x32xf32>
    %410 = vector.broadcast %222 : vector<1x32xf32> to vector<16x32xf32>
    %411 = arith.mulf %409, %410 : vector<16x32xf32>
    %412 = vector.broadcast %223 : vector<1x32xf32> to vector<16x32xf32>
    %413 = arith.addf %411, %412 : vector<16x32xf32>
    %414 = arith.addf %9, %413 : vector<16x32xf32>
    %415 = tpu.iota {dimensions = array<i32: 1>} : vector<1x96xi32>
    %c32_i32 = arith.constant 32 : i32
    %c0_i32 = arith.constant 0 : i32
    %416 = arith.cmpi eq, %c32_i32, %c0_i32 : i32
    %c1_i32 = arith.constant 1 : i32
    %417 = arith.select %416, %c1_i32, %c32_i32 : i32
    %418 = vector.broadcast %417 : i32 to vector<1x96xi32>
    %419 = arith.remsi %415, %418 : vector<1x96xi32>
    %c0_i32_156 = arith.constant 0 : i32
    %420 = vector.broadcast %c0_i32_156 : i32 to vector<1x96xi32>
    %421 = arith.cmpi ne, %419, %420 : vector<1x96xi32>
    %c0_i32_157 = arith.constant 0 : i32
    %422 = vector.broadcast %c0_i32_157 : i32 to vector<1x96xi32>
    %423 = arith.cmpi slt, %419, %422 : vector<1x96xi32>
    %c0_i32_158 = arith.constant 0 : i32
    %424 = arith.cmpi slt, %417, %c0_i32_158 : i32
    %425 = vector.broadcast %424 : i1 to vector<1x96xi1>
    %426 = vector.broadcast %425 : vector<1x96xi1> to vector<1x96xi1>
    %427 = arith.xori %423, %426 : vector<1x96xi1>
    %428 = arith.andi %427, %421 : vector<1x96xi1>
    %429 = vector.broadcast %417 : i32 to vector<1x96xi32>
    %430 = arith.addi %419, %429 : vector<1x96xi32>
    %431 = arith.select %428, %430, %419 : vector<1x96xi1>, vector<1x96xi32>
    %c16_i32 = arith.constant 16 : i32
    %432 = vector.broadcast %c16_i32 : i32 to vector<1x96xi32>
    %433 = arith.cmpi slt, %431, %432 : vector<1x96xi32>
    %434 = tpu.iota {dimensions = array<i32: 1>} : vector<1x32xi32>
    %c16_i32_159 = arith.constant 16 : i32
    %435 = vector.broadcast %c16_i32_159 : i32 to vector<1x32xi32>
    %436 = arith.cmpi slt, %434, %435 : vector<1x32xi32>
    %437 = vector.extract_strided_slice %414 {offsets = [0, 0], sizes = [1, 32], strides = [1, 1]} : vector<16x32xf32> to vector<1x32xf32>
    %438 = vector.extract_strided_slice %414 {offsets = [8, 0], sizes = [1, 32], strides = [1, 1]} : vector<16x32xf32> to vector<1x32xf32>
    %439 = vector.extract_strided_slice %414 {offsets = [1, 0], sizes = [1, 32], strides = [1, 1]} : vector<16x32xf32> to vector<1x32xf32>
    %440 = vector.extract_strided_slice %414 {offsets = [9, 0], sizes = [1, 32], strides = [1, 1]} : vector<16x32xf32> to vector<1x32xf32>
    %441 = vector.extract_strided_slice %414 {offsets = [2, 0], sizes = [1, 32], strides = [1, 1]} : vector<16x32xf32> to vector<1x32xf32>
    %442 = vector.extract_strided_slice %414 {offsets = [10, 0], sizes = [1, 32], strides = [1, 1]} : vector<16x32xf32> to vector<1x32xf32>
    %443 = vector.extract_strided_slice %414 {offsets = [3, 0], sizes = [1, 32], strides = [1, 1]} : vector<16x32xf32> to vector<1x32xf32>
    %444 = vector.extract_strided_slice %414 {offsets = [11, 0], sizes = [1, 32], strides = [1, 1]} : vector<16x32xf32> to vector<1x32xf32>
    %445 = vector.extract_strided_slice %414 {offsets = [4, 0], sizes = [1, 32], strides = [1, 1]} : vector<16x32xf32> to vector<1x32xf32>
    %446 = vector.extract_strided_slice %414 {offsets = [12, 0], sizes = [1, 32], strides = [1, 1]} : vector<16x32xf32> to vector<1x32xf32>
    %447 = vector.extract_strided_slice %414 {offsets = [5, 0], sizes = [1, 32], strides = [1, 1]} : vector<16x32xf32> to vector<1x32xf32>
    %448 = vector.extract_strided_slice %414 {offsets = [13, 0], sizes = [1, 32], strides = [1, 1]} : vector<16x32xf32> to vector<1x32xf32>
    %449 = vector.extract_strided_slice %414 {offsets = [6, 0], sizes = [1, 32], strides = [1, 1]} : vector<16x32xf32> to vector<1x32xf32>
    %450 = vector.extract_strided_slice %414 {offsets = [14, 0], sizes = [1, 32], strides = [1, 1]} : vector<16x32xf32> to vector<1x32xf32>
    %451 = vector.extract_strided_slice %414 {offsets = [7, 0], sizes = [1, 32], strides = [1, 1]} : vector<16x32xf32> to vector<1x32xf32>
    %452 = vector.extract_strided_slice %414 {offsets = [15, 0], sizes = [1, 32], strides = [1, 1]} : vector<16x32xf32> to vector<1x32xf32>
    %453 = tpu.concatenate %437, %438, %439, %440, %441, %442, %443, %444, %445, %446, %447, %448, %449, %450, %451, %452 in 0 : vector<1x32xf32>, vector<1x32xf32>, vector<1x32xf32>, vector<1x32xf32>, vector<1x32xf32>, vector<1x32xf32>, vector<1x32xf32>, vector<1x32xf32>, vector<1x32xf32>, vector<1x32xf32>, vector<1x32xf32>, vector<1x32xf32>, vector<1x32xf32>, vector<1x32xf32>, vector<1x32xf32>, vector<1x32xf32> -> vector<16x32xf32>
    %c0_160 = arith.constant 0 : index
    %c0_161 = arith.constant 0 : index
    %454 = vector.load %arg28[%c0_160, %c0_161] : memref<32x96xbf16, #tpu.memory_space<vmem>>, vector<32x96xbf16>
    %c0_162 = arith.constant 0 : index
    %c0_163 = arith.constant 0 : index
    %455 = vector.load %arg29[%c0_162, %c0_163] : memref<1x96xf32, #tpu.memory_space<vmem>>, vector<1x96xf32>
    %c0_164 = arith.constant 0 : index
    %c0_165 = arith.constant 0 : index
    %456 = vector.load %arg30[%c0_164, %c0_165] : memref<32x96xbf16, #tpu.memory_space<vmem>>, vector<32x96xbf16>
    %c0_166 = arith.constant 0 : index
    %c0_167 = arith.constant 0 : index
    %457 = vector.load %arg31[%c0_166, %c0_167] : memref<1x96xf32, #tpu.memory_space<vmem>>, vector<1x96xf32>
    %458 = arith.truncf %453 : vector<16x32xf32> to vector<16x32xbf16>
    %cst_168 = arith.constant dense<0.000000e+00> : vector<16x96xf32>
    %459 = tpu.matmul %458, %454, %cst_168 {dimension_numbers = #tpu.dot_dimension_numbers<[1], [0], [0], [1], [0, 0, 1, 1], [], []>} : vector<16x32xbf16>, vector<32x96xbf16>, vector<16x96xf32> -> vector<16x96xf32>
    %460 = vector.broadcast %455 : vector<1x96xf32> to vector<16x96xf32>
    %461 = arith.addf %459, %460 : vector<16x96xf32>
    %cst_169 = arith.constant 0.000000e+00 : f32
    %462 = vector.broadcast %cst_169 : f32 to vector<2x32xf32>
    %463 = vector.extract_strided_slice %461 {offsets = [0, 0], sizes = [2, 96], strides = [1, 1]} : vector<16x96xf32> to vector<2x96xf32>
    %464 = vector.extract_strided_slice %461 {offsets = [14, 0], sizes = [2, 96], strides = [1, 1]} : vector<16x96xf32> to vector<2x96xf32>
    %465 = vector.shape_cast %433 : vector<1x96xi1> to vector<1x96xi1>
    %466 = vector.broadcast %465 : vector<1x96xi1> to vector<2x96xi1>
    %467 = arith.select %466, %463, %464 : vector<2x96xi1>, vector<2x96xf32>
    %468 = arith.truncf %462 : vector<2x32xf32> to vector<2x32xbf16>
    %cst_170 = arith.constant dense<0.000000e+00> : vector<2x96xf32>
    %469 = tpu.matmul %468, %456, %cst_170 {dimension_numbers = #tpu.dot_dimension_numbers<[1], [0], [0], [1], [0, 0, 1, 1], [], []>} : vector<2x32xbf16>, vector<32x96xbf16>, vector<2x96xf32> -> vector<2x96xf32>
    %470 = vector.broadcast %457 : vector<1x96xf32> to vector<2x96xf32>
    %471 = arith.addf %469, %470 : vector<2x96xf32>
    %472 = vector.extract_strided_slice %467 {offsets = [0, 0], sizes = [2, 32], strides = [1, 1]} : vector<2x96xf32> to vector<2x32xf32>
    %473 = vector.extract_strided_slice %471 {offsets = [0, 0], sizes = [2, 32], strides = [1, 1]} : vector<2x96xf32> to vector<2x32xf32>
    %474 = arith.addf %472, %473 : vector<2x32xf32>
    %475 = arith.negf %474 : vector<2x32xf32>
    %476 = math.exp %475 : vector<2x32xf32>
    %cst_171 = arith.constant 1.000000e+00 : f32
    %477 = vector.broadcast %cst_171 : f32 to vector<2x32xf32>
    %478 = arith.addf %477, %476 : vector<2x32xf32>
    %479 = arith.divf %477, %478 : vector<2x32xf32>
    %480 = vector.extract_strided_slice %467 {offsets = [0, 32], sizes = [2, 32], strides = [1, 1]} : vector<2x96xf32> to vector<2x32xf32>
    %481 = vector.extract_strided_slice %471 {offsets = [0, 32], sizes = [2, 32], strides = [1, 1]} : vector<2x96xf32> to vector<2x32xf32>
    %482 = arith.addf %480, %481 : vector<2x32xf32>
    %483 = arith.negf %482 : vector<2x32xf32>
    %484 = math.exp %483 : vector<2x32xf32>
    %cst_172 = arith.constant 1.000000e+00 : f32
    %485 = vector.broadcast %cst_172 : f32 to vector<2x32xf32>
    %486 = arith.addf %485, %484 : vector<2x32xf32>
    %487 = arith.divf %485, %486 : vector<2x32xf32>
    %488 = vector.extract_strided_slice %467 {offsets = [0, 64], sizes = [2, 32], strides = [1, 1]} : vector<2x96xf32> to vector<2x32xf32>
    %489 = vector.extract_strided_slice %471 {offsets = [0, 64], sizes = [2, 32], strides = [1, 1]} : vector<2x96xf32> to vector<2x32xf32>
    %490 = arith.mulf %479, %489 : vector<2x32xf32>
    %491 = arith.addf %488, %490 : vector<2x32xf32>
    %492 = math.tanh %491 : vector<2x32xf32>
    %cst_173 = arith.constant 1.000000e+00 : f32
    %493 = vector.broadcast %cst_173 : f32 to vector<2x32xf32>
    %494 = arith.subf %493, %487 : vector<2x32xf32>
    %495 = arith.mulf %494, %492 : vector<2x32xf32>
    %496 = arith.mulf %487, %462 : vector<2x32xf32>
    %497 = arith.addf %495, %496 : vector<2x32xf32>
    %498 = vector.extract_strided_slice %461 {offsets = [2, 0], sizes = [2, 96], strides = [1, 1]} : vector<16x96xf32> to vector<2x96xf32>
    %499 = vector.extract_strided_slice %461 {offsets = [12, 0], sizes = [2, 96], strides = [1, 1]} : vector<16x96xf32> to vector<2x96xf32>
    %500 = vector.shape_cast %433 : vector<1x96xi1> to vector<1x96xi1>
    %501 = vector.broadcast %500 : vector<1x96xi1> to vector<2x96xi1>
    %502 = arith.select %501, %498, %499 : vector<2x96xi1>, vector<2x96xf32>
    %503 = arith.truncf %497 : vector<2x32xf32> to vector<2x32xbf16>
    %cst_174 = arith.constant dense<0.000000e+00> : vector<2x96xf32>
    %504 = tpu.matmul %503, %456, %cst_174 {dimension_numbers = #tpu.dot_dimension_numbers<[1], [0], [0], [1], [0, 0, 1, 1], [], []>} : vector<2x32xbf16>, vector<32x96xbf16>, vector<2x96xf32> -> vector<2x96xf32>
    %505 = vector.broadcast %457 : vector<1x96xf32> to vector<2x96xf32>
    %506 = arith.addf %504, %505 : vector<2x96xf32>
    %507 = vector.extract_strided_slice %502 {offsets = [0, 0], sizes = [2, 32], strides = [1, 1]} : vector<2x96xf32> to vector<2x32xf32>
    %508 = vector.extract_strided_slice %506 {offsets = [0, 0], sizes = [2, 32], strides = [1, 1]} : vector<2x96xf32> to vector<2x32xf32>
    %509 = arith.addf %507, %508 : vector<2x32xf32>
    %510 = arith.negf %509 : vector<2x32xf32>
    %511 = math.exp %510 : vector<2x32xf32>
    %cst_175 = arith.constant 1.000000e+00 : f32
    %512 = vector.broadcast %cst_175 : f32 to vector<2x32xf32>
    %513 = arith.addf %512, %511 : vector<2x32xf32>
    %514 = arith.divf %512, %513 : vector<2x32xf32>
    %515 = vector.extract_strided_slice %502 {offsets = [0, 32], sizes = [2, 32], strides = [1, 1]} : vector<2x96xf32> to vector<2x32xf32>
    %516 = vector.extract_strided_slice %506 {offsets = [0, 32], sizes = [2, 32], strides = [1, 1]} : vector<2x96xf32> to vector<2x32xf32>
    %517 = arith.addf %515, %516 : vector<2x32xf32>
    %518 = arith.negf %517 : vector<2x32xf32>
    %519 = math.exp %518 : vector<2x32xf32>
    %cst_176 = arith.constant 1.000000e+00 : f32
    %520 = vector.broadcast %cst_176 : f32 to vector<2x32xf32>
    %521 = arith.addf %520, %519 : vector<2x32xf32>
    %522 = arith.divf %520, %521 : vector<2x32xf32>
    %523 = vector.extract_strided_slice %502 {offsets = [0, 64], sizes = [2, 32], strides = [1, 1]} : vector<2x96xf32> to vector<2x32xf32>
    %524 = vector.extract_strided_slice %506 {offsets = [0, 64], sizes = [2, 32], strides = [1, 1]} : vector<2x96xf32> to vector<2x32xf32>
    %525 = arith.mulf %514, %524 : vector<2x32xf32>
    %526 = arith.addf %523, %525 : vector<2x32xf32>
    %527 = math.tanh %526 : vector<2x32xf32>
    %cst_177 = arith.constant 1.000000e+00 : f32
    %528 = vector.broadcast %cst_177 : f32 to vector<2x32xf32>
    %529 = arith.subf %528, %522 : vector<2x32xf32>
    %530 = arith.mulf %529, %527 : vector<2x32xf32>
    %531 = arith.mulf %522, %497 : vector<2x32xf32>
    %532 = arith.addf %530, %531 : vector<2x32xf32>
    %533 = vector.extract_strided_slice %461 {offsets = [4, 0], sizes = [2, 96], strides = [1, 1]} : vector<16x96xf32> to vector<2x96xf32>
    %534 = vector.extract_strided_slice %461 {offsets = [10, 0], sizes = [2, 96], strides = [1, 1]} : vector<16x96xf32> to vector<2x96xf32>
    %535 = vector.shape_cast %433 : vector<1x96xi1> to vector<1x96xi1>
    %536 = vector.broadcast %535 : vector<1x96xi1> to vector<2x96xi1>
    %537 = arith.select %536, %533, %534 : vector<2x96xi1>, vector<2x96xf32>
    %538 = arith.truncf %532 : vector<2x32xf32> to vector<2x32xbf16>
    %cst_178 = arith.constant dense<0.000000e+00> : vector<2x96xf32>
    %539 = tpu.matmul %538, %456, %cst_178 {dimension_numbers = #tpu.dot_dimension_numbers<[1], [0], [0], [1], [0, 0, 1, 1], [], []>} : vector<2x32xbf16>, vector<32x96xbf16>, vector<2x96xf32> -> vector<2x96xf32>
    %540 = vector.broadcast %457 : vector<1x96xf32> to vector<2x96xf32>
    %541 = arith.addf %539, %540 : vector<2x96xf32>
    %542 = vector.extract_strided_slice %537 {offsets = [0, 0], sizes = [2, 32], strides = [1, 1]} : vector<2x96xf32> to vector<2x32xf32>
    %543 = vector.extract_strided_slice %541 {offsets = [0, 0], sizes = [2, 32], strides = [1, 1]} : vector<2x96xf32> to vector<2x32xf32>
    %544 = arith.addf %542, %543 : vector<2x32xf32>
    %545 = arith.negf %544 : vector<2x32xf32>
    %546 = math.exp %545 : vector<2x32xf32>
    %cst_179 = arith.constant 1.000000e+00 : f32
    %547 = vector.broadcast %cst_179 : f32 to vector<2x32xf32>
    %548 = arith.addf %547, %546 : vector<2x32xf32>
    %549 = arith.divf %547, %548 : vector<2x32xf32>
    %550 = vector.extract_strided_slice %537 {offsets = [0, 32], sizes = [2, 32], strides = [1, 1]} : vector<2x96xf32> to vector<2x32xf32>
    %551 = vector.extract_strided_slice %541 {offsets = [0, 32], sizes = [2, 32], strides = [1, 1]} : vector<2x96xf32> to vector<2x32xf32>
    %552 = arith.addf %550, %551 : vector<2x32xf32>
    %553 = arith.negf %552 : vector<2x32xf32>
    %554 = math.exp %553 : vector<2x32xf32>
    %cst_180 = arith.constant 1.000000e+00 : f32
    %555 = vector.broadcast %cst_180 : f32 to vector<2x32xf32>
    %556 = arith.addf %555, %554 : vector<2x32xf32>
    %557 = arith.divf %555, %556 : vector<2x32xf32>
    %558 = vector.extract_strided_slice %537 {offsets = [0, 64], sizes = [2, 32], strides = [1, 1]} : vector<2x96xf32> to vector<2x32xf32>
    %559 = vector.extract_strided_slice %541 {offsets = [0, 64], sizes = [2, 32], strides = [1, 1]} : vector<2x96xf32> to vector<2x32xf32>
    %560 = arith.mulf %549, %559 : vector<2x32xf32>
    %561 = arith.addf %558, %560 : vector<2x32xf32>
    %562 = math.tanh %561 : vector<2x32xf32>
    %cst_181 = arith.constant 1.000000e+00 : f32
    %563 = vector.broadcast %cst_181 : f32 to vector<2x32xf32>
    %564 = arith.subf %563, %557 : vector<2x32xf32>
    %565 = arith.mulf %564, %562 : vector<2x32xf32>
    %566 = arith.mulf %557, %532 : vector<2x32xf32>
    %567 = arith.addf %565, %566 : vector<2x32xf32>
    %568 = vector.extract_strided_slice %461 {offsets = [6, 0], sizes = [2, 96], strides = [1, 1]} : vector<16x96xf32> to vector<2x96xf32>
    %569 = vector.extract_strided_slice %461 {offsets = [8, 0], sizes = [2, 96], strides = [1, 1]} : vector<16x96xf32> to vector<2x96xf32>
    %570 = vector.shape_cast %433 : vector<1x96xi1> to vector<1x96xi1>
    %571 = vector.broadcast %570 : vector<1x96xi1> to vector<2x96xi1>
    %572 = arith.select %571, %568, %569 : vector<2x96xi1>, vector<2x96xf32>
    %573 = arith.truncf %567 : vector<2x32xf32> to vector<2x32xbf16>
    %cst_182 = arith.constant dense<0.000000e+00> : vector<2x96xf32>
    %574 = tpu.matmul %573, %456, %cst_182 {dimension_numbers = #tpu.dot_dimension_numbers<[1], [0], [0], [1], [0, 0, 1, 1], [], []>} : vector<2x32xbf16>, vector<32x96xbf16>, vector<2x96xf32> -> vector<2x96xf32>
    %575 = vector.broadcast %457 : vector<1x96xf32> to vector<2x96xf32>
    %576 = arith.addf %574, %575 : vector<2x96xf32>
    %577 = vector.extract_strided_slice %572 {offsets = [0, 0], sizes = [2, 32], strides = [1, 1]} : vector<2x96xf32> to vector<2x32xf32>
    %578 = vector.extract_strided_slice %576 {offsets = [0, 0], sizes = [2, 32], strides = [1, 1]} : vector<2x96xf32> to vector<2x32xf32>
    %579 = arith.addf %577, %578 : vector<2x32xf32>
    %580 = arith.negf %579 : vector<2x32xf32>
    %581 = math.exp %580 : vector<2x32xf32>
    %cst_183 = arith.constant 1.000000e+00 : f32
    %582 = vector.broadcast %cst_183 : f32 to vector<2x32xf32>
    %583 = arith.addf %582, %581 : vector<2x32xf32>
    %584 = arith.divf %582, %583 : vector<2x32xf32>
    %585 = vector.extract_strided_slice %572 {offsets = [0, 32], sizes = [2, 32], strides = [1, 1]} : vector<2x96xf32> to vector<2x32xf32>
    %586 = vector.extract_strided_slice %576 {offsets = [0, 32], sizes = [2, 32], strides = [1, 1]} : vector<2x96xf32> to vector<2x32xf32>
    %587 = arith.addf %585, %586 : vector<2x32xf32>
    %588 = arith.negf %587 : vector<2x32xf32>
    %589 = math.exp %588 : vector<2x32xf32>
    %cst_184 = arith.constant 1.000000e+00 : f32
    %590 = vector.broadcast %cst_184 : f32 to vector<2x32xf32>
    %591 = arith.addf %590, %589 : vector<2x32xf32>
    %592 = arith.divf %590, %591 : vector<2x32xf32>
    %593 = vector.extract_strided_slice %572 {offsets = [0, 64], sizes = [2, 32], strides = [1, 1]} : vector<2x96xf32> to vector<2x32xf32>
    %594 = vector.extract_strided_slice %576 {offsets = [0, 64], sizes = [2, 32], strides = [1, 1]} : vector<2x96xf32> to vector<2x32xf32>
    %595 = arith.mulf %584, %594 : vector<2x32xf32>
    %596 = arith.addf %593, %595 : vector<2x32xf32>
    %597 = math.tanh %596 : vector<2x32xf32>
    %cst_185 = arith.constant 1.000000e+00 : f32
    %598 = vector.broadcast %cst_185 : f32 to vector<2x32xf32>
    %599 = arith.subf %598, %592 : vector<2x32xf32>
    %600 = arith.mulf %599, %597 : vector<2x32xf32>
    %601 = arith.mulf %592, %567 : vector<2x32xf32>
    %602 = arith.addf %600, %601 : vector<2x32xf32>
    %603 = vector.extract_strided_slice %461 {offsets = [8, 0], sizes = [2, 96], strides = [1, 1]} : vector<16x96xf32> to vector<2x96xf32>
    %604 = vector.extract_strided_slice %461 {offsets = [6, 0], sizes = [2, 96], strides = [1, 1]} : vector<16x96xf32> to vector<2x96xf32>
    %605 = vector.shape_cast %433 : vector<1x96xi1> to vector<1x96xi1>
    %606 = vector.broadcast %605 : vector<1x96xi1> to vector<2x96xi1>
    %607 = arith.select %606, %603, %604 : vector<2x96xi1>, vector<2x96xf32>
    %608 = arith.truncf %602 : vector<2x32xf32> to vector<2x32xbf16>
    %cst_186 = arith.constant dense<0.000000e+00> : vector<2x96xf32>
    %609 = tpu.matmul %608, %456, %cst_186 {dimension_numbers = #tpu.dot_dimension_numbers<[1], [0], [0], [1], [0, 0, 1, 1], [], []>} : vector<2x32xbf16>, vector<32x96xbf16>, vector<2x96xf32> -> vector<2x96xf32>
    %610 = vector.broadcast %457 : vector<1x96xf32> to vector<2x96xf32>
    %611 = arith.addf %609, %610 : vector<2x96xf32>
    %612 = vector.extract_strided_slice %607 {offsets = [0, 0], sizes = [2, 32], strides = [1, 1]} : vector<2x96xf32> to vector<2x32xf32>
    %613 = vector.extract_strided_slice %611 {offsets = [0, 0], sizes = [2, 32], strides = [1, 1]} : vector<2x96xf32> to vector<2x32xf32>
    %614 = arith.addf %612, %613 : vector<2x32xf32>
    %615 = arith.negf %614 : vector<2x32xf32>
    %616 = math.exp %615 : vector<2x32xf32>
    %cst_187 = arith.constant 1.000000e+00 : f32
    %617 = vector.broadcast %cst_187 : f32 to vector<2x32xf32>
    %618 = arith.addf %617, %616 : vector<2x32xf32>
    %619 = arith.divf %617, %618 : vector<2x32xf32>
    %620 = vector.extract_strided_slice %607 {offsets = [0, 32], sizes = [2, 32], strides = [1, 1]} : vector<2x96xf32> to vector<2x32xf32>
    %621 = vector.extract_strided_slice %611 {offsets = [0, 32], sizes = [2, 32], strides = [1, 1]} : vector<2x96xf32> to vector<2x32xf32>
    %622 = arith.addf %620, %621 : vector<2x32xf32>
    %623 = arith.negf %622 : vector<2x32xf32>
    %624 = math.exp %623 : vector<2x32xf32>
    %cst_188 = arith.constant 1.000000e+00 : f32
    %625 = vector.broadcast %cst_188 : f32 to vector<2x32xf32>
    %626 = arith.addf %625, %624 : vector<2x32xf32>
    %627 = arith.divf %625, %626 : vector<2x32xf32>
    %628 = vector.extract_strided_slice %607 {offsets = [0, 64], sizes = [2, 32], strides = [1, 1]} : vector<2x96xf32> to vector<2x32xf32>
    %629 = vector.extract_strided_slice %611 {offsets = [0, 64], sizes = [2, 32], strides = [1, 1]} : vector<2x96xf32> to vector<2x32xf32>
    %630 = arith.mulf %619, %629 : vector<2x32xf32>
    %631 = arith.addf %628, %630 : vector<2x32xf32>
    %632 = math.tanh %631 : vector<2x32xf32>
    %cst_189 = arith.constant 1.000000e+00 : f32
    %633 = vector.broadcast %cst_189 : f32 to vector<2x32xf32>
    %634 = arith.subf %633, %627 : vector<2x32xf32>
    %635 = arith.mulf %634, %632 : vector<2x32xf32>
    %636 = arith.mulf %627, %602 : vector<2x32xf32>
    %637 = arith.addf %635, %636 : vector<2x32xf32>
    %638 = vector.extract_strided_slice %461 {offsets = [10, 0], sizes = [2, 96], strides = [1, 1]} : vector<16x96xf32> to vector<2x96xf32>
    %639 = vector.extract_strided_slice %461 {offsets = [4, 0], sizes = [2, 96], strides = [1, 1]} : vector<16x96xf32> to vector<2x96xf32>
    %640 = vector.shape_cast %433 : vector<1x96xi1> to vector<1x96xi1>
    %641 = vector.broadcast %640 : vector<1x96xi1> to vector<2x96xi1>
    %642 = arith.select %641, %638, %639 : vector<2x96xi1>, vector<2x96xf32>
    %643 = arith.truncf %637 : vector<2x32xf32> to vector<2x32xbf16>
    %cst_190 = arith.constant dense<0.000000e+00> : vector<2x96xf32>
    %644 = tpu.matmul %643, %456, %cst_190 {dimension_numbers = #tpu.dot_dimension_numbers<[1], [0], [0], [1], [0, 0, 1, 1], [], []>} : vector<2x32xbf16>, vector<32x96xbf16>, vector<2x96xf32> -> vector<2x96xf32>
    %645 = vector.broadcast %457 : vector<1x96xf32> to vector<2x96xf32>
    %646 = arith.addf %644, %645 : vector<2x96xf32>
    %647 = vector.extract_strided_slice %642 {offsets = [0, 0], sizes = [2, 32], strides = [1, 1]} : vector<2x96xf32> to vector<2x32xf32>
    %648 = vector.extract_strided_slice %646 {offsets = [0, 0], sizes = [2, 32], strides = [1, 1]} : vector<2x96xf32> to vector<2x32xf32>
    %649 = arith.addf %647, %648 : vector<2x32xf32>
    %650 = arith.negf %649 : vector<2x32xf32>
    %651 = math.exp %650 : vector<2x32xf32>
    %cst_191 = arith.constant 1.000000e+00 : f32
    %652 = vector.broadcast %cst_191 : f32 to vector<2x32xf32>
    %653 = arith.addf %652, %651 : vector<2x32xf32>
    %654 = arith.divf %652, %653 : vector<2x32xf32>
    %655 = vector.extract_strided_slice %642 {offsets = [0, 32], sizes = [2, 32], strides = [1, 1]} : vector<2x96xf32> to vector<2x32xf32>
    %656 = vector.extract_strided_slice %646 {offsets = [0, 32], sizes = [2, 32], strides = [1, 1]} : vector<2x96xf32> to vector<2x32xf32>
    %657 = arith.addf %655, %656 : vector<2x32xf32>
    %658 = arith.negf %657 : vector<2x32xf32>
    %659 = math.exp %658 : vector<2x32xf32>
    %cst_192 = arith.constant 1.000000e+00 : f32
    %660 = vector.broadcast %cst_192 : f32 to vector<2x32xf32>
    %661 = arith.addf %660, %659 : vector<2x32xf32>
    %662 = arith.divf %660, %661 : vector<2x32xf32>
    %663 = vector.extract_strided_slice %642 {offsets = [0, 64], sizes = [2, 32], strides = [1, 1]} : vector<2x96xf32> to vector<2x32xf32>
    %664 = vector.extract_strided_slice %646 {offsets = [0, 64], sizes = [2, 32], strides = [1, 1]} : vector<2x96xf32> to vector<2x32xf32>
    %665 = arith.mulf %654, %664 : vector<2x32xf32>
    %666 = arith.addf %663, %665 : vector<2x32xf32>
    %667 = math.tanh %666 : vector<2x32xf32>
    %cst_193 = arith.constant 1.000000e+00 : f32
    %668 = vector.broadcast %cst_193 : f32 to vector<2x32xf32>
    %669 = arith.subf %668, %662 : vector<2x32xf32>
    %670 = arith.mulf %669, %667 : vector<2x32xf32>
    %671 = arith.mulf %662, %637 : vector<2x32xf32>
    %672 = arith.addf %670, %671 : vector<2x32xf32>
    %673 = vector.extract_strided_slice %461 {offsets = [12, 0], sizes = [2, 96], strides = [1, 1]} : vector<16x96xf32> to vector<2x96xf32>
    %674 = vector.extract_strided_slice %461 {offsets = [2, 0], sizes = [2, 96], strides = [1, 1]} : vector<16x96xf32> to vector<2x96xf32>
    %675 = vector.shape_cast %433 : vector<1x96xi1> to vector<1x96xi1>
    %676 = vector.broadcast %675 : vector<1x96xi1> to vector<2x96xi1>
    %677 = arith.select %676, %673, %674 : vector<2x96xi1>, vector<2x96xf32>
    %678 = arith.truncf %672 : vector<2x32xf32> to vector<2x32xbf16>
    %cst_194 = arith.constant dense<0.000000e+00> : vector<2x96xf32>
    %679 = tpu.matmul %678, %456, %cst_194 {dimension_numbers = #tpu.dot_dimension_numbers<[1], [0], [0], [1], [0, 0, 1, 1], [], []>} : vector<2x32xbf16>, vector<32x96xbf16>, vector<2x96xf32> -> vector<2x96xf32>
    %680 = vector.broadcast %457 : vector<1x96xf32> to vector<2x96xf32>
    %681 = arith.addf %679, %680 : vector<2x96xf32>
    %682 = vector.extract_strided_slice %677 {offsets = [0, 0], sizes = [2, 32], strides = [1, 1]} : vector<2x96xf32> to vector<2x32xf32>
    %683 = vector.extract_strided_slice %681 {offsets = [0, 0], sizes = [2, 32], strides = [1, 1]} : vector<2x96xf32> to vector<2x32xf32>
    %684 = arith.addf %682, %683 : vector<2x32xf32>
    %685 = arith.negf %684 : vector<2x32xf32>
    %686 = math.exp %685 : vector<2x32xf32>
    %cst_195 = arith.constant 1.000000e+00 : f32
    %687 = vector.broadcast %cst_195 : f32 to vector<2x32xf32>
    %688 = arith.addf %687, %686 : vector<2x32xf32>
    %689 = arith.divf %687, %688 : vector<2x32xf32>
    %690 = vector.extract_strided_slice %677 {offsets = [0, 32], sizes = [2, 32], strides = [1, 1]} : vector<2x96xf32> to vector<2x32xf32>
    %691 = vector.extract_strided_slice %681 {offsets = [0, 32], sizes = [2, 32], strides = [1, 1]} : vector<2x96xf32> to vector<2x32xf32>
    %692 = arith.addf %690, %691 : vector<2x32xf32>
    %693 = arith.negf %692 : vector<2x32xf32>
    %694 = math.exp %693 : vector<2x32xf32>
    %cst_196 = arith.constant 1.000000e+00 : f32
    %695 = vector.broadcast %cst_196 : f32 to vector<2x32xf32>
    %696 = arith.addf %695, %694 : vector<2x32xf32>
    %697 = arith.divf %695, %696 : vector<2x32xf32>
    %698 = vector.extract_strided_slice %677 {offsets = [0, 64], sizes = [2, 32], strides = [1, 1]} : vector<2x96xf32> to vector<2x32xf32>
    %699 = vector.extract_strided_slice %681 {offsets = [0, 64], sizes = [2, 32], strides = [1, 1]} : vector<2x96xf32> to vector<2x32xf32>
    %700 = arith.mulf %689, %699 : vector<2x32xf32>
    %701 = arith.addf %698, %700 : vector<2x32xf32>
    %702 = math.tanh %701 : vector<2x32xf32>
    %cst_197 = arith.constant 1.000000e+00 : f32
    %703 = vector.broadcast %cst_197 : f32 to vector<2x32xf32>
    %704 = arith.subf %703, %697 : vector<2x32xf32>
    %705 = arith.mulf %704, %702 : vector<2x32xf32>
    %706 = arith.mulf %697, %672 : vector<2x32xf32>
    %707 = arith.addf %705, %706 : vector<2x32xf32>
    %708 = vector.extract_strided_slice %461 {offsets = [14, 0], sizes = [2, 96], strides = [1, 1]} : vector<16x96xf32> to vector<2x96xf32>
    %709 = vector.extract_strided_slice %461 {offsets = [0, 0], sizes = [2, 96], strides = [1, 1]} : vector<16x96xf32> to vector<2x96xf32>
    %710 = vector.shape_cast %433 : vector<1x96xi1> to vector<1x96xi1>
    %711 = vector.broadcast %710 : vector<1x96xi1> to vector<2x96xi1>
    %712 = arith.select %711, %708, %709 : vector<2x96xi1>, vector<2x96xf32>
    %713 = arith.truncf %707 : vector<2x32xf32> to vector<2x32xbf16>
    %cst_198 = arith.constant dense<0.000000e+00> : vector<2x96xf32>
    %714 = tpu.matmul %713, %456, %cst_198 {dimension_numbers = #tpu.dot_dimension_numbers<[1], [0], [0], [1], [0, 0, 1, 1], [], []>} : vector<2x32xbf16>, vector<32x96xbf16>, vector<2x96xf32> -> vector<2x96xf32>
    %715 = vector.broadcast %457 : vector<1x96xf32> to vector<2x96xf32>
    %716 = arith.addf %714, %715 : vector<2x96xf32>
    %717 = vector.extract_strided_slice %712 {offsets = [0, 0], sizes = [2, 32], strides = [1, 1]} : vector<2x96xf32> to vector<2x32xf32>
    %718 = vector.extract_strided_slice %716 {offsets = [0, 0], sizes = [2, 32], strides = [1, 1]} : vector<2x96xf32> to vector<2x32xf32>
    %719 = arith.addf %717, %718 : vector<2x32xf32>
    %720 = arith.negf %719 : vector<2x32xf32>
    %721 = math.exp %720 : vector<2x32xf32>
    %cst_199 = arith.constant 1.000000e+00 : f32
    %722 = vector.broadcast %cst_199 : f32 to vector<2x32xf32>
    %723 = arith.addf %722, %721 : vector<2x32xf32>
    %724 = arith.divf %722, %723 : vector<2x32xf32>
    %725 = vector.extract_strided_slice %712 {offsets = [0, 32], sizes = [2, 32], strides = [1, 1]} : vector<2x96xf32> to vector<2x32xf32>
    %726 = vector.extract_strided_slice %716 {offsets = [0, 32], sizes = [2, 32], strides = [1, 1]} : vector<2x96xf32> to vector<2x32xf32>
    %727 = arith.addf %725, %726 : vector<2x32xf32>
    %728 = arith.negf %727 : vector<2x32xf32>
    %729 = math.exp %728 : vector<2x32xf32>
    %cst_200 = arith.constant 1.000000e+00 : f32
    %730 = vector.broadcast %cst_200 : f32 to vector<2x32xf32>
    %731 = arith.addf %730, %729 : vector<2x32xf32>
    %732 = arith.divf %730, %731 : vector<2x32xf32>
    %733 = vector.extract_strided_slice %712 {offsets = [0, 64], sizes = [2, 32], strides = [1, 1]} : vector<2x96xf32> to vector<2x32xf32>
    %734 = vector.extract_strided_slice %716 {offsets = [0, 64], sizes = [2, 32], strides = [1, 1]} : vector<2x96xf32> to vector<2x32xf32>
    %735 = arith.mulf %724, %734 : vector<2x32xf32>
    %736 = arith.addf %733, %735 : vector<2x32xf32>
    %737 = math.tanh %736 : vector<2x32xf32>
    %cst_201 = arith.constant 1.000000e+00 : f32
    %738 = vector.broadcast %cst_201 : f32 to vector<2x32xf32>
    %739 = arith.subf %738, %732 : vector<2x32xf32>
    %740 = arith.mulf %739, %737 : vector<2x32xf32>
    %741 = arith.mulf %732, %707 : vector<2x32xf32>
    %742 = arith.addf %740, %741 : vector<2x32xf32>
    %743 = vector.shape_cast %436 : vector<1x32xi1> to vector<1x32xi1>
    %744 = vector.broadcast %743 : vector<1x32xi1> to vector<2x32xi1>
    %745 = arith.select %744, %497, %742 : vector<2x32xi1>, vector<2x32xf32>
    %746 = vector.shape_cast %436 : vector<1x32xi1> to vector<1x32xi1>
    %747 = vector.broadcast %746 : vector<1x32xi1> to vector<2x32xi1>
    %748 = arith.select %747, %532, %707 : vector<2x32xi1>, vector<2x32xf32>
    %749 = vector.shape_cast %436 : vector<1x32xi1> to vector<1x32xi1>
    %750 = vector.broadcast %749 : vector<1x32xi1> to vector<2x32xi1>
    %751 = arith.select %750, %567, %672 : vector<2x32xi1>, vector<2x32xf32>
    %752 = vector.shape_cast %436 : vector<1x32xi1> to vector<1x32xi1>
    %753 = vector.broadcast %752 : vector<1x32xi1> to vector<2x32xi1>
    %754 = arith.select %753, %602, %637 : vector<2x32xi1>, vector<2x32xf32>
    %755 = vector.shape_cast %436 : vector<1x32xi1> to vector<1x32xi1>
    %756 = vector.broadcast %755 : vector<1x32xi1> to vector<2x32xi1>
    %757 = arith.select %756, %637, %602 : vector<2x32xi1>, vector<2x32xf32>
    %758 = vector.shape_cast %436 : vector<1x32xi1> to vector<1x32xi1>
    %759 = vector.broadcast %758 : vector<1x32xi1> to vector<2x32xi1>
    %760 = arith.select %759, %672, %567 : vector<2x32xi1>, vector<2x32xf32>
    %761 = vector.shape_cast %436 : vector<1x32xi1> to vector<1x32xi1>
    %762 = vector.broadcast %761 : vector<1x32xi1> to vector<2x32xi1>
    %763 = arith.select %762, %707, %532 : vector<2x32xi1>, vector<2x32xf32>
    %764 = vector.shape_cast %436 : vector<1x32xi1> to vector<1x32xi1>
    %765 = vector.broadcast %764 : vector<1x32xi1> to vector<2x32xi1>
    %766 = arith.select %765, %742, %497 : vector<2x32xi1>, vector<2x32xf32>
    %767 = tpu.concatenate %745, %748, %751, %754, %757, %760, %763, %766 in 0 : vector<2x32xf32>, vector<2x32xf32>, vector<2x32xf32>, vector<2x32xf32>, vector<2x32xf32>, vector<2x32xf32>, vector<2x32xf32>, vector<2x32xf32> -> vector<16x32xf32>
    %c0_202 = arith.constant 0 : index
    %c0_203 = arith.constant 0 : index
    %768 = vector.load %arg32[%c0_202, %c0_203] : memref<32x96xbf16, #tpu.memory_space<vmem>>, vector<32x96xbf16>
    %c0_204 = arith.constant 0 : index
    %c0_205 = arith.constant 0 : index
    %769 = vector.load %arg33[%c0_204, %c0_205] : memref<1x96xf32, #tpu.memory_space<vmem>>, vector<1x96xf32>
    %c0_206 = arith.constant 0 : index
    %c0_207 = arith.constant 0 : index
    %770 = vector.load %arg34[%c0_206, %c0_207] : memref<32x96xbf16, #tpu.memory_space<vmem>>, vector<32x96xbf16>
    %c0_208 = arith.constant 0 : index
    %c0_209 = arith.constant 0 : index
    %771 = vector.load %arg35[%c0_208, %c0_209] : memref<1x96xf32, #tpu.memory_space<vmem>>, vector<1x96xf32>
    %772 = arith.truncf %767 : vector<16x32xf32> to vector<16x32xbf16>
    %cst_210 = arith.constant dense<0.000000e+00> : vector<16x96xf32>
    %773 = tpu.matmul %772, %768, %cst_210 {dimension_numbers = #tpu.dot_dimension_numbers<[1], [0], [0], [1], [0, 0, 1, 1], [], []>} : vector<16x32xbf16>, vector<32x96xbf16>, vector<16x96xf32> -> vector<16x96xf32>
    %774 = vector.broadcast %769 : vector<1x96xf32> to vector<16x96xf32>
    %775 = arith.addf %773, %774 : vector<16x96xf32>
    %cst_211 = arith.constant 0.000000e+00 : f32
    %776 = vector.broadcast %cst_211 : f32 to vector<2x32xf32>
    %777 = vector.extract_strided_slice %775 {offsets = [0, 0], sizes = [2, 96], strides = [1, 1]} : vector<16x96xf32> to vector<2x96xf32>
    %778 = vector.extract_strided_slice %775 {offsets = [14, 0], sizes = [2, 96], strides = [1, 1]} : vector<16x96xf32> to vector<2x96xf32>
    %779 = vector.shape_cast %433 : vector<1x96xi1> to vector<1x96xi1>
    %780 = vector.broadcast %779 : vector<1x96xi1> to vector<2x96xi1>
    %781 = arith.select %780, %777, %778 : vector<2x96xi1>, vector<2x96xf32>
    %782 = arith.truncf %776 : vector<2x32xf32> to vector<2x32xbf16>
    %cst_212 = arith.constant dense<0.000000e+00> : vector<2x96xf32>
    %783 = tpu.matmul %782, %770, %cst_212 {dimension_numbers = #tpu.dot_dimension_numbers<[1], [0], [0], [1], [0, 0, 1, 1], [], []>} : vector<2x32xbf16>, vector<32x96xbf16>, vector<2x96xf32> -> vector<2x96xf32>
    %784 = vector.broadcast %771 : vector<1x96xf32> to vector<2x96xf32>
    %785 = arith.addf %783, %784 : vector<2x96xf32>
    %786 = vector.extract_strided_slice %781 {offsets = [0, 0], sizes = [2, 32], strides = [1, 1]} : vector<2x96xf32> to vector<2x32xf32>
    %787 = vector.extract_strided_slice %785 {offsets = [0, 0], sizes = [2, 32], strides = [1, 1]} : vector<2x96xf32> to vector<2x32xf32>
    %788 = arith.addf %786, %787 : vector<2x32xf32>
    %789 = arith.negf %788 : vector<2x32xf32>
    %790 = math.exp %789 : vector<2x32xf32>
    %cst_213 = arith.constant 1.000000e+00 : f32
    %791 = vector.broadcast %cst_213 : f32 to vector<2x32xf32>
    %792 = arith.addf %791, %790 : vector<2x32xf32>
    %793 = arith.divf %791, %792 : vector<2x32xf32>
    %794 = vector.extract_strided_slice %781 {offsets = [0, 32], sizes = [2, 32], strides = [1, 1]} : vector<2x96xf32> to vector<2x32xf32>
    %795 = vector.extract_strided_slice %785 {offsets = [0, 32], sizes = [2, 32], strides = [1, 1]} : vector<2x96xf32> to vector<2x32xf32>
    %796 = arith.addf %794, %795 : vector<2x32xf32>
    %797 = arith.negf %796 : vector<2x32xf32>
    %798 = math.exp %797 : vector<2x32xf32>
    %cst_214 = arith.constant 1.000000e+00 : f32
    %799 = vector.broadcast %cst_214 : f32 to vector<2x32xf32>
    %800 = arith.addf %799, %798 : vector<2x32xf32>
    %801 = arith.divf %799, %800 : vector<2x32xf32>
    %802 = vector.extract_strided_slice %781 {offsets = [0, 64], sizes = [2, 32], strides = [1, 1]} : vector<2x96xf32> to vector<2x32xf32>
    %803 = vector.extract_strided_slice %785 {offsets = [0, 64], sizes = [2, 32], strides = [1, 1]} : vector<2x96xf32> to vector<2x32xf32>
    %804 = arith.mulf %793, %803 : vector<2x32xf32>
    %805 = arith.addf %802, %804 : vector<2x32xf32>
    %806 = math.tanh %805 : vector<2x32xf32>
    %cst_215 = arith.constant 1.000000e+00 : f32
    %807 = vector.broadcast %cst_215 : f32 to vector<2x32xf32>
    %808 = arith.subf %807, %801 : vector<2x32xf32>
    %809 = arith.mulf %808, %806 : vector<2x32xf32>
    %810 = arith.mulf %801, %776 : vector<2x32xf32>
    %811 = arith.addf %809, %810 : vector<2x32xf32>
    %812 = vector.extract_strided_slice %775 {offsets = [2, 0], sizes = [2, 96], strides = [1, 1]} : vector<16x96xf32> to vector<2x96xf32>
    %813 = vector.extract_strided_slice %775 {offsets = [12, 0], sizes = [2, 96], strides = [1, 1]} : vector<16x96xf32> to vector<2x96xf32>
    %814 = vector.shape_cast %433 : vector<1x96xi1> to vector<1x96xi1>
    %815 = vector.broadcast %814 : vector<1x96xi1> to vector<2x96xi1>
    %816 = arith.select %815, %812, %813 : vector<2x96xi1>, vector<2x96xf32>
    %817 = arith.truncf %811 : vector<2x32xf32> to vector<2x32xbf16>
    %cst_216 = arith.constant dense<0.000000e+00> : vector<2x96xf32>
    %818 = tpu.matmul %817, %770, %cst_216 {dimension_numbers = #tpu.dot_dimension_numbers<[1], [0], [0], [1], [0, 0, 1, 1], [], []>} : vector<2x32xbf16>, vector<32x96xbf16>, vector<2x96xf32> -> vector<2x96xf32>
    %819 = vector.broadcast %771 : vector<1x96xf32> to vector<2x96xf32>
    %820 = arith.addf %818, %819 : vector<2x96xf32>
    %821 = vector.extract_strided_slice %816 {offsets = [0, 0], sizes = [2, 32], strides = [1, 1]} : vector<2x96xf32> to vector<2x32xf32>
    %822 = vector.extract_strided_slice %820 {offsets = [0, 0], sizes = [2, 32], strides = [1, 1]} : vector<2x96xf32> to vector<2x32xf32>
    %823 = arith.addf %821, %822 : vector<2x32xf32>
    %824 = arith.negf %823 : vector<2x32xf32>
    %825 = math.exp %824 : vector<2x32xf32>
    %cst_217 = arith.constant 1.000000e+00 : f32
    %826 = vector.broadcast %cst_217 : f32 to vector<2x32xf32>
    %827 = arith.addf %826, %825 : vector<2x32xf32>
    %828 = arith.divf %826, %827 : vector<2x32xf32>
    %829 = vector.extract_strided_slice %816 {offsets = [0, 32], sizes = [2, 32], strides = [1, 1]} : vector<2x96xf32> to vector<2x32xf32>
    %830 = vector.extract_strided_slice %820 {offsets = [0, 32], sizes = [2, 32], strides = [1, 1]} : vector<2x96xf32> to vector<2x32xf32>
    %831 = arith.addf %829, %830 : vector<2x32xf32>
    %832 = arith.negf %831 : vector<2x32xf32>
    %833 = math.exp %832 : vector<2x32xf32>
    %cst_218 = arith.constant 1.000000e+00 : f32
    %834 = vector.broadcast %cst_218 : f32 to vector<2x32xf32>
    %835 = arith.addf %834, %833 : vector<2x32xf32>
    %836 = arith.divf %834, %835 : vector<2x32xf32>
    %837 = vector.extract_strided_slice %816 {offsets = [0, 64], sizes = [2, 32], strides = [1, 1]} : vector<2x96xf32> to vector<2x32xf32>
    %838 = vector.extract_strided_slice %820 {offsets = [0, 64], sizes = [2, 32], strides = [1, 1]} : vector<2x96xf32> to vector<2x32xf32>
    %839 = arith.mulf %828, %838 : vector<2x32xf32>
    %840 = arith.addf %837, %839 : vector<2x32xf32>
    %841 = math.tanh %840 : vector<2x32xf32>
    %cst_219 = arith.constant 1.000000e+00 : f32
    %842 = vector.broadcast %cst_219 : f32 to vector<2x32xf32>
    %843 = arith.subf %842, %836 : vector<2x32xf32>
    %844 = arith.mulf %843, %841 : vector<2x32xf32>
    %845 = arith.mulf %836, %811 : vector<2x32xf32>
    %846 = arith.addf %844, %845 : vector<2x32xf32>
    %847 = vector.extract_strided_slice %775 {offsets = [4, 0], sizes = [2, 96], strides = [1, 1]} : vector<16x96xf32> to vector<2x96xf32>
    %848 = vector.extract_strided_slice %775 {offsets = [10, 0], sizes = [2, 96], strides = [1, 1]} : vector<16x96xf32> to vector<2x96xf32>
    %849 = vector.shape_cast %433 : vector<1x96xi1> to vector<1x96xi1>
    %850 = vector.broadcast %849 : vector<1x96xi1> to vector<2x96xi1>
    %851 = arith.select %850, %847, %848 : vector<2x96xi1>, vector<2x96xf32>
    %852 = arith.truncf %846 : vector<2x32xf32> to vector<2x32xbf16>
    %cst_220 = arith.constant dense<0.000000e+00> : vector<2x96xf32>
    %853 = tpu.matmul %852, %770, %cst_220 {dimension_numbers = #tpu.dot_dimension_numbers<[1], [0], [0], [1], [0, 0, 1, 1], [], []>} : vector<2x32xbf16>, vector<32x96xbf16>, vector<2x96xf32> -> vector<2x96xf32>
    %854 = vector.broadcast %771 : vector<1x96xf32> to vector<2x96xf32>
    %855 = arith.addf %853, %854 : vector<2x96xf32>
    %856 = vector.extract_strided_slice %851 {offsets = [0, 0], sizes = [2, 32], strides = [1, 1]} : vector<2x96xf32> to vector<2x32xf32>
    %857 = vector.extract_strided_slice %855 {offsets = [0, 0], sizes = [2, 32], strides = [1, 1]} : vector<2x96xf32> to vector<2x32xf32>
    %858 = arith.addf %856, %857 : vector<2x32xf32>
    %859 = arith.negf %858 : vector<2x32xf32>
    %860 = math.exp %859 : vector<2x32xf32>
    %cst_221 = arith.constant 1.000000e+00 : f32
    %861 = vector.broadcast %cst_221 : f32 to vector<2x32xf32>
    %862 = arith.addf %861, %860 : vector<2x32xf32>
    %863 = arith.divf %861, %862 : vector<2x32xf32>
    %864 = vector.extract_strided_slice %851 {offsets = [0, 32], sizes = [2, 32], strides = [1, 1]} : vector<2x96xf32> to vector<2x32xf32>
    %865 = vector.extract_strided_slice %855 {offsets = [0, 32], sizes = [2, 32], strides = [1, 1]} : vector<2x96xf32> to vector<2x32xf32>
    %866 = arith.addf %864, %865 : vector<2x32xf32>
    %867 = arith.negf %866 : vector<2x32xf32>
    %868 = math.exp %867 : vector<2x32xf32>
    %cst_222 = arith.constant 1.000000e+00 : f32
    %869 = vector.broadcast %cst_222 : f32 to vector<2x32xf32>
    %870 = arith.addf %869, %868 : vector<2x32xf32>
    %871 = arith.divf %869, %870 : vector<2x32xf32>
    %872 = vector.extract_strided_slice %851 {offsets = [0, 64], sizes = [2, 32], strides = [1, 1]} : vector<2x96xf32> to vector<2x32xf32>
    %873 = vector.extract_strided_slice %855 {offsets = [0, 64], sizes = [2, 32], strides = [1, 1]} : vector<2x96xf32> to vector<2x32xf32>
    %874 = arith.mulf %863, %873 : vector<2x32xf32>
    %875 = arith.addf %872, %874 : vector<2x32xf32>
    %876 = math.tanh %875 : vector<2x32xf32>
    %cst_223 = arith.constant 1.000000e+00 : f32
    %877 = vector.broadcast %cst_223 : f32 to vector<2x32xf32>
    %878 = arith.subf %877, %871 : vector<2x32xf32>
    %879 = arith.mulf %878, %876 : vector<2x32xf32>
    %880 = arith.mulf %871, %846 : vector<2x32xf32>
    %881 = arith.addf %879, %880 : vector<2x32xf32>
    %882 = vector.extract_strided_slice %775 {offsets = [6, 0], sizes = [2, 96], strides = [1, 1]} : vector<16x96xf32> to vector<2x96xf32>
    %883 = vector.extract_strided_slice %775 {offsets = [8, 0], sizes = [2, 96], strides = [1, 1]} : vector<16x96xf32> to vector<2x96xf32>
    %884 = vector.shape_cast %433 : vector<1x96xi1> to vector<1x96xi1>
    %885 = vector.broadcast %884 : vector<1x96xi1> to vector<2x96xi1>
    %886 = arith.select %885, %882, %883 : vector<2x96xi1>, vector<2x96xf32>
    %887 = arith.truncf %881 : vector<2x32xf32> to vector<2x32xbf16>
    %cst_224 = arith.constant dense<0.000000e+00> : vector<2x96xf32>
    %888 = tpu.matmul %887, %770, %cst_224 {dimension_numbers = #tpu.dot_dimension_numbers<[1], [0], [0], [1], [0, 0, 1, 1], [], []>} : vector<2x32xbf16>, vector<32x96xbf16>, vector<2x96xf32> -> vector<2x96xf32>
    %889 = vector.broadcast %771 : vector<1x96xf32> to vector<2x96xf32>
    %890 = arith.addf %888, %889 : vector<2x96xf32>
    %891 = vector.extract_strided_slice %886 {offsets = [0, 0], sizes = [2, 32], strides = [1, 1]} : vector<2x96xf32> to vector<2x32xf32>
    %892 = vector.extract_strided_slice %890 {offsets = [0, 0], sizes = [2, 32], strides = [1, 1]} : vector<2x96xf32> to vector<2x32xf32>
    %893 = arith.addf %891, %892 : vector<2x32xf32>
    %894 = arith.negf %893 : vector<2x32xf32>
    %895 = math.exp %894 : vector<2x32xf32>
    %cst_225 = arith.constant 1.000000e+00 : f32
    %896 = vector.broadcast %cst_225 : f32 to vector<2x32xf32>
    %897 = arith.addf %896, %895 : vector<2x32xf32>
    %898 = arith.divf %896, %897 : vector<2x32xf32>
    %899 = vector.extract_strided_slice %886 {offsets = [0, 32], sizes = [2, 32], strides = [1, 1]} : vector<2x96xf32> to vector<2x32xf32>
    %900 = vector.extract_strided_slice %890 {offsets = [0, 32], sizes = [2, 32], strides = [1, 1]} : vector<2x96xf32> to vector<2x32xf32>
    %901 = arith.addf %899, %900 : vector<2x32xf32>
    %902 = arith.negf %901 : vector<2x32xf32>
    %903 = math.exp %902 : vector<2x32xf32>
    %cst_226 = arith.constant 1.000000e+00 : f32
    %904 = vector.broadcast %cst_226 : f32 to vector<2x32xf32>
    %905 = arith.addf %904, %903 : vector<2x32xf32>
    %906 = arith.divf %904, %905 : vector<2x32xf32>
    %907 = vector.extract_strided_slice %886 {offsets = [0, 64], sizes = [2, 32], strides = [1, 1]} : vector<2x96xf32> to vector<2x32xf32>
    %908 = vector.extract_strided_slice %890 {offsets = [0, 64], sizes = [2, 32], strides = [1, 1]} : vector<2x96xf32> to vector<2x32xf32>
    %909 = arith.mulf %898, %908 : vector<2x32xf32>
    %910 = arith.addf %907, %909 : vector<2x32xf32>
    %911 = math.tanh %910 : vector<2x32xf32>
    %cst_227 = arith.constant 1.000000e+00 : f32
    %912 = vector.broadcast %cst_227 : f32 to vector<2x32xf32>
    %913 = arith.subf %912, %906 : vector<2x32xf32>
    %914 = arith.mulf %913, %911 : vector<2x32xf32>
    %915 = arith.mulf %906, %881 : vector<2x32xf32>
    %916 = arith.addf %914, %915 : vector<2x32xf32>
    %917 = vector.extract_strided_slice %775 {offsets = [8, 0], sizes = [2, 96], strides = [1, 1]} : vector<16x96xf32> to vector<2x96xf32>
    %918 = vector.extract_strided_slice %775 {offsets = [6, 0], sizes = [2, 96], strides = [1, 1]} : vector<16x96xf32> to vector<2x96xf32>
    %919 = vector.shape_cast %433 : vector<1x96xi1> to vector<1x96xi1>
    %920 = vector.broadcast %919 : vector<1x96xi1> to vector<2x96xi1>
    %921 = arith.select %920, %917, %918 : vector<2x96xi1>, vector<2x96xf32>
    %922 = arith.truncf %916 : vector<2x32xf32> to vector<2x32xbf16>
    %cst_228 = arith.constant dense<0.000000e+00> : vector<2x96xf32>
    %923 = tpu.matmul %922, %770, %cst_228 {dimension_numbers = #tpu.dot_dimension_numbers<[1], [0], [0], [1], [0, 0, 1, 1], [], []>} : vector<2x32xbf16>, vector<32x96xbf16>, vector<2x96xf32> -> vector<2x96xf32>
    %924 = vector.broadcast %771 : vector<1x96xf32> to vector<2x96xf32>
    %925 = arith.addf %923, %924 : vector<2x96xf32>
    %926 = vector.extract_strided_slice %921 {offsets = [0, 0], sizes = [2, 32], strides = [1, 1]} : vector<2x96xf32> to vector<2x32xf32>
    %927 = vector.extract_strided_slice %925 {offsets = [0, 0], sizes = [2, 32], strides = [1, 1]} : vector<2x96xf32> to vector<2x32xf32>
    %928 = arith.addf %926, %927 : vector<2x32xf32>
    %929 = arith.negf %928 : vector<2x32xf32>
    %930 = math.exp %929 : vector<2x32xf32>
    %cst_229 = arith.constant 1.000000e+00 : f32
    %931 = vector.broadcast %cst_229 : f32 to vector<2x32xf32>
    %932 = arith.addf %931, %930 : vector<2x32xf32>
    %933 = arith.divf %931, %932 : vector<2x32xf32>
    %934 = vector.extract_strided_slice %921 {offsets = [0, 32], sizes = [2, 32], strides = [1, 1]} : vector<2x96xf32> to vector<2x32xf32>
    %935 = vector.extract_strided_slice %925 {offsets = [0, 32], sizes = [2, 32], strides = [1, 1]} : vector<2x96xf32> to vector<2x32xf32>
    %936 = arith.addf %934, %935 : vector<2x32xf32>
    %937 = arith.negf %936 : vector<2x32xf32>
    %938 = math.exp %937 : vector<2x32xf32>
    %cst_230 = arith.constant 1.000000e+00 : f32
    %939 = vector.broadcast %cst_230 : f32 to vector<2x32xf32>
    %940 = arith.addf %939, %938 : vector<2x32xf32>
    %941 = arith.divf %939, %940 : vector<2x32xf32>
    %942 = vector.extract_strided_slice %921 {offsets = [0, 64], sizes = [2, 32], strides = [1, 1]} : vector<2x96xf32> to vector<2x32xf32>
    %943 = vector.extract_strided_slice %925 {offsets = [0, 64], sizes = [2, 32], strides = [1, 1]} : vector<2x96xf32> to vector<2x32xf32>
    %944 = arith.mulf %933, %943 : vector<2x32xf32>
    %945 = arith.addf %942, %944 : vector<2x32xf32>
    %946 = math.tanh %945 : vector<2x32xf32>
    %cst_231 = arith.constant 1.000000e+00 : f32
    %947 = vector.broadcast %cst_231 : f32 to vector<2x32xf32>
    %948 = arith.subf %947, %941 : vector<2x32xf32>
    %949 = arith.mulf %948, %946 : vector<2x32xf32>
    %950 = arith.mulf %941, %916 : vector<2x32xf32>
    %951 = arith.addf %949, %950 : vector<2x32xf32>
    %952 = vector.extract_strided_slice %775 {offsets = [10, 0], sizes = [2, 96], strides = [1, 1]} : vector<16x96xf32> to vector<2x96xf32>
    %953 = vector.extract_strided_slice %775 {offsets = [4, 0], sizes = [2, 96], strides = [1, 1]} : vector<16x96xf32> to vector<2x96xf32>
    %954 = vector.shape_cast %433 : vector<1x96xi1> to vector<1x96xi1>
    %955 = vector.broadcast %954 : vector<1x96xi1> to vector<2x96xi1>
    %956 = arith.select %955, %952, %953 : vector<2x96xi1>, vector<2x96xf32>
    %957 = arith.truncf %951 : vector<2x32xf32> to vector<2x32xbf16>
    %cst_232 = arith.constant dense<0.000000e+00> : vector<2x96xf32>
    %958 = tpu.matmul %957, %770, %cst_232 {dimension_numbers = #tpu.dot_dimension_numbers<[1], [0], [0], [1], [0, 0, 1, 1], [], []>} : vector<2x32xbf16>, vector<32x96xbf16>, vector<2x96xf32> -> vector<2x96xf32>
    %959 = vector.broadcast %771 : vector<1x96xf32> to vector<2x96xf32>
    %960 = arith.addf %958, %959 : vector<2x96xf32>
    %961 = vector.extract_strided_slice %956 {offsets = [0, 0], sizes = [2, 32], strides = [1, 1]} : vector<2x96xf32> to vector<2x32xf32>
    %962 = vector.extract_strided_slice %960 {offsets = [0, 0], sizes = [2, 32], strides = [1, 1]} : vector<2x96xf32> to vector<2x32xf32>
    %963 = arith.addf %961, %962 : vector<2x32xf32>
    %964 = arith.negf %963 : vector<2x32xf32>
    %965 = math.exp %964 : vector<2x32xf32>
    %cst_233 = arith.constant 1.000000e+00 : f32
    %966 = vector.broadcast %cst_233 : f32 to vector<2x32xf32>
    %967 = arith.addf %966, %965 : vector<2x32xf32>
    %968 = arith.divf %966, %967 : vector<2x32xf32>
    %969 = vector.extract_strided_slice %956 {offsets = [0, 32], sizes = [2, 32], strides = [1, 1]} : vector<2x96xf32> to vector<2x32xf32>
    %970 = vector.extract_strided_slice %960 {offsets = [0, 32], sizes = [2, 32], strides = [1, 1]} : vector<2x96xf32> to vector<2x32xf32>
    %971 = arith.addf %969, %970 : vector<2x32xf32>
    %972 = arith.negf %971 : vector<2x32xf32>
    %973 = math.exp %972 : vector<2x32xf32>
    %cst_234 = arith.constant 1.000000e+00 : f32
    %974 = vector.broadcast %cst_234 : f32 to vector<2x32xf32>
    %975 = arith.addf %974, %973 : vector<2x32xf32>
    %976 = arith.divf %974, %975 : vector<2x32xf32>
    %977 = vector.extract_strided_slice %956 {offsets = [0, 64], sizes = [2, 32], strides = [1, 1]} : vector<2x96xf32> to vector<2x32xf32>
    %978 = vector.extract_strided_slice %960 {offsets = [0, 64], sizes = [2, 32], strides = [1, 1]} : vector<2x96xf32> to vector<2x32xf32>
    %979 = arith.mulf %968, %978 : vector<2x32xf32>
    %980 = arith.addf %977, %979 : vector<2x32xf32>
    %981 = math.tanh %980 : vector<2x32xf32>
    %cst_235 = arith.constant 1.000000e+00 : f32
    %982 = vector.broadcast %cst_235 : f32 to vector<2x32xf32>
    %983 = arith.subf %982, %976 : vector<2x32xf32>
    %984 = arith.mulf %983, %981 : vector<2x32xf32>
    %985 = arith.mulf %976, %951 : vector<2x32xf32>
    %986 = arith.addf %984, %985 : vector<2x32xf32>
    %987 = vector.extract_strided_slice %775 {offsets = [12, 0], sizes = [2, 96], strides = [1, 1]} : vector<16x96xf32> to vector<2x96xf32>
    %988 = vector.extract_strided_slice %775 {offsets = [2, 0], sizes = [2, 96], strides = [1, 1]} : vector<16x96xf32> to vector<2x96xf32>
    %989 = vector.shape_cast %433 : vector<1x96xi1> to vector<1x96xi1>
    %990 = vector.broadcast %989 : vector<1x96xi1> to vector<2x96xi1>
    %991 = arith.select %990, %987, %988 : vector<2x96xi1>, vector<2x96xf32>
    %992 = arith.truncf %986 : vector<2x32xf32> to vector<2x32xbf16>
    %cst_236 = arith.constant dense<0.000000e+00> : vector<2x96xf32>
    %993 = tpu.matmul %992, %770, %cst_236 {dimension_numbers = #tpu.dot_dimension_numbers<[1], [0], [0], [1], [0, 0, 1, 1], [], []>} : vector<2x32xbf16>, vector<32x96xbf16>, vector<2x96xf32> -> vector<2x96xf32>
    %994 = vector.broadcast %771 : vector<1x96xf32> to vector<2x96xf32>
    %995 = arith.addf %993, %994 : vector<2x96xf32>
    %996 = vector.extract_strided_slice %991 {offsets = [0, 0], sizes = [2, 32], strides = [1, 1]} : vector<2x96xf32> to vector<2x32xf32>
    %997 = vector.extract_strided_slice %995 {offsets = [0, 0], sizes = [2, 32], strides = [1, 1]} : vector<2x96xf32> to vector<2x32xf32>
    %998 = arith.addf %996, %997 : vector<2x32xf32>
    %999 = arith.negf %998 : vector<2x32xf32>
    %1000 = math.exp %999 : vector<2x32xf32>
    %cst_237 = arith.constant 1.000000e+00 : f32
    %1001 = vector.broadcast %cst_237 : f32 to vector<2x32xf32>
    %1002 = arith.addf %1001, %1000 : vector<2x32xf32>
    %1003 = arith.divf %1001, %1002 : vector<2x32xf32>
    %1004 = vector.extract_strided_slice %991 {offsets = [0, 32], sizes = [2, 32], strides = [1, 1]} : vector<2x96xf32> to vector<2x32xf32>
    %1005 = vector.extract_strided_slice %995 {offsets = [0, 32], sizes = [2, 32], strides = [1, 1]} : vector<2x96xf32> to vector<2x32xf32>
    %1006 = arith.addf %1004, %1005 : vector<2x32xf32>
    %1007 = arith.negf %1006 : vector<2x32xf32>
    %1008 = math.exp %1007 : vector<2x32xf32>
    %cst_238 = arith.constant 1.000000e+00 : f32
    %1009 = vector.broadcast %cst_238 : f32 to vector<2x32xf32>
    %1010 = arith.addf %1009, %1008 : vector<2x32xf32>
    %1011 = arith.divf %1009, %1010 : vector<2x32xf32>
    %1012 = vector.extract_strided_slice %991 {offsets = [0, 64], sizes = [2, 32], strides = [1, 1]} : vector<2x96xf32> to vector<2x32xf32>
    %1013 = vector.extract_strided_slice %995 {offsets = [0, 64], sizes = [2, 32], strides = [1, 1]} : vector<2x96xf32> to vector<2x32xf32>
    %1014 = arith.mulf %1003, %1013 : vector<2x32xf32>
    %1015 = arith.addf %1012, %1014 : vector<2x32xf32>
    %1016 = math.tanh %1015 : vector<2x32xf32>
    %cst_239 = arith.constant 1.000000e+00 : f32
    %1017 = vector.broadcast %cst_239 : f32 to vector<2x32xf32>
    %1018 = arith.subf %1017, %1011 : vector<2x32xf32>
    %1019 = arith.mulf %1018, %1016 : vector<2x32xf32>
    %1020 = arith.mulf %1011, %986 : vector<2x32xf32>
    %1021 = arith.addf %1019, %1020 : vector<2x32xf32>
    %1022 = vector.extract_strided_slice %775 {offsets = [14, 0], sizes = [2, 96], strides = [1, 1]} : vector<16x96xf32> to vector<2x96xf32>
    %1023 = vector.extract_strided_slice %775 {offsets = [0, 0], sizes = [2, 96], strides = [1, 1]} : vector<16x96xf32> to vector<2x96xf32>
    %1024 = vector.shape_cast %433 : vector<1x96xi1> to vector<1x96xi1>
    %1025 = vector.broadcast %1024 : vector<1x96xi1> to vector<2x96xi1>
    %1026 = arith.select %1025, %1022, %1023 : vector<2x96xi1>, vector<2x96xf32>
    %1027 = arith.truncf %1021 : vector<2x32xf32> to vector<2x32xbf16>
    %cst_240 = arith.constant dense<0.000000e+00> : vector<2x96xf32>
    %1028 = tpu.matmul %1027, %770, %cst_240 {dimension_numbers = #tpu.dot_dimension_numbers<[1], [0], [0], [1], [0, 0, 1, 1], [], []>} : vector<2x32xbf16>, vector<32x96xbf16>, vector<2x96xf32> -> vector<2x96xf32>
    %1029 = vector.broadcast %771 : vector<1x96xf32> to vector<2x96xf32>
    %1030 = arith.addf %1028, %1029 : vector<2x96xf32>
    %1031 = vector.extract_strided_slice %1026 {offsets = [0, 0], sizes = [2, 32], strides = [1, 1]} : vector<2x96xf32> to vector<2x32xf32>
    %1032 = vector.extract_strided_slice %1030 {offsets = [0, 0], sizes = [2, 32], strides = [1, 1]} : vector<2x96xf32> to vector<2x32xf32>
    %1033 = arith.addf %1031, %1032 : vector<2x32xf32>
    %1034 = arith.negf %1033 : vector<2x32xf32>
    %1035 = math.exp %1034 : vector<2x32xf32>
    %cst_241 = arith.constant 1.000000e+00 : f32
    %1036 = vector.broadcast %cst_241 : f32 to vector<2x32xf32>
    %1037 = arith.addf %1036, %1035 : vector<2x32xf32>
    %1038 = arith.divf %1036, %1037 : vector<2x32xf32>
    %1039 = vector.extract_strided_slice %1026 {offsets = [0, 32], sizes = [2, 32], strides = [1, 1]} : vector<2x96xf32> to vector<2x32xf32>
    %1040 = vector.extract_strided_slice %1030 {offsets = [0, 32], sizes = [2, 32], strides = [1, 1]} : vector<2x96xf32> to vector<2x32xf32>
    %1041 = arith.addf %1039, %1040 : vector<2x32xf32>
    %1042 = arith.negf %1041 : vector<2x32xf32>
    %1043 = math.exp %1042 : vector<2x32xf32>
    %cst_242 = arith.constant 1.000000e+00 : f32
    %1044 = vector.broadcast %cst_242 : f32 to vector<2x32xf32>
    %1045 = arith.addf %1044, %1043 : vector<2x32xf32>
    %1046 = arith.divf %1044, %1045 : vector<2x32xf32>
    %1047 = vector.extract_strided_slice %1026 {offsets = [0, 64], sizes = [2, 32], strides = [1, 1]} : vector<2x96xf32> to vector<2x32xf32>
    %1048 = vector.extract_strided_slice %1030 {offsets = [0, 64], sizes = [2, 32], strides = [1, 1]} : vector<2x96xf32> to vector<2x32xf32>
    %1049 = arith.mulf %1038, %1048 : vector<2x32xf32>
    %1050 = arith.addf %1047, %1049 : vector<2x32xf32>
    %1051 = math.tanh %1050 : vector<2x32xf32>
    %cst_243 = arith.constant 1.000000e+00 : f32
    %1052 = vector.broadcast %cst_243 : f32 to vector<2x32xf32>
    %1053 = arith.subf %1052, %1046 : vector<2x32xf32>
    %1054 = arith.mulf %1053, %1051 : vector<2x32xf32>
    %1055 = arith.mulf %1046, %1021 : vector<2x32xf32>
    %1056 = arith.addf %1054, %1055 : vector<2x32xf32>
    %1057 = vector.shape_cast %436 : vector<1x32xi1> to vector<1x32xi1>
    %1058 = vector.broadcast %1057 : vector<1x32xi1> to vector<2x32xi1>
    %1059 = arith.select %1058, %1056, %811 : vector<2x32xi1>, vector<2x32xf32>
    %c0_244 = arith.constant 0 : index
    %c0_245 = arith.constant 0 : index
    %1060 = vector.load %arg36[%c0_244, %c0_245] : memref<32x32xbf16, #tpu.memory_space<vmem>>, vector<32x32xbf16>
    %c0_246 = arith.constant 0 : index
    %c0_247 = arith.constant 0 : index
    %1061 = vector.load %arg37[%c0_246, %c0_247] : memref<1x32xf32, #tpu.memory_space<vmem>>, vector<1x32xf32>
    %c0_248 = arith.constant 0 : index
    %c0_249 = arith.constant 0 : index
    %1062 = vector.load %arg38[%c0_248, %c0_249] : memref<1x32xf32, #tpu.memory_space<vmem>>, vector<1x32xf32>
    %1063 = arith.truncf %414 : vector<16x32xf32> to vector<16x32xbf16>
    %cst_250 = arith.constant dense<0.000000e+00> : vector<16x32xf32>
    %1064 = tpu.matmul %1063, %1060, %cst_250 {dimension_numbers = #tpu.dot_dimension_numbers<[1], [0], [0], [1], [0, 0, 1, 1], [], []>} : vector<16x32xbf16>, vector<32x32xbf16>, vector<16x32xf32> -> vector<16x32xf32>
    %1065 = vector.broadcast %1061 : vector<1x32xf32> to vector<16x32xf32>
    %1066 = arith.addf %1064, %1065 : vector<16x32xf32>
    %1067 = math.tanh %1066 : vector<16x32xf32>
    %1068 = vector.extract_strided_slice %414 {offsets = [0, 0], sizes = [8, 32], strides = [1, 1]} : vector<16x32xf32> to vector<8x32xf32>
    %1069 = vector.extract_strided_slice %1067 {offsets = [0, 0], sizes = [8, 32], strides = [1, 1]} : vector<16x32xf32> to vector<8x32xf32>
    %1070 = vector.broadcast %1062 : vector<1x32xf32> to vector<8x32xf32>
    %1071 = arith.mulf %1069, %1070 : vector<8x32xf32>
    %cst_251 = arith.constant dense<0.000000e+00> : vector<8xf32>
    %1072 = vector.multi_reduction <add>, %1071, %cst_251 [1] : vector<8x32xf32> to vector<8xf32>
    %1073 = vector.shape_cast %1072 : vector<8xf32> to vector<8x1xf32>
    %cst_252 = arith.constant dense<0xFF800000> : vector<1xf32>
    %1074 = vector.multi_reduction <maximumf>, %1073, %cst_252 [0] : vector<8x1xf32> to vector<1xf32>
    %1075 = vector.shape_cast %1074 : vector<1xf32> to vector<1x1xf32>
    %1076 = vector.broadcast %1075 : vector<1x1xf32> to vector<8x1xf32>
    %1077 = arith.subf %1073, %1076 : vector<8x1xf32>
    %1078 = math.exp %1077 : vector<8x1xf32>
    %cst_253 = arith.constant dense<0.000000e+00> : vector<1xf32>
    %1079 = vector.multi_reduction <add>, %1078, %cst_253 [0] : vector<8x1xf32> to vector<1xf32>
    %1080 = vector.shape_cast %1079 : vector<1xf32> to vector<1x1xf32>
    %1081 = tpu.reciprocal %1080 {approx = true} : vector<1x1xf32> -> vector<1x1xf32>
    %1082 = vector.broadcast %1081 : vector<1x1xf32> to vector<8x1xf32>
    %1083 = arith.mulf %1078, %1082 : vector<8x1xf32>
    %1084 = vector.broadcast %1083 : vector<8x1xf32> to vector<8x32xf32>
    %1085 = arith.mulf %1084, %1068 : vector<8x32xf32>
    %cst_254 = arith.constant dense<0.000000e+00> : vector<32xf32>
    %1086 = vector.multi_reduction <add>, %1085, %cst_254 [0] : vector<8x32xf32> to vector<32xf32>
    %1087 = vector.shape_cast %1086 : vector<32xf32> to vector<1x32xf32>
    %1088 = vector.extract_strided_slice %414 {offsets = [8, 0], sizes = [8, 32], strides = [1, 1]} : vector<16x32xf32> to vector<8x32xf32>
    %1089 = vector.extract_strided_slice %1067 {offsets = [8, 0], sizes = [8, 32], strides = [1, 1]} : vector<16x32xf32> to vector<8x32xf32>
    %1090 = vector.broadcast %1062 : vector<1x32xf32> to vector<8x32xf32>
    %1091 = arith.mulf %1089, %1090 : vector<8x32xf32>
    %cst_255 = arith.constant dense<0.000000e+00> : vector<8xf32>
    %1092 = vector.multi_reduction <add>, %1091, %cst_255 [1] : vector<8x32xf32> to vector<8xf32>
    %1093 = vector.shape_cast %1092 : vector<8xf32> to vector<8x1xf32>
    %cst_256 = arith.constant dense<0xFF800000> : vector<1xf32>
    %1094 = vector.multi_reduction <maximumf>, %1093, %cst_256 [0] : vector<8x1xf32> to vector<1xf32>
    %1095 = vector.shape_cast %1094 : vector<1xf32> to vector<1x1xf32>
    %1096 = vector.broadcast %1095 : vector<1x1xf32> to vector<8x1xf32>
    %1097 = arith.subf %1093, %1096 : vector<8x1xf32>
    %1098 = math.exp %1097 : vector<8x1xf32>
    %cst_257 = arith.constant dense<0.000000e+00> : vector<1xf32>
    %1099 = vector.multi_reduction <add>, %1098, %cst_257 [0] : vector<8x1xf32> to vector<1xf32>
    %1100 = vector.shape_cast %1099 : vector<1xf32> to vector<1x1xf32>
    %1101 = tpu.reciprocal %1100 {approx = true} : vector<1x1xf32> -> vector<1x1xf32>
    %1102 = vector.broadcast %1101 : vector<1x1xf32> to vector<8x1xf32>
    %1103 = arith.mulf %1098, %1102 : vector<8x1xf32>
    %1104 = vector.broadcast %1103 : vector<8x1xf32> to vector<8x32xf32>
    %1105 = arith.mulf %1104, %1088 : vector<8x32xf32>
    %cst_258 = arith.constant dense<0.000000e+00> : vector<32xf32>
    %1106 = vector.multi_reduction <add>, %1105, %cst_258 [0] : vector<8x32xf32> to vector<32xf32>
    %1107 = vector.shape_cast %1106 : vector<32xf32> to vector<1x32xf32>
    %1108 = tpu.concatenate %1087, %1107 in 0 : vector<1x32xf32>, vector<1x32xf32> -> vector<2x32xf32>
    %c0_259 = arith.constant 0 : index
    %c0_260 = arith.constant 0 : index
    %1109 = vector.load %arg39[%c0_259, %c0_260] : memref<64x32xbf16, #tpu.memory_space<vmem>>, vector<64x32xbf16>
    %c0_261 = arith.constant 0 : index
    %c0_262 = arith.constant 0 : index
    %1110 = vector.load %arg40[%c0_261, %c0_262] : memref<1x32xf32, #tpu.memory_space<vmem>>, vector<1x32xf32>
    %c0_263 = arith.constant 0 : index
    %c0_264 = arith.constant 0 : index
    %1111 = vector.load %arg41[%c0_263, %c0_264] : memref<1x32xf32, #tpu.memory_space<vmem>>, vector<1x32xf32>
    %c0_265 = arith.constant 0 : index
    %c0_266 = arith.constant 0 : index
    %1112 = vector.load %arg42[%c0_265, %c0_266] : memref<1x32xf32, #tpu.memory_space<vmem>>, vector<1x32xf32>
    %c0_267 = arith.constant 0 : index
    %c0_268 = arith.constant 0 : index
    %1113 = vector.load %arg43[%c0_267, %c0_268] : memref<1x32xf32, #tpu.memory_space<vmem>>, vector<1x32xf32>
    %c0_269 = arith.constant 0 : index
    %c0_270 = arith.constant 0 : index
    %1114 = vector.load %arg44[%c0_269, %c0_270] : memref<1x32xf32, #tpu.memory_space<vmem>>, vector<1x32xf32>
    %c0_271 = arith.constant 0 : index
    %c0_272 = arith.constant 0 : index
    %1115 = vector.load %arg45[%c0_271, %c0_272] : memref<32x3xbf16, #tpu.memory_space<vmem>>, vector<32x3xbf16>
    %c0_273 = arith.constant 0 : index
    %c0_274 = arith.constant 0 : index
    %1116 = vector.load %arg46[%c0_273, %c0_274] : memref<1x3xf32, #tpu.memory_space<vmem>>, vector<1x3xf32>
    %1117 = tpu.concatenate %1059, %1108 in 1 : vector<2x32xf32>, vector<2x32xf32> -> vector<2x64xf32>
    %1118 = arith.truncf %1117 : vector<2x64xf32> to vector<2x64xbf16>
    %cst_275 = arith.constant dense<0.000000e+00> : vector<2x32xf32>
    %1119 = tpu.matmul %1118, %1109, %cst_275 {dimension_numbers = #tpu.dot_dimension_numbers<[1], [0], [0], [1], [0, 0, 1, 1], [], []>} : vector<2x64xbf16>, vector<64x32xbf16>, vector<2x32xf32> -> vector<2x32xf32>
    %1120 = vector.broadcast %1110 : vector<1x32xf32> to vector<2x32xf32>
    %1121 = arith.addf %1119, %1120 : vector<2x32xf32>
    %1122 = vector.broadcast %1113 : vector<1x32xf32> to vector<2x32xf32>
    %1123 = arith.subf %1121, %1122 : vector<2x32xf32>
    %cst_276 = arith.constant 9.99999974E-6 : f32
    %1124 = vector.broadcast %cst_276 : f32 to vector<1x32xf32>
    %1125 = arith.addf %1114, %1124 : vector<1x32xf32>
    %1126 = math.rsqrt %1125 : vector<1x32xf32>
    %1127 = vector.broadcast %1126 : vector<1x32xf32> to vector<2x32xf32>
    %1128 = arith.mulf %1123, %1127 : vector<2x32xf32>
    %1129 = vector.broadcast %1111 : vector<1x32xf32> to vector<2x32xf32>
    %1130 = arith.mulf %1128, %1129 : vector<2x32xf32>
    %1131 = vector.broadcast %1112 : vector<1x32xf32> to vector<2x32xf32>
    %1132 = arith.addf %1130, %1131 : vector<2x32xf32>
    %cst_277 = arith.constant 0.000000e+00 : f32
    %1133 = vector.broadcast %cst_277 : f32 to vector<2x32xf32>
    %1134 = arith.maximumf %1132, %1133 : vector<2x32xf32>
    %1135 = arith.truncf %1134 : vector<2x32xf32> to vector<2x32xbf16>
    %cst_278 = arith.constant dense<0.000000e+00> : vector<2x3xf32>
    %1136 = tpu.matmul %1135, %1115, %cst_278 {dimension_numbers = #tpu.dot_dimension_numbers<[1], [0], [0], [1], [0, 0, 1, 1], [], []>} : vector<2x32xbf16>, vector<32x3xbf16>, vector<2x3xf32> -> vector<2x3xf32>
    %1137 = vector.broadcast %1116 : vector<1x3xf32> to vector<2x3xf32>
    %1138 = arith.addf %1136, %1137 : vector<2x3xf32>
    %c0_279 = arith.constant 0 : index
    %c0_280 = arith.constant 0 : index
    %1139 = vector.load %arg47[%c0_279, %c0_280] : memref<2x3xf32, #tpu.memory_space<vmem>>, vector<2x3xf32>
    tpu.vector_store %arg47[%c0_279, %c0_280], %1138 {strides = array<i32>} : memref<2x3xf32, #tpu.memory_space<vmem>>, vector<2x3xf32>,
    return
  }
}

</mosaic_0001>

<bundles_post_ra>
// kernel: forward.1
= control target key start
LH: loop header
LB: loop body
LE: loop exit
PB: predicated region body
PF: predicated region fallthrough
CT: control target
= control target key end

     0   :  { %s4562_s6 = smov 1   ;;  %s4563_s10 = smov 2   ;;  %s5697_s0 = inlined_call_operand.smem [shape: u32[48], index: -1, kind: input, shape index: {}] }
   0x1   :  { %s4643_s5 = sld [smem:[%s5697_s0]]   ;;  %s4564_s14 = smov 3  }
   0x2   :  { %s4648_s9 = sld [smem:[%s5697_s0 + %s4562_s6]]   ;;  %s4565_s18 = smov 4  }
   0x3   :  { %s4653_s13 = sld [smem:[%s5697_s0 + %s4563_s10]]   ;;  %s4566_s22 = smov 5  }
   0x4   :  { %s4658_s17 = sld [smem:[%s5697_s0 + %s4564_s14]]   ;;  %s4567_s26 = smov 6  }
   0x5   :  { %s4663_s21 = sld [smem:[%s5697_s0 + %s4565_s18]]   ;;  %s4568_s30 = smov 7  }
   0x6   :  { %s4668_s25 = sld [smem:[%s5697_s0 + %s4566_s22]]   ;;  %s4569_s4 = smov 8  }
   0x7   :  { %s4673_s29 = sld [smem:[%s5697_s0 + %s4567_s26]]   ;;  %s4570_s10 = smov 9  }
   0x8   :  { %s4678_s3 = sld [smem:[%s5697_s0 + %s4568_s30]]   ;;  %s4571_s15 = smov 10  }
   0x9   :  { %s4683_s8 = sld [smem:[%s5697_s0 + %s4569_s4]]   ;;  %s4572_s20 = smov 11  }
   0xa   :  { %s4688_s14 = sld [smem:[%s5697_s0 + %s4570_s10]]   ;;  %s4573_s26 = smov 12  }
   0xb   :  { %s4693_s19 = sld [smem:[%s5697_s0 + %s4571_s15]]   ;;  %s4574_s1 = smov 13  }
   0xc   :  { %s4698_s24 = sld [smem:[%s5697_s0 + %s4572_s20]]   ;;  %s4575_s7 = smov 14  }
   0xd   :  { %s4703_s30 = sld [smem:[%s5697_s0 + %s4573_s26]]   ;;  %s4576_s15 = smov 15  }
   0xe   :  { %s4708_s6 = sld [smem:[%s5697_s0 + %s4574_s1]]   ;;  %s4577_s22 = smov 16  }
   0xf   :  { %5709 = sst [smem:[#allocation20_spill]] %s4683_s8  ;;  %s4578_s28 = smov 17  }
  0x10   :  { %5710 = sst [smem:[#allocation21_spill]] %s4688_s14 }
  0x11   :  { %s4713_s12 = sld [smem:[%s5697_s0 + %s4575_s7]]   ;;  %s4579_s7 = smov 18  }
  0x12   :  { %s4718_s20 = sld [smem:[%s5697_s0 + %s4576_s15]]   ;;  %s4580_s15 = smov 19  }
  0x13   :  { %5711 = sst [smem:[#allocation22_spill]] %s4703_s30 }
  0x14   :  { %s4723_s27 = sld [smem:[%s5697_s0 + %s4577_s22]]   ;;  %s4581_s22 = smov 20  }
  0x15   :  { %s4728_s4 = sld [smem:[%s5697_s0 + %s4578_s28]]   ;;  %s4582_s28 = smov 21  }
  0x17   :  { %5712 = sst [smem:[#allocation23_spill]] %s4713_s12 }
  0x18   :  { %5713 = sst [smem:[#allocation24_spill]] %s4718_s20 }
  0x19   :  { %s4733_s12 = sld [smem:[%s5697_s0 + %s4579_s7]]   ;;  %s4583_s7 = smov 22  }
  0x1a   :  { %5714 = sst [smem:[#allocation25_spill]] %s4723_s27 }
  0x1b   :  { %5715 = sst [smem:[#allocation26_spill]] %s4728_s4 }
  0x1c   :  { %s4738_s20 = sld [smem:[%s5697_s0 + %s4580_s15]]   ;;  %s4584_s15 = smov 23  }
  0x1d   :  { %s4743_s27 = sld [smem:[%s5697_s0 + %s4581_s22]]   ;;  %s4585_s22 = smov 24  }
  0x1e   :  { %s4748_s4 = sld [smem:[%s5697_s0 + %s4582_s28]]   ;;  %s4586_s28 = smov 25  }
  0x1f   :  { %5716 = sst [smem:[#allocation27_spill]] %s4733_s12 }
  0x20   :  { %s4753_s12 = sld [smem:[%s5697_s0 + %s4583_s7]]   ;;  %s4587_s7 = smov 26  }
  0x22   :  { %5717 = sst [smem:[#allocation28_spill]] %s4738_s20 }
  0x23   :  { %5718 = sst [smem:[#allocation29_spill]] %s4743_s27 }
  0x24   :  { %5719 = sst [smem:[#allocation30_spill]] %s4748_s4 }
  0x25   :  { %s4758_s20 = sld [smem:[%s5697_s0 + %s4584_s15]]   ;;  %s4588_s15 = smov 27  }
  0x26   :  { %5720 = sst [smem:[#allocation31_spill]] %s4753_s12 }
  0x27   :  { %s4763_s27 = sld [smem:[%s5697_s0 + %s4585_s22]]   ;;  %s4589_s22 = smov 28  }
  0x28   :  { %s4768_s4 = sld [smem:[%s5697_s0 + %s4586_s28]]   ;;  %s4590_s28 = smov 29  }
  0x29   :  { %s4773_s12 = sld [smem:[%s5697_s0 + %s4587_s7]]   ;;  %s4591_s7 = smov 30  }
  0x2b   :  { %5721 = sst [smem:[#allocation32_spill]] %s4758_s20 }
  0x2c   :  { %s4778_s20 = sld [smem:[%s5697_s0 + %s4588_s15]]   ;;  %s4592_s15 = smov 31  }
  0x2d   :  { %5722 = sst [smem:[#allocation33_spill]] %s4763_s27 }
  0x2e   :  { %5723 = sst [smem:[#allocation34_spill]] %s4768_s4 }
  0x2f   :  { %5724 = sst [smem:[#allocation35_spill]] %s4773_s12 }
  0x30   :  { %s4783_s27 = sld [smem:[%s5697_s0 + %s4589_s22]]   ;;  %s4593_s22 = smov 32  }
  0x31   :  { %s4788_s4 = sld [smem:[%s5697_s0 + %s4590_s28]]   ;;  %s4594_s28 = smov 33  }
  0x32   :  { %5725 = sst [smem:[#allocation36_spill]] %s4778_s20 }
  0x33   :  { %s4793_s12 = sld [smem:[%s5697_s0 + %s4591_s7]]   ;;  %s4595_s7 = smov 34  }
  0x34   :  { %s4798_s20 = sld [smem:[%s5697_s0 + %s4592_s15]]   ;;  %s4596_s15 = smov 35  }
  0x36   :  { %5726 = sst [smem:[#allocation37_spill]] %s4783_s27 }
  0x37   :  { %5727 = sst [smem:[#allocation38_spill]] %s4788_s4 }
  0x38   :  { %s4803_s27 = sld [smem:[%s5697_s0 + %s4593_s22]]   ;;  %s4597_s22 = smov 36  }
  0x39   :  { %5728 = sst [smem:[#allocation39_spill]] %s4793_s12 }
  0x3a   :  { %5729 = sst [smem:[#allocation40_spill]] %s4798_s20 }
  0x3b   :  { %s4808_s4 = sld [smem:[%s5697_s0 + %s4594_s28]]   ;;  %s4598_s28 = smov 37  }
  0x3c   :  { %s4813_s12 = sld [smem:[%s5697_s0 + %s4595_s7]]   ;;  %s4599_s7 = smov 38  }
  0x3d   :  { %s4818_s20 = sld [smem:[%s5697_s0 + %s4596_s15]]   ;;  %s4600_s15 = smov 39  }
  0x3e   :  { %5730 = sst [smem:[#allocation41_spill]] %s4803_s27 }
  0x3f   :  { %s4823_s27 = sld [smem:[%s5697_s0 + %s4597_s22]]   ;;  %s4601_s22 = smov 40  }
  0x41   :  { %5731 = sst [smem:[#allocation42_spill]] %s4808_s4 }
  0x42   :  { %5732 = sst [smem:[#allocation43_spill]] %s4813_s12 }
  0x43   :  { %5733 = sst [smem:[#allocation44_spill]] %s4818_s20 }
  0x44   :  { %s4828_s4 = sld [smem:[%s5697_s0 + %s4598_s28]]   ;;  %s4602_s28 = smov 41  }
  0x45   :  { %5734 = sst [smem:[#allocation45_spill]] %s4823_s27 }
  0x46   :  { %s4833_s12 = sld [smem:[%s5697_s0 + %s4599_s7]]   ;;  %s4603_s7 = smov 42  }
  0x47   :  { %s4838_s20 = sld [smem:[%s5697_s0 + %s4600_s15]]   ;;  %s4604_s15 = smov 43  }
  0x48   :  { %s4843_s27 = sld [smem:[%s5697_s0 + %s4601_s22]]   ;;  %s4605_s22 = smov 44  }
  0x4a   :  { %5735 = sst [smem:[#allocation46_spill]] %s4828_s4 }
  0x4b   :  { %s4848_s4 = sld [smem:[%s5697_s0 + %s4602_s28]]   ;;  %s4606_s28 = smov 45  }
  0x4c   :  { %5736 = sst [smem:[#allocation47_spill]] %s4833_s12 }
  0x4d   :  { %5737 = sst [smem:[#allocation48_spill]] %s4838_s20 }
  0x4e   :  { %5738 = sst [smem:[#allocation49_spill]] %s4843_s27 }
  0x4f   :  { %s4853_s12 = sld [smem:[%s5697_s0 + %s4603_s7]]   ;;  %s4607_s7 = smov 46  }
  0x50   :  { %s4858_s20 = sld [smem:[%s5697_s0 + %s4604_s15]]   ;;  %s4608_s15 = smov 47  }
  0x51   :  { %s4863_s27 = sld [smem:[%s5697_s0 + %s4605_s22]]  }
  0x52   :  { %s4868_s30 = sld [smem:[%s5697_s0 + %s4606_s28]]  }
  0x53   :  { %s4873_s14 = sld [smem:[%s5697_s0 + %s4607_s7]]  }
  0x54   :  { %s4878_s8 = sld [smem:[%s5697_s0 + %s4608_s15]]  }
  0x55   :  { %100 = vsyncpa [#allocation3], 0 }
  0x56   :  { %101 = vsyncpa [#allocation6], 0 }
  0x57   :  { %102 = vsyncpa [#allocation9], 0 }
  0x58   :  { %103 = vsyncpa [#allocation12], 0  ;;  %s141_s22 = sshll.u32 %s4698_s24, 4  ;;  %s142_s22 = int_to_ptr.hbm [resolvable:$true] %s141_s22 }
  0x59   :  { %104 = vsyncpa [#allocation4], 0  ;;  %s4609_s23 = smov [#allocation5]   ;;  %s219_s28 = sshll.u32 %s4848_s4, 4  ;;  %s220_s28 = int_to_ptr.hbm [resolvable:$true] %s219_s28 }
  0x5a   :  { %s143_s26 = sshll.u32 %s4609_s23, 4  ;;  %s4360_s1 = sshra.s32 %s142_s22, 4  ;;  %s144_s26 = int_to_ptr.vmem [resolvable:$true] %s143_s26  ;;  %s4361_s1 = int_to_ptr.hbm [resolvable:$true] %s4360_s1 }
  0x5b   :  { %s4362_s2 = scalar_lea.hbm %s4361_s1, 1  ;;  %s4364_s0 = scalar_lea.hbm %s4698_s24, 1 }
  0x5c   :  { %p4363_p0 = scmp.ne.s32.totalorder %s4361_s1, %s4362_s2  ;;  %p4365_p1 = scmp.lt.s32.totalorder %s4361_s1, %s4698_s24 }
  0x5d   :  { %p4366_p2 = scmp.lt.s32.totalorder %s4364_s0, %s4362_s2 }
  0x5f   :  { %p4367_p3 = por %p4366_p2, %p4365_p1 }
  0x61   :  { %p4368_p4 = pnand %p4367_p3, %p4363_p0 }
  0x63   :  { %4371 = shalt.err (!%p4368_p4)
}
  0x64   :  { %146 = dma.hbm_to_vmem [thread:$0]  %s142_s22, 16, %s144_s26, [#allocation6]  }
  0x65   :  { %s4610_s7 = smov [#allocation8]   ;;  %s241_s11 = sshll.u32 %s4858_s20, 4  ;;  %s242_s11 = int_to_ptr.hbm [resolvable:$true] %s241_s11 }
  0x66   :  { %s221_s10 = sshll.u32 %s4610_s7, 4  ;;  %s4384_s15 = sshra.s32 %s220_s28, 4  ;;  %s222_s10 = int_to_ptr.vmem [resolvable:$true] %s221_s10  ;;  %s4385_s15 = int_to_ptr.hbm [resolvable:$true] %s4384_s15 }
  0x67   :  { %s4386_s16 = scalar_lea.hbm %s4385_s15, 1  ;;  %s4388_s18 = scalar_lea.hbm %s4848_s4, 1 }
  0x68   :  { %p4387_p5 = scmp.ne.s32.totalorder %s4385_s15, %s4386_s16  ;;  %p4389_p6 = scmp.lt.s32.totalorder %s4385_s15, %s4848_s4 }
  0x69   :  { %p4390_p7 = scmp.lt.s32.totalorder %s4388_s18, %s4386_s16 }
  0x6b   :  { %p4391_p8 = por %p4390_p7, %p4389_p6 }
  0x6d   :  { %p4392_p9 = pnand %p4391_p8, %p4387_p5 }
  0x6f   :  { %4395 = shalt.err (!%p4392_p9)
}
  0x70   :  { %224 = dma.hbm_to_vmem [thread:$0]  %s220_s28, 16, %s222_s10, [#allocation9]  }
  0x71   :  { %s120_s24 = sshll.u32 %s4668_s25, 4  ;;  %s4611_s22 = smov [#allocation11]   ;;  %s121_s24 = int_to_ptr.hbm [resolvable:$true] %s120_s24 }
  0x72   :  { %s243_s23 = sshll.u32 %s4611_s22, 4  ;;  %s4408_s26 = sshra.s32 %s242_s11, 4  ;;  %s244_s23 = int_to_ptr.vmem [resolvable:$true] %s243_s23  ;;  %s4409_s26 = int_to_ptr.hbm [resolvable:$true] %s4408_s26 }
  0x73   :  { %s4410_s1 = scalar_lea.hbm %s4409_s26, 1  ;;  %s4412_s2 = scalar_lea.hbm %s4858_s20, 1 }
  0x74   :  { %p4411_p10 = scmp.ne.s32.totalorder %s4409_s26, %s4410_s1  ;;  %p4413_p11 = scmp.lt.s32.totalorder %s4409_s26, %s4858_s20 }
  0x75   :  { %p4414_p12 = scmp.lt.s32.totalorder %s4412_s2, %s4410_s1 }
  0x77   :  { %p4415_p13 = por %p4414_p12, %p4413_p11 }
  0x79   :  { %p4416_p0 = pnand %p4415_p13, %p4411_p10 }
  0x7b   :  { %4419 = shalt.err (!%p4416_p0)
}
  0x7c   :  { %246 = dma.hbm_to_vmem [thread:$0]  %s242_s11, 16, %s244_s23, [#allocation12]  }
  0x7d   :  { %s4612_s4 = smov [#allocation2]   ;;  %s154_s0 = sshll.u32 %s4708_s6, 4  ;;  %s155_s0 = int_to_ptr.hbm [resolvable:$true] %s154_s0 }
  0x7e   :  { %s122_s28 = sshll.u32 %s4612_s4, 4  ;;  %s4432_s7 = sshra.s32 %s121_s24, 4  ;;  %s123_s28 = int_to_ptr.vmem [resolvable:$true] %s122_s28  ;;  %s4433_s7 = int_to_ptr.hbm [resolvable:$true] %s4432_s7 }
  0x7f   :  { %s4434_s10 = scalar_lea.hbm %s4433_s7, 1  ;;  %s4436_s15 = scalar_lea.hbm %s4668_s25, 1 }
  0x80   :  { %p4435_p1 = scmp.ne.s32.totalorder %s4433_s7, %s4434_s10  ;;  %p4437_p2 = scmp.lt.s32.totalorder %s4433_s7, %s4668_s25 }
  0x81   :  { %p4438_p3 = scmp.lt.s32.totalorder %s4436_s15, %s4434_s10 }
  0x83   :  { %p4439_p4 = por %p4438_p3, %p4437_p2 }
  0x85   :  { %p4440_p5 = pnand %p4439_p4, %p4435_p1 }
  0x87   :  { %4443 = shalt.err (!%p4440_p5)
}
  0x88   :  { %125 = dma.hbm_to_vmem [thread:$0]  %s121_s24, 16, %s123_s28, [#allocation3]  }
  0x89   :  { %s230_s20 = sshll.u32 %s4853_s12, 4  ;;  %s4613_s11 = smov [#allocation7]   ;;  %s231_s20 = int_to_ptr.hbm [resolvable:$true] %s230_s20 }
  0x8a   :  { %s156_s16 = sshll.u32 %s4613_s11, 4  ;;  %s4456_s18 = sshra.s32 %s155_s0, 4  ;;  %s157_s16 = int_to_ptr.vmem [resolvable:$true] %s156_s16  ;;  %s4457_s18 = int_to_ptr.hbm [resolvable:$true] %s4456_s18 }
  0x8b   :  { %s4458_s22 = scalar_lea.hbm %s4457_s18, 1  ;;  %s4460_s23 = scalar_lea.hbm %s4708_s6, 1 }
  0x8c   :  { %p4459_p6 = scmp.ne.s32.totalorder %s4457_s18, %s4458_s22  ;;  %p4461_p7 = scmp.lt.s32.totalorder %s4457_s18, %s4708_s6 }
  0x8d   :  { %p4462_p8 = scmp.lt.s32.totalorder %s4460_s23, %s4458_s22 }
  0x8f   :  { %p4463_p9 = por %p4462_p8, %p4461_p7 }
  0x91   :  { %p4464_p10 = pnand %p4463_p9, %p4459_p6 }
  0x93   :  { %4467 = shalt.err (!%p4464_p10)
}
  0x94   :  { %159 = dma.hbm_to_vmem [thread:$0]  %s155_s0, 16, %s157_s16, [#allocation6]  }
  0x95   :  { %s4614_s25 = smov [#allocation10]   ;;  %s252_s26 = sshll.u32 %s4863_s27, 4  ;;  %s253_s26 = int_to_ptr.hbm [resolvable:$true] %s252_s26 }
  0x96   :  { %s232_s24 = sshll.u32 %s4614_s25, 4  ;;  %s4480_s1 = sshra.s32 %s231_s20, 4  ;;  %s233_s24 = int_to_ptr.vmem [resolvable:$true] %s232_s24  ;;  %s4481_s1 = int_to_ptr.hbm [resolvable:$true] %s4480_s1 }
  0x97   :  { %s4482_s2 = scalar_lea.hbm %s4481_s1, 1  ;;  %s4484_s4 = scalar_lea.hbm %s4853_s12, 1 }
  0x98   :  { %p4483_p11 = scmp.ne.s32.totalorder %s4481_s1, %s4482_s2  ;;  %p4485_p12 = scmp.lt.s32.totalorder %s4481_s1, %s4853_s12 }
  0x99   :  { %p4486_p13 = scmp.lt.s32.totalorder %s4484_s4, %s4482_s2 }
  0x9b   :  { %p4487_p0 = por %p4486_p13, %p4485_p12 }
  0x9d   :  { %p4488_p1 = pnand %p4487_p0, %p4483_p11 }
  0x9f   :  { %4491 = shalt.err (!%p4488_p1)
}
  0xa0   :  { %235 = dma.hbm_to_vmem [thread:$0]  %s231_s20, 16, %s233_s24, [#allocation9]  }
  0xa1   :  { %s4615_s6 = smov [#allocation13]   ;;  %s4504_s0 = sshra.s32 %s253_s26, 4  ;;  %s4505_s0 = int_to_ptr.hbm [resolvable:$true] %s4504_s0 }
  0xa2   :  { %s254_s28 = sshll.u32 %s4615_s6, 4  ;;  %s4506_s7 = scalar_lea.hbm %s4505_s0, 1  ;;  %s255_s28 = int_to_ptr.vmem [resolvable:$true] %s254_s28 }
  0xa3   :  { %p4507_p2 = scmp.ne.s32.totalorder %s4505_s0, %s4506_s7  ;;  %s4508_s10 = scalar_lea.hbm %s4863_s27, 1 }
  0xa4   :  { %p4509_p3 = scmp.lt.s32.totalorder %s4505_s0, %s4863_s27  ;;  %p4510_p4 = scmp.lt.s32.totalorder %s4508_s10, %s4506_s7 }
  0xa6   :  { %p4511_p5 = por %p4510_p4, %p4509_p3 }
  0xa8   :  { %p4512_p6 = pnand %p4511_p5, %p4507_p2 }
  0xaa   :  { %4515 = shalt.err (!%p4512_p6)
}
  0xab   :  { %257 = dma.hbm_to_vmem [thread:$0]  %s253_s26, 16, %s255_s28, [#allocation12]  }
  0xac   :  { %4552 = dma.done.wait [#allocation3], 16  }
  0xad   :  { %4553 = vsyncadd [#allocation3], 4294967280 }
  0xae   :  { %4554 = dma.done.wait [#allocation6], 32  }
  0xaf   :  { %4555 = vsyncadd [#allocation6], 4294967264 }
  0xb0   :  { %4556 = dma.done.wait [#allocation9], 32  }
  0xb1   :  { %4557 = vsyncadd [#allocation9], 4294967264 }
  0xb2   :  { %4558 = dma.done.wait [#allocation12], 32  }
  0xb3   :  { %4559 = vsyncadd [#allocation12], 4294967264  ;;  %vm305_vm0 = vcmask 1041408   ;;  %v295_v0 = vld [vmem:[%s4653_s13] sm:$0x3]  ;;  %v292_v2 = vld [vmem:[%s4643_s5 + $0x8] sm:$0xff] }
  0xb4   :  { %v291_v1 = vld [vmem:[%s4643_s5] sm:$0xff]  ;;  %v307_v3 = vsel %vm305_vm0, %v295_v0, 0  ;;  %vm301_vm1 = vcmask 31744   ;;  %v3953_v5 = vld [vmem:[%s4663_s21 + $0x8] sm:$0xff]  ;;  %vm377_vm2 = vcmask 261120   ;;  %s4616_s5 = smov 88  }
  0xb5   :  { %v297_v4 = vpack.c.bf16 %v292_v2, %v291_v1  ;;  %316 = vmatpush.bf16.msra.mxu0 %v307_v3  ;;  %387 = vmatpush.bf16.msra.mxu1 %v3953_v5  ;;  %v3952_v6 = vld [vmem:[%s4663_s21] sm:$0xff]  ;;  %v294_v11 = vld [vmem:[%s4648_s9 + $0x8] sm:$0xff]  ;;  %s4618_s13 = smov 120   ;;  %s4620_s21 = smov 112   ;;  %vm406_vm3 = vcmask 64512   ;;  %vm479_vm4 = vcmask 1043456  }
  0xb6   :  { %v4124_v8 = vld [vmem:[%s4658_s17] ss:$0 sm:$0xff]  ;;  %s4619_s17 = smov 80   ;;  %s4621_s12 = smov 72   ;;  %vm885_vm5 = vcmask 130048   ;;  %vm888_vm6 = vcmask 195584  }
  0xb7   :  { %v293_v10 = vld [vmem:[%s4648_s9] sm:$0xff]  ;;  %s4617_s9 = smov 96   ;;  %s4622_s27 = smov 104  }
  0xb8   :  { %3702 = vmatmul.msk.bf16.vlgmr.msra.gmra.mxu0 %vm301_vm1, %v297_v4  ;;  %v4125_v17 = vld [vmem:[#allocation2] ss:$0 sm:$0xff]  ;;  %s4623_s15 = smov 64   ;;  %s4624_s20 = smov 56  }
  0xb9   :  { %388 = vmatpush.bf16.msra.mxu1 %v3952_v6  ;;  %s4625_s11 = smov 48   ;;  %s4626_s16 = smov 40  }
  0xba   :  { %s4627_s18 = smov 8   ;;  %s4628_s22 = smov 16  }
  0xbb   :  { %s4629_s23 = smov 24   ;;  %s5742_s25 = sld [smem:[#allocation25_spill]] }
  0xbc   :  { %s5743_s24 = sld [smem:[#allocation23_spill]] }
  0xbd   :  { %s5744_s26 = sld [smem:[#allocation24_spill]] }
  0xbe   :  { %s5745_s1 = sld [smem:[#allocation26_spill]] }
  0xbf   :  { %s5746_s2 = sld [smem:[#allocation27_spill]] }
  0xc0   :  { %s5747_s4 = sld [smem:[#allocation28_spill]] }
  0xc1   :  { %s5748_s6 = sld [smem:[#allocation31_spill]] }
  0xc2   :  { %s5749_s28 = sld [smem:[#allocation29_spill]] }
  0xc3   :  { %s5750_s0 = sld [smem:[#allocation30_spill]] }
  0xc4   :  { %s5751_s7 = sld [smem:[#allocation32_spill]] }
  0xc5   :  { %s5752_s10 = sld [smem:[#allocation33_spill]] }
 0x135   :  { %v318_v7 = vpop.f32.mrf.mxu0 }
 0x136   :  { %v319_v9 = vadd.f32 %v4124_v8, %v318_v7 }
 0x138   :  { %v4910_v14 = vadd.f32 %v319_v9, %v293_v10 }
 0x13d   :  { %v320_v12 = vpop.f32.mrf.mxu0 }
 0x13e   :  { %v321_v13 = vadd.f32 %v4124_v8, %v320_v12 }
 0x140   :  { %v4912_v15 = vadd.f32 %v321_v13, %v294_v11 }
 0x142   :  { %v361_v16 = vpack.c.bf16 %v4912_v15, %v4910_v14 }
 0x144   :  { %3711 = vmatmul.msk.bf16.vlgmr.msra.gmra.mxu1 %vm377_vm2, %v361_v16 }
 0x1c1   :  { %v390_v18 = vpop.f32.mrf.mxu1 }
 0x1c2   :  { %v391_v19 = vadd.f32 %v4125_v17, %v390_v18 }
 0x1c4   :  { %v395_v20 = vmul.f32 0.35355338, %v391_v19  ;;  %v399_v21 = vpack.c.bf16 %v391_v19, %v391_v19 }
 0x1c6   :  { %v397_v22 = vpack.c.bf16 %v395_v20, %v395_v20  ;;  %v402_v23 = vunpack.c.l.b16 %v399_v21 }
 0x1c8   :  { %v4917_v24 = vpack.c.b16 %v402_v23, %v402_v23  ;;  %v518_v25 = vunpack.c.l.b16 %v397_v22 }
 0x1c9   :  { %v392_v26 = vpop.f32.mrf.mxu1 }
 0x1ca   :  { %v393_v27 = vadd.f32 %v4125_v17, %v392_v26  ;;  %522 = vrot.lane.b32.xlu1 %v4917_v24, %s4616_s5  ;;  %404 = vrot.lane.b32.xlu0 %v4917_v24, %s4617_s9  ;;  %v519_v28 = vpack.c.b16 %v518_v25, %v518_v25 }
 0x1cc   :  { %v396_v29 = vmul.f32 0.35355338, %v393_v27  ;;  %v400_v30 = vpack.c.bf16 %v393_v27, %v393_v27  ;;  %520 = vrot.lane.b32.xlu2 %v519_v28, %s4618_s13 }
 0x1ce   :  { %v398_v31 = vpack.c.bf16 %v396_v29, %v396_v29  ;;  %v427_v32 = vunpack.c.l.b16 %v400_v30 }
 0x1d0   :  { %v4924_v33 = vpack.c.b16 %v427_v32, %v427_v32  ;;  %v544_v34 = vunpack.c.l.b16 %v398_v31 }
 0x1d2   :  { %548 = vrot.lane.b32.xlu1 %v4924_v33, %s4616_s5  ;;  %429 = vrot.lane.b32.xlu0 %v4924_v33, %s4617_s9  ;;  %v545_v35 = vpack.c.b16 %v544_v34, %v544_v34 }
 0x1d4   :  { %546 = vrot.lane.b32.xlu2 %v545_v35, %s4618_s13 }
 0x1da   :  { %660 = vrot.lane.b32.xlu1 %v4924_v33, %s4619_s17  ;;  %637 = vrot.lane.b32.xlu0 %v4917_v24, %s4619_s17 }
 0x1dc   :  { %635 = vrot.lane.b32.xlu2 %v519_v28, %s4620_s21 }
 0x1e2   :  { %749 = vrot.lane.b32.xlu1 %v4917_v24, %s4621_s12  ;;  %658 = vrot.lane.b32.xlu0 %v545_v35, %s4620_s21 }
 0x1e4   :  { %772 = vrot.lane.b32.xlu2 %v4924_v33, %s4621_s12 }
 0x1ea   :  { %770 = vrot.lane.b32.xlu1 %v545_v35, %s4622_s27  ;;  %747 = vrot.lane.b32.xlu0 %v519_v28, %s4622_s27 }
 0x226   :  { %v521_v36 = vpop.permute.xlu2 %520 }
 0x22e   :  { %v547_v45 = vpop.permute.xlu2 %546 }
 0x236   :  { %v636_v50 = vpop.permute.xlu2 %635 }
 0x23c   :  { %v523_v37 = vpop.permute.xlu1 %522  ;;  %v405_v38 = vpop.permute.xlu0 %404 }
 0x23d   :  { %v411_v39 = vsel %vm406_vm3, %v405_v38, 0  ;;  %v528_v40 = vsel %vm406_vm3, %v523_v37, 0 }
 0x23e   :  { %420 = vmatpush.bf16.xpose.msra.mxu2 %v411_v39  ;;  %v773_v53 = vpop.permute.xlu2 %772 }
 0x23f   :  { %v778_v54 = vsel %vm406_vm3, %v773_v53, 0 }
 0x244   :  { %v549_v41 = vpop.permute.xlu1 %548  ;;  %v430_v42 = vpop.permute.xlu0 %429 }
 0x245   :  { %3712 = vmatmul.msk.bf16.vlgmr.msra.gmra.mxu2 %vm406_vm3, %v397_v22  ;;  %v435_v43 = vsel %vm406_vm3, %v430_v42, 0  ;;  %v554_v44 = vsel %vm406_vm3, %v549_v41, 0 }
 0x246   :  { %537 = vmatpush.bf16.xpose.msrb.mxu2 %v528_v40  ;;  %444 = vmatpush.bf16.xpose.msra.mxu3 %v435_v43 }
 0x24c   :  { %v661_v46 = vpop.permute.xlu1 %660  ;;  %v638_v47 = vpop.permute.xlu0 %637 }
 0x24d   :  { %v666_v48 = vsel %vm406_vm3, %v661_v46, 0  ;;  %v643_v49 = vsel %vm406_vm3, %v638_v47, 0  ;;  %3713 = vmatmul.msk.bf16.vlgmr.msra.gmra.mxu3 %vm406_vm3, %v398_v31 }
 0x24e   :  { %563 = vmatpush.bf16.xpose.msrb.mxu3 %v554_v44  ;;  %652 = vmatpush.bf16.xpose.msra.mxu2 %v643_v49 }
 0x254   :  { %v750_v51 = vpop.permute.xlu1 %749  ;;  %v659_v55 = vpop.permute.xlu0 %658 }
 0x255   :  { %v755_v52 = vsel %vm406_vm3, %v750_v51, 0  ;;  %3716 = vmatmul.msk.bf16.vlgmr.msrb.gmra.mxu2 %vm406_vm3, %v521_v36 }
 0x256   :  { %675 = vmatpush.bf16.xpose.msra.mxu3 %v666_v48  ;;  %764 = vmatpush.bf16.xpose.msrb.mxu2 %v755_v52 }
 0x25c   :  { %v748_v56 = vpop.permute.xlu0 %747  ;;  %v771_v57 = vpop.permute.xlu1 %770 }
 0x25d   :  { %3717 = vmatmul.msk.bf16.vlgmr.msrb.gmra.mxu3 %vm406_vm3, %v547_v45 }
 0x25e   :  { %787 = vmatpush.bf16.xpose.msrb.mxu3 %v778_v54 }
 0x265   :  { %3720 = vmatmul.msk.bf16.vlgmr.msra.gmra.mxu2 %vm406_vm3, %v636_v50 }
 0x26d   :  { %3721 = vmatmul.msk.bf16.vlgmr.msra.gmra.mxu3 %vm406_vm3, %v659_v55 }
 0x275   :  { %3724 = vmatmul.msk.bf16.vlgmr.msrb.gmra.mxu2 %vm406_vm3, %v748_v56 }
 0x27d   :  { %3725 = vmatmul.msk.bf16.vlgmr.msrb.gmra.mxu3 %vm406_vm3, %v771_v57 }
 0x2c8   :  { %v422_v58 = vpop.f32.mrf.mxu2 }
 0x2c9   :  { %v450_v59 = vsel %vm406_vm3, %v422_v58, -inf }
 0x2ca   :  { %451 = vmax.xlane.f32.xlu2 %v450_v59 }
 0x2d0   :  { %v424_v60 = vpop.f32.mrf.mxu2  ;;  %v446_v61 = vpop.f32.mrf.mxu3 }
 0x2d1   :  { %v453_v62 = vsel %vm406_vm3, %v446_v61, -inf }
 0x2d2   :  { %454 = vmax.xlane.f32.xlu0 %v453_v62 }
 0x2d8   :  { %v448_v63 = vpop.f32.mrf.mxu3  ;;  %v539_v0 = vpop.f32.mrf.mxu2 }
 0x2d9   :  { %v569_v1 = vsel %vm406_vm3, %v539_v0, -inf }
 0x2da   :  { %570 = vmax.xlane.f32.xlu1 %v569_v1 }
 0x2e0   :  { %v541_v2 = vpop.f32.mrf.mxu2  ;;  %v565_v3 = vpop.f32.mrf.mxu3 }
 0x2e1   :  { %v572_v4 = vsel %vm406_vm3, %v565_v3, -inf }
 0x2e2   :  { %573 = vmax.xlane.f32.xlu2 %v572_v4 }
 0x2e8   :  { %v567_v5 = vpop.f32.mrf.mxu3  ;;  %v654_v6 = vpop.f32.mrf.mxu2 }
 0x2e9   :  { %v681_v7 = vsel %vm406_vm3, %v654_v6, -inf }
 0x2ea   :  { %682 = vmax.xlane.f32.xlu2 %v681_v7 }
 0x2f0   :  { %v656_v8 = vpop.f32.mrf.mxu2  ;;  %v4964_v9 = vpop.f32.mrf.mxu3 }
 0x2f1   :  { %v684_v10 = vsel %vm406_vm3, %v4964_v9, -inf }
 0x2f2   :  { %685 = vmax.xlane.f32.xlu0 %v684_v10 }
 0x2f8   :  { %v679_v11 = vpop.f32.mrf.mxu3  ;;  %v4968_v12 = vpop.f32.mrf.mxu2 }
 0x2f9   :  { %v793_v13 = vsel %vm406_vm3, %v4968_v12, -inf }
 0x2fa   :  { %794 = vmax.xlane.f32.xlu1 %v793_v13 }
 0x300   :  { %v768_v16 = vpop.f32.mrf.mxu2  ;;  %v789_v17 = vpop.f32.mrf.mxu3 }
 0x301   :  { %v796_v18 = vsel %vm406_vm3, %v789_v17, -inf }
 0x302   :  { %797 = vmax.xlane.f32.xlu2 %v796_v18 }
 0x306   :  { %496 = vrot.lane.b32.xlu0 %v4924_v33, %s4623_s15 }
 0x308   :  { %v791_v19 = vpop.f32.mrf.mxu3 }
 0x313   :  { %593 = vrot.lane.b32.xlu1 %v4917_v24, %s4624_s20 }
 0x31a   :  { %474 = vrot.lane.b32.xlu2 %v4917_v24, %s4623_s15 }
 0x31b   :  { %705 = vrot.lane.b32.xlu1 %v4917_v24, %s4625_s11 }
 0x33d   :  { %v452_v20 = vpop.xlane.xlu2 %451 }
 0x33e   :  { %v456_v21 = vsub.f32 %v422_v58, %v452_v20 }
 0x340   :  { %v458_v22 = vmul.f32 1.442695, %v456_v21 }
 0x342   :  { %4152 = vpow2.f32 %v458_v22 }
 0x345   :  { %v455_v23 = vpop.xlane.xlu0 %454 }
 0x346   :  { %v457_v25 = vsub.f32 %v446_v61, %v455_v23 }
 0x348   :  { %v4981_v26 = vpop.eup %4152  ;;  %v460_v27 = vmul.f32 1.442695, %v457_v25 }
 0x349   :  { %v462_v28 = vsel %vm406_vm3, %v4981_v26, 0.0 }
 0x34a   :  { %4154 = vpow2.f32 %v460_v27  ;;  %463 = vadd.xlane.f32.xlu0 %v462_v28 }
 0x34d   :  { %v571_v29 = vpop.xlane.xlu1 %570 }
 0x34e   :  { %v575_v30 = vsub.f32 %v539_v0, %v571_v29 }
 0x350   :  { %v4985_v31 = vpop.eup %4154  ;;  %v577_v32 = vmul.f32 1.442695, %v575_v30 }
 0x351   :  { %v465_v34 = vsel %vm406_vm3, %v4985_v31, 0.0 }
 0x352   :  { %4156 = vpow2.f32 %v577_v32  ;;  %466 = vadd.xlane.f32.xlu1 %v465_v34 }
 0x355   :  { %v574_v35 = vpop.xlane.xlu2 %573 }
 0x356   :  { %v576_v36 = vsub.f32 %v565_v3, %v574_v35 }
 0x358   :  { %v4989_v37 = vpop.eup %4156  ;;  %v579_v38 = vmul.f32 1.442695, %v576_v36 }
 0x359   :  { %v581_v39 = vsel %vm406_vm3, %v4989_v37, 0.0 }
 0x35a   :  { %4158 = vpow2.f32 %v579_v38  ;;  %582 = vadd.xlane.f32.xlu1 %v581_v39 }
 0x35d   :  { %v683_v40 = vpop.xlane.xlu2 %682 }
 0x35e   :  { %v687_v41 = vsub.f32 %v654_v6, %v683_v40  ;;  %614 = vrot.lane.b32.xlu0 %v4924_v33, %s4624_s20 }
 0x360   :  { %v4995_v42 = vpop.eup %4158  ;;  %v689_v43 = vmul.f32 1.442695, %v687_v41 }
 0x361   :  { %v584_v44 = vsel %vm406_vm3, %v4995_v42, 0.0 }
 0x362   :  { %4160 = vpow2.f32 %v689_v43  ;;  %585 = vadd.xlane.f32.xlu1 %v584_v44 }
 0x365   :  { %v686_v47 = vpop.xlane.xlu0 %685 }
 0x366   :  { %v688_v49 = vsub.f32 %v4964_v9, %v686_v47 }
 0x368   :  { %v4999_v45 = vpop.eup %4160  ;;  %v691_v54 = vmul.f32 1.442695, %v688_v49 }
 0x369   :  { %v693_v46 = vsel %vm406_vm3, %v4999_v45, 0.0 }
 0x36a   :  { %694 = vadd.xlane.f32.xlu2 %v693_v46 }
 0x36d   :  { %v795_v55 = vpop.xlane.xlu1 %794 }
 0x36e   :  { %v799_v0 = vsub.f32 %v4968_v12, %v795_v55 }
 0x370   :  { %v801_v1 = vmul.f32 1.442695, %v799_v0 }
 0x375   :  { %v798_v48 = vpop.xlane.xlu2 %797 }
 0x376   :  { %v800_v50 = vsub.f32 %v789_v17, %v798_v48 }
 0x378   :  { %v803_v51 = vmul.f32 1.442695, %v800_v50  ;;  %v497_v52 = vpop.permute.xlu0 %496 }
 0x379   :  { %v502_v53 = vsel %vm479_vm4, %v497_v52, 0 }
 0x37a   :  { %4162 = vpow2.f32 %v803_v51  ;;  %511 = vmatpush.bf16.msrb.mxu1 %v502_v53 }
 0x37b   :  { %726 = vrot.lane.b32.xlu1 %v4924_v33, %s4625_s11  ;;  %4164 = vpow2.f32 %v691_v54 }
 0x37c   :  { %4166 = vpow2.f32 %v801_v1 }
 0x37d   :  { %v475_v56 = vpop.permute.xlu2 %474 }
 0x37e   :  { %v481_v57 = vsel %vm479_vm4, %v475_v56, 0 }
 0x37f   :  { %490 = vmatpush.bf16.msrb.mxu0 %v481_v57 }
 0x380   :  { %v5008_v58 = vpop.eup %4162 }
 0x381   :  { %v808_v59 = vsel %vm406_vm3, %v5008_v58, 0.0  ;;  %v4165_v60 = vpop.eup %4164 }
 0x382   :  { %809 = vadd.xlane.f32.xlu2 %v808_v59  ;;  %v696_v63 = vsel %vm406_vm3, %v4165_v60, 0.0  ;;  %v5019_v2 = vpop.eup %4166 }
 0x383   :  { %v805_v3 = vsel %vm406_vm3, %v5019_v2, 0.0 }
 0x385   :  { %v594_v61 = vpop.permute.xlu1 %593 }
 0x386   :  { %v599_v62 = vsel %vm479_vm4, %v594_v61, 0 }
 0x387   :  { %608 = vmatpush.bf16.msra.mxu0 %v599_v62 }
 0x388   :  { %697 = vadd.xlane.f32.xlu0 %v696_v63 }
 0x38d   :  { %v706_v4 = vpop.permute.xlu1 %705 }
 0x39a   :  { %838 = vrot.lane.b32.xlu2 %v4924_v33, %s4626_s16  ;;  %v711_v33 = vsel %vm479_vm4, %v706_v4, 0  ;;  %v3954_v4 = vld [vmem:[%s4673_s29] sm:$0xff] }
 0x39c   :  { %817 = vrot.lane.b32.xlu0 %v4917_v24, %s4626_s16 }
 0x3a5   :  { %806 = vadd.xlane.f32.xlu1 %v805_v3  ;;  %v3955_v3 = vld [vmem:[%s4673_s29 + $0x8] sm:$0xff]  ;;  %s5739_s29 = sld [smem:[#allocation20_spill]] }
 0x3a6   :  { %916 = vmatpush.bf16.msra.mxu2 %v3955_v3 }
 0x3aa   :  { %917 = vmatpush.bf16.msra.mxu2 %v3954_v4 }
 0x3bd   :  { %v464_v5 = vpop.xlane.xlu0 %463 }
 0x3be   :  { %4168 = vrcp.f32 %v464_v5 }
 0x3c4   :  { %v4169_v6 = vpop.eup %4168 }
 0x3c5   :  { %v470_v7 = vmul.f32 %v4169_v6, %v4981_v26  ;;  %v467_v8 = vpop.xlane.xlu1 %466 }
 0x3c6   :  { %4170 = vrcp.f32 %v467_v8 }
 0x3c7   :  { %v472_v9 = vpack.c.bf16 %v470_v7, %v470_v7 }
 0x3c9   :  { %3714 = vmatmul.msk.bf16.vlgmr.msrb.gmra.mxu0 %vm406_vm3, %v472_v9 }
 0x3ca   :  { %720 = vmatpush.bf16.msrb.mxu0 %v711_v33 }
 0x3cc   :  { %v4171_v24 = vpop.eup %4170 }
 0x3cd   :  { %v583_v10 = vpop.xlane.xlu1 %582  ;;  %v471_v11 = vmul.f32 %v4171_v24, %v4985_v31 }
 0x3ce   :  { %4172 = vrcp.f32 %v583_v10 }
 0x3cf   :  { %v473_v12 = vpack.c.bf16 %v471_v11, %v471_v11 }
 0x3d0   :  { %v615_v13 = vpop.permute.xlu0 %614 }
 0x3d1   :  { %v620_v16 = vsel %vm479_vm4, %v615_v13, 0  ;;  %3715 = vmatmul.msk.bf16.vlgmr.msrb.gmra.mxu1 %vm406_vm3, %v473_v12 }
 0x3d2   :  { %629 = vmatpush.bf16.msra.mxu1 %v620_v16 }
 0x3d4   :  { %v4173_v17 = vpop.eup %4172 }
 0x3d5   :  { %v589_v18 = vmul.f32 %v4173_v17, %v4989_v37  ;;  %v586_v19 = vpop.xlane.xlu1 %585 }
 0x3d6   :  { %4174 = vrcp.f32 %v586_v19 }
 0x3d7   :  { %v591_v20 = vpack.c.bf16 %v589_v18, %v589_v18 }
 0x3d9   :  { %3718 = vmatmul.msk.bf16.vlgmr.msra.gmra.mxu0 %vm406_vm3, %v591_v20 }
 0x3dc   :  { %v4175_v21 = vpop.eup %4174 }
 0x3dd   :  { %v590_v22 = vmul.f32 %v4175_v21, %v4995_v42  ;;  %v695_v23 = vpop.xlane.xlu2 %694  ;;  %v4126_v21 = vld [vmem:[%s4678_s3] ss:$0 sm:$0xff]  ;;  %s5740_s3 = sld [smem:[#allocation21_spill]] }
 0x3de   :  { %4176 = vrcp.f32 %v695_v23 }
 0x3df   :  { %v592_v25 = vpack.c.bf16 %v590_v22, %v590_v22 }
 0x3e1   :  { %3719 = vmatmul.msk.bf16.vlgmr.msra.gmra.mxu1 %vm406_vm3, %v592_v25 }
 0x3e4   :  { %v4177_v26 = vpop.eup %4176 }
 0x3e5   :  { %v701_v27 = vmul.f32 %v4177_v26, %v4999_v45 }
 0x3e7   :  { %v703_v28 = vpack.c.bf16 %v701_v27, %v701_v27 }
 0x3e9   :  { %3722 = vmatmul.msk.bf16.vlgmr.msrb.gmra.mxu0 %vm406_vm3, %v703_v28 }
 0x3ed   :  { %v727_v29 = vpop.permute.xlu1 %726 }
 0x3ee   :  { %v732_v30 = vsel %vm479_vm4, %v727_v29, 0 }
 0x3ef   :  { %741 = vmatpush.bf16.msrb.mxu1 %v732_v30 }
 0x3f5   :  { %v810_v31 = vpop.xlane.xlu2 %809 }
 0x3fb   :  { %v698_v32 = vpop.xlane.xlu0 %697 }
 0x3fc   :  { %4178 = vrcp.f32 %v698_v32 }
 0x3fd   :  { %v839_v34 = vpop.permute.xlu2 %838  ;;  %4180 = vrcp.f32 %v810_v31  ;;  %v4630_v31 = vmov 32.0  }
 0x3fe   :  { %v844_v35 = vsel %vm479_vm4, %v839_v34, 0 }
 0x3ff   :  { %853 = vmatpush.bf16.msra.mxu1 %v844_v35 }
 0x402   :  { %v4179_v36 = vpop.eup %4178 }
 0x403   :  { %v702_v37 = vmul.f32 %v4179_v36, %v4165_v60  ;;  %v4181_v39 = vpop.eup %4180 }
 0x404   :  { %v814_v42 = vmul.f32 %v4181_v39, %v5008_v58 }
 0x405   :  { %v704_v38 = vpack.c.bf16 %v702_v37, %v702_v37 }
 0x406   :  { %v816_v43 = vpack.c.bf16 %v814_v42, %v814_v42 }
 0x407   :  { %3723 = vmatmul.msk.bf16.vlgmr.msrb.gmra.mxu1 %vm406_vm3, %v704_v38 }
 0x40e   :  { %v818_v40 = vpop.permute.xlu0 %817 }
 0x40f   :  { %v823_v41 = vsel %vm479_vm4, %v818_v40, 0 }
 0x410   :  { %832 = vmatpush.bf16.msra.mxu0 %v823_v41 }
 0x417   :  { %3727 = vmatmul.msk.bf16.vlgmr.msra.gmra.mxu1 %vm406_vm3, %v816_v43 }
 0x418   :  { %v807_v44 = vpop.xlane.xlu1 %806 }
 0x419   :  { %4182 = vrcp.f32 %v807_v44 }
 0x41a   :  { %4184 = vrcp.f32 %v4630_v31 }
 0x41f   :  { %v4183_v45 = vpop.eup %4182 }
 0x420   :  { %v813_v46 = vmul.f32 %v4183_v45, %v5019_v2  ;;  %v4185_v32 = vpop.eup %4184 }
 0x421   :  { %v933_v34 = vmul.f32 32.0, %v4185_v32  ;;  %vm937_vm7 = vweird.f32 %v4185_v32 }
 0x422   :  { %v815_v47 = vpack.c.bf16 %v813_v46, %v813_v46 }
 0x423   :  { %v934_v35 = vsub.f32 1.0, %v933_v34 }
 0x424   :  { %3726 = vmatmul.msk.bf16.vlgmr.msra.gmra.mxu0 %vm406_vm3, %v815_v47 }
 0x425   :  { %v935_v36 = vmul.f32 %v4185_v32, %v934_v35 }
 0x427   :  { %v936_v37 = vadd.f32 %v4185_v32, %v935_v36 }
 0x429   :  { %v5060_v38 = vsel %vm937_vm7, %v4185_v32, %v936_v37 }
 0x446   :  { %v492_v48 = vpop.f32.mrf.mxu0 }
 0x44e   :  { %v494_v49 = vpop.f32.mrf.mxu0  ;;  %v513_v50 = vpop.f32.mrf.mxu1 }
 0x44f   :  { %v3957_v49 = vld [vmem:[%s4693_s19 + $0x8] sm:$0xff] }
 0x450   :  { %1012 = vmatpush.bf16.msra.mxu3 %v3957_v49 }
 0x456   :  { %v515_v51 = vpop.f32.mrf.mxu1  ;;  %v610_v52 = vpop.f32.mrf.mxu0 }
 0x45e   :  { %v612_v53 = vpop.f32.mrf.mxu0  ;;  %v631_v54 = vpop.f32.mrf.mxu1 }
 0x45f   :  { %v4069_v55 = vpack.i.bf16 %v631_v54, %v610_v52  ;;  %v3956_v52 = vld [vmem:[%s4693_s19] sm:$0xff]  ;;  %s5741_s19 = sld [smem:[#allocation22_spill]] }
 0x460   :  { %1013 = vmatpush.bf16.msra.mxu3 %v3956_v52 }
 0x461   :  { %4070 = vrot.lane.b32.xlu0 %v4069_v55, %s4627_s18 }
 0x465   :  { %v3962_v31 = vld [vmem:[%s5741_s19 + $0x20] sm:$0xff]  ;;  %v3961_v37 = vld [vmem:[%s5741_s19 + $0x18] sm:$0xff] }
 0x466   :  { %v633_v56 = vpop.f32.mrf.mxu1  ;;  %v722_v57 = vpop.f32.mrf.mxu0 }
 0x46e   :  { %v724_v58 = vpop.f32.mrf.mxu0 }
 0x484   :  { %v743_v59 = vpop.f32.mrf.mxu1 }
 0x485   :  { %v4074_v60 = vpack.i.bf16 %v743_v59, %v722_v57 }
 0x487   :  { %4075 = vrot.lane.b32.xlu2 %v4074_v60, %s4628_s22 }
 0x48c   :  { %v745_v61 = vpop.f32.mrf.mxu1 }
 0x494   :  { %v855_v62 = vpop.f32.mrf.mxu1 }
 0x49c   :  { %v857_v63 = vpop.f32.mrf.mxu1 }
 0x4a1   :  { %v834_v0 = vpop.f32.mrf.mxu0 }
 0x4a2   :  { %v4079_v1 = vpack.i.bf16 %v855_v62, %v834_v0 }
 0x4a4   :  { %4080 = vrot.lane.b32.xlu0 %v4079_v1, %s4629_s23 }
 0x4a9   :  { %v836_v2 = vpop.f32.mrf.mxu0 }
 0x4d3   :  { %v4071_v5 = vpop.permute.xlu0 %4070 }
 0x4d4   :  { %v4073_v7 = vunpack.i.h.bf16 %v4071_v5  ;;  %v4072_v8 = vunpack.i.l.bf16 %v4071_v5  ;;  %v4127_v5 = vld [vmem:[%s5739_s29] ss:$0 sm:$0xff]  ;;  %s5767_s29 = sld [smem:[#allocation46_spill]] }
 0x4d6   :  { %v884_v10 = vsel %vm406_vm3, %v513_v50, %v4073_v7  ;;  %v883_v11 = vsel %vm406_vm3, %v492_v48, %v4072_v8 }
 0x4e1   :  { %v4076_v6 = vpop.permute.xlu2 %4075 }
 0x4e2   :  { %v4078_v9 = vunpack.i.h.bf16 %v4076_v6  ;;  %v4077_v33 = vunpack.i.l.bf16 %v4076_v6 }
 0x4e4   :  { %v887_v16 = vsel %vm885_vm5, %v884_v10, %v4078_v9  ;;  %v886_v17 = vsel %vm885_vm5, %v883_v11, %v4077_v33  ;;  %v4128_v9 = vld [vmem:[%s5740_s3] ss:$0 sm:$0xff]  ;;  %s5768_s3 = sld [smem:[#allocation47_spill]] }
 0x516   :  { %v4081_v24 = vpop.permute.xlu0 %4080 }
 0x517   :  { %v4083_v12 = vunpack.i.h.bf16 %v4081_v24  ;;  %v4082_v13 = vunpack.i.l.bf16 %v4081_v24 }
 0x519   :  { %v890_v18 = vsel %vm888_vm6, %v887_v16, %v4083_v12  ;;  %v889_v19 = vsel %vm888_vm6, %v886_v17, %v4082_v13  ;;  %v4129_v16 = vld [vmem:[#allocation5] ss:$0 sm:$0xff] }
 0x51a   :  { %v891_v20 = vpack.c.bf16 %v890_v18, %v889_v19 }
 0x51c   :  { %3736 = vmatmul.msk.bf16.vlgmr.msra.gmra.mxu2 %vm377_vm2, %v891_v20  ;;  %v3965_v20 = vld [vmem:[%s5741_s19 + $0x38] sm:$0xff] }
 0x51d   :  { %1152 = vmatpush.bf16.msrb.mxu0 %v3965_v20 }
 0x59f   :  { %v919_v22 = vpop.f32.mrf.mxu2 }
 0x5a0   :  { %v920_v23 = vadd.f32 %v4126_v21, %v919_v22 }
 0x5a2   :  { %v924_v25 = vadd.f32 %v920_v23, %v4910_v14  ;;  %v3964_v23 = vld [vmem:[%s5741_s19 + $0x30] sm:$0xff] }
 0x5a3   :  { %1153 = vmatpush.bf16.msrb.mxu0 %v3964_v23 }
 0x5a4   :  { %v926_v26 = vsel %vm377_vm2, %v924_v25, 0.0 }
 0x5a5   :  { %927 = vadd.xlane.f32.xlu1 %v926_v26 }
 0x5a7   :  { %v921_v27 = vpop.f32.mrf.mxu2 }
 0x5a8   :  { %v922_v28 = vadd.f32 %v4126_v21, %v921_v27 }
 0x5aa   :  { %v925_v29 = vadd.f32 %v922_v28, %v4912_v15  ;;  %v3963_v28 = vld [vmem:[%s5741_s19 + $0x28] sm:$0xff] }
 0x5ab   :  { %1154 = vmatpush.bf16.msrb.mxu0 %v3963_v28 }
 0x5ac   :  { %v929_v30 = vsel %vm377_vm2, %v925_v29, 0.0 }
 0x5ad   :  { %930 = vadd.xlane.f32.xlu2 %v929_v30 }
 0x5af   :  { %1155 = vmatpush.bf16.msrb.mxu0 %v3962_v31 }
 0x5b3   :  { %1156 = vmatpush.bf16.msrb.mxu0 %v3961_v37 }
 0x618   :  { %v928_v39 = vpop.xlane.xlu1 %927 }
 0x619   :  { %v939_v40 = vmul.f32 %v5060_v38, %v928_v39 }
 0x61b   :  { %v941_v41 = vsub.f32 %v924_v25, %v939_v40 }
 0x61d   :  { %v943_v42 = vmul.f32 %v941_v41, %v941_v41 }
 0x61f   :  { %v945_v43 = vsel %vm377_vm2, %v943_v42, 0.0 }
 0x620   :  { %v931_v44 = vpop.xlane.xlu2 %930  ;;  %946 = vadd.xlane.f32.xlu0 %v945_v43  ;;  %v3960_v43 = vld [vmem:[%s5741_s19 + $0x10] sm:$0xff] }
 0x621   :  { %v940_v45 = vmul.f32 %v5060_v38, %v931_v44  ;;  %1157 = vmatpush.bf16.msrb.mxu0 %v3960_v43 }
 0x623   :  { %v942_v46 = vsub.f32 %v925_v29, %v940_v45 }
 0x625   :  { %v944_v47 = vmul.f32 %v942_v46, %v942_v46 }
 0x627   :  { %v948_v48 = vsel %vm377_vm2, %v944_v47, 0.0 }
 0x628   :  { %949 = vadd.xlane.f32.xlu1 %v948_v48 }
 0x693   :  { %v947_v50 = vpop.xlane.xlu0 %946 }
 0x694   :  { %v951_v51 = vmul.f32 %v947_v50, %v5060_v38  ;;  %v3959_v50 = vld [vmem:[%s5741_s19 + $0x8] sm:$0xff] }
 0x695   :  { %1158 = vmatpush.bf16.msrb.mxu0 %v3959_v50 }
 0x696   :  { %v953_v53 = vadd.f32 1e-05, %v951_v51 }
 0x698   :  { %4186 = vrsqrt.f32 %v953_v53  ;;  %vm961_vm9 = vweird.f32 %v953_v53 }
 0x69b   :  { %v950_v54 = vpop.xlane.xlu1 %949 }
 0x69c   :  { %v952_v55 = vmul.f32 %v950_v54, %v5060_v38 }
 0x69e   :  { %v4187_v56 = vpop.eup %4186  ;;  %v954_v57 = vadd.f32 1e-05, %v952_v55 }
 0x69f   :  { %v956_v58 = vmul.f32 %v4187_v56, %v953_v53  ;;  %vm962_vm8 = vweird.f32 %v4187_v56 }
 0x6a0   :  { %4188 = vrsqrt.f32 %v954_v57  ;;  %vm963_vm10 = vmor %vm961_vm9, %vm962_vm8  ;;  %vm971_vm12 = vweird.f32 %v954_v57 }
 0x6a1   :  { %v957_v59 = vmul.f32 %v4187_v56, %v956_v58  ;;  %v3958_v58 = vld [vmem:[%s5741_s19] sm:$0xff]  ;;  %s4633_s19 = smov 32  }
 0x6a2   :  { %1159 = vmatpush.bf16.msrb.mxu0 %v3958_v58 }
 0x6a3   :  { %v958_v60 = vmul.f32 0.5, %v957_v59 }
 0x6a5   :  { %v959_v61 = vsub.f32 1.5, %v958_v60 }
 0x6a6   :  { %v4189_v62 = vpop.eup %4188 }
 0x6a7   :  { %v960_v63 = vmul.f32 %v4187_v56, %v959_v61  ;;  %v966_v0 = vmul.f32 %v4189_v62, %v954_v57  ;;  %vm972_vm11 = vweird.f32 %v4189_v62 }
 0x6a8   :  { %vm973_vm13 = vmor %vm971_vm12, %vm972_vm11 }
 0x6a9   :  { %v967_v1 = vmul.f32 %v4189_v62, %v966_v0  ;;  %v964_v2 = vsel %vm963_vm10, %v4187_v56, %v960_v63 }
 0x6aa   :  { %v975_v6 = vmul.f32 %v964_v2, %v941_v41 }
 0x6ab   :  { %v968_v3 = vmul.f32 0.5, %v967_v1 }
 0x6ac   :  { %v980_v33 = vmul.f32 %v4127_v5, %v975_v6 }
 0x6ad   :  { %v969_v4 = vsub.f32 1.5, %v968_v3 }
 0x6ae   :  { %v5072_v11 = vadd.f32 %v4128_v9, %v980_v33 }
 0x6af   :  { %v970_v7 = vmul.f32 %v4189_v62, %v969_v4 }
 0x6b1   :  { %v974_v8 = vsel %vm973_vm13, %v4189_v62, %v970_v7 }
 0x6b2   :  { %v976_v24 = vmul.f32 %v974_v8, %v942_v46 }
 0x6b4   :  { %v981_v10 = vmul.f32 %v4127_v5, %v976_v24 }
 0x6b6   :  { %v5074_v12 = vadd.f32 %v4128_v9, %v981_v10 }
 0x6b8   :  { %v987_v13 = vpack.c.bf16 %v5074_v12, %v5072_v11 }
 0x6ba   :  { %3745 = vmatmul.msk.bf16.vlgmr.msra.gmra.mxu3 %vm377_vm2, %v987_v13 }
 0x73d   :  { %v1015_v17 = vpop.f32.mrf.mxu3 }
 0x73e   :  { %v5079_v18 = vadd.f32 %v4129_v16, %v1015_v17 }
 0x740   :  { %v5082_v19 = vmul.f32 0.70710677, %v5079_v18 }
 0x742   :  { %v1028_v21 = vand.u32 2147483647, %v5082_v19  ;;  %vm1024_vm12 = vcmp.ge.f32.partialorder %v5082_v19, 0.0 }
 0x744   :  { %v1030_v22 = vmul.f32 0.3275911, %v1028_v21  ;;  %v1082_v52 = vsub.f32 0.0, %v1028_v21 }
 0x745   :  { %v1017_v25 = vpop.f32.mrf.mxu3 }
 0x746   :  { %v1032_v26 = vadd.f32 1.0, %v1030_v22  ;;  %v5087_v27 = vadd.f32 %v4129_v16, %v1017_v25  ;;  %v1084_v60 = vmul.f32 %v1082_v52, %v1028_v21 }
 0x748   :  { %4190 = vrcp.f32 %v1032_v26  ;;  %v5091_v29 = vmul.f32 0.70710677, %v5087_v27  ;;  %v1045_v40 = vand.u32 2147483648, %v1032_v26  ;;  %v1043_v42 = vand.u32 2147483647, %v1032_v26 }
 0x749   :  { %vm1039_vm15 = vweird.f32 %v1032_v26  ;;  %v1086_v2 = vmul.f32 1.442695, %v1084_v60  ;;  %v1021_v19 = vmul.f32 0.5, %v5087_v27 }
 0x74a   :  { %v1029_v30 = vand.u32 2147483647, %v5091_v29  ;;  %v1046_v45 = vor.u32 1.1754944e-38, %v1045_v40  ;;  %vm1044_vm7 = vcmp.eq.f32.partialorder %v1043_v42, 8.507059e+37  ;;  %vm1025_vm13 = vcmp.ge.f32.partialorder %v5091_v29, 0.0 }
 0x74c   :  { %v1031_v32 = vmul.f32 0.3275911, %v1029_v30  ;;  %v1083_v4 = vsub.f32 0.0, %v1029_v30 }
 0x74e   :  { %v4191_v34 = vpop.eup %4190  ;;  %v1033_v36 = vadd.f32 1.0, %v1031_v32  ;;  %v1085_v9 = vmul.f32 %v1083_v4, %v1029_v30  ;;  %v4631_v32 = vmov -1.0  }
 0x74f   :  { %v1035_v35 = vmul.f32 %v4191_v34, %v1032_v26  ;;  %vm1040_vm14 = vweird.f32 %v4191_v34  ;;  %v1026_v30 = vsel %vm1024_vm12, 1.0, %v4631_v32  ;;  %v1027_v37 = vsel %vm1025_vm13, 1.0, %v4631_v32 }
 0x750   :  { %4192 = vrcp.f32 %v1033_v36  ;;  %vm1041_vm1 = vmor %vm1039_vm15, %vm1040_vm14  ;;  %v1060_v55 = vand.u32 2147483648, %v1033_v36  ;;  %v1058_v57 = vand.u32 2147483647, %v1033_v36  ;;  %vm1054_vm9 = vweird.f32 %v1033_v36 }
 0x751   :  { %v1036_v39 = vsub.f32 1.0, %v1035_v35  ;;  %4194 = vpow2.f32 %v1086_v2  ;;  %v1088_v16 = vmul.f32 1.442695, %v1085_v9 }
 0x752   :  { %v1061_v63 = vor.u32 1.1754944e-38, %v1060_v55  ;;  %vm1059_vm11 = vcmp.eq.f32.partialorder %v1058_v57, 8.507059e+37 }
 0x753   :  { %v1037_v41 = vmul.f32 %v4191_v34, %v1036_v39  ;;  %4196 = vpow2.f32 %v1088_v16 }
 0x755   :  { %v1038_v44 = vadd.f32 %v4191_v34, %v1037_v41  ;;  %v1020_v41 = vmul.f32 0.5, %v5079_v18 }
 0x756   :  { %v4193_v46 = vpop.eup %4192 }
 0x757   :  { %v1042_v47 = vsel %vm1041_vm1, %v4191_v34, %v1038_v44  ;;  %v1050_v49 = vmul.f32 %v4193_v46, %v1033_v36  ;;  %vm1055_vm8 = vweird.f32 %v4193_v46  ;;  %v4195_v20 = vpop.eup %4194 }
 0x758   :  { %v1047_v48 = vsel %vm1044_vm7, %v1046_v45, %v1042_v47  ;;  %vm1056_vm10 = vmor %vm1054_vm9, %vm1055_vm8 }
 0x759   :  { %v1064_v51 = vmul.f32 1.0614054, %v1047_v48  ;;  %v1051_v53 = vsub.f32 1.0, %v1050_v49  ;;  %v4197_v31 = vpop.eup %4196 }
 0x75b   :  { %v1066_v54 = vadd.f32 -1.4531521, %v1064_v51  ;;  %v1052_v56 = vmul.f32 %v4193_v46, %v1051_v53 }
 0x75d   :  { %v1068_v59 = vmul.f32 %v1066_v54, %v1047_v48  ;;  %v1053_v61 = vadd.f32 %v4193_v46, %v1052_v56 }
 0x75f   :  { %v1070_v62 = vadd.f32 1.4214138, %v1068_v59  ;;  %v1057_v0 = vsel %vm1056_vm10, %v4193_v46, %v1053_v61  ;;  %v4130_v46 = vld [vmem:[#allocation7] ss:$0 sm:$0xff] }
 0x760   :  { %v1062_v3 = vsel %vm1059_vm11, %v1061_v63, %v1057_v0  ;;  %v3966_v0 = vld [vmem:[%s5742_s25] sm:$0xff] }
 0x761   :  { %v1072_v1 = vmul.f32 %v1070_v62, %v1047_v48  ;;  %v1065_v5 = vmul.f32 1.0614054, %v1062_v3 }
 0x763   :  { %v1074_v6 = vadd.f32 -0.28449672, %v1072_v1  ;;  %v1067_v7 = vadd.f32 -1.4531521, %v1065_v5 }
 0x765   :  { %v1076_v8 = vmul.f32 %v1074_v6, %v1047_v48  ;;  %v1069_v33 = vmul.f32 %v1067_v7, %v1062_v3 }
 0x767   :  { %v1078_v24 = vadd.f32 0.2548296, %v1076_v8  ;;  %v1071_v10 = vadd.f32 1.4214138, %v1069_v33 }
 0x769   :  { %v1080_v13 = vmul.f32 %v1078_v24, %v1047_v48  ;;  %v1073_v17 = vmul.f32 %v1071_v10, %v1062_v3 }
 0x76b   :  { %v1090_v21 = vmul.f32 %v4195_v20, %v1080_v13  ;;  %v1075_v22 = vadd.f32 -0.28449672, %v1073_v17  ;;  %v4131_v20 = vld [vmem:[%s5743_s24] ss:$0 sm:$0xff]  ;;  %s3642_s24 = sshll.u32 %s4878_s8, 4  ;;  %s3643_s24 = int_to_ptr.hbm [resolvable:$true] %s3642_s24 }
 0x76d   :  { %v1077_v23 = vmul.f32 %v1075_v22, %v1062_v3  ;;  %v1092_v25 = vsub.f32 1.0, %v1090_v21 }
 0x76f   :  { %v1079_v26 = vadd.f32 0.2548296, %v1077_v23  ;;  %v1094_v34 = vmul.f32 %v1092_v25, %v1026_v30  ;;  %v4132_v25 = vld [vmem:[%s5744_s26] ss:$0 sm:$0xff]  ;;  %s4540_s26 = sshra.s32 %s3643_s24, 4  ;;  %s4541_s26 = int_to_ptr.hbm [resolvable:$true] %s4540_s26 }
 0x770   :  { %p4545_p8 = scmp.lt.s32.totalorder %s4541_s26, %s4878_s8 }
 0x771   :  { %v1081_v28 = vmul.f32 %v1079_v26, %v1062_v3  ;;  %v1096_v39 = vadd.f32 1.0, %v1094_v34 }
 0x773   :  { %v1091_v35 = vmul.f32 %v4197_v31, %v1081_v28  ;;  %v1098_v43 = vmul.f32 %v1096_v39, %v1020_v41 }
 0x775   :  { %v1093_v36 = vsub.f32 1.0, %v1091_v35 }
 0x777   :  { %v1095_v40 = vmul.f32 %v1093_v36, %v1027_v37  ;;  %v4133_v36 = vld [vmem:[%s5745_s1] ss:$0 sm:$0xff]  ;;  %s4542_s1 = scalar_lea.hbm %s4541_s26, 2 }
 0x778   :  { %p4543_p7 = scmp.ne.s32.totalorder %s4541_s26, %s4542_s1 }
 0x779   :  { %v1097_v42 = vadd.f32 1.0, %v1095_v40 }
 0x77b   :  { %v1099_v44 = vmul.f32 %v1097_v42, %v1021_v19 }
 0x77d   :  { %v1100_v45 = vpack.c.bf16 %v1099_v44, %v1098_v43 }
 0x77f   :  { %1160 = vmatmul.bf16.vlgmr.msrb.gmra.mxu0 %v1100_v45 }
 0x7fc   :  { %v1161_v47 = vpop.f32.mrf.mxu0 }
 0x7fd   :  { %v1162_v48 = vadd.f32 %v4130_v46, %v1161_v47 }
 0x7ff   :  { %v1166_v29 = vadd.f32 %v1162_v48, %v5072_v11 }
 0x801   :  { %v1168_v49 = vsel %vm377_vm2, %v1166_v29, 0.0 }
 0x802   :  { %1169 = vadd.xlane.f32.xlu1 %v1168_v49 }
 0x804   :  { %v1163_v50 = vpop.f32.mrf.mxu0 }
 0x805   :  { %v1164_v51 = vadd.f32 %v4130_v46, %v1163_v50 }
 0x807   :  { %v1167_v18 = vadd.f32 %v1164_v51, %v5074_v12  ;;  %v3967_v12 = vld [vmem:[%s5742_s25 + $0x8] sm:$0xff] }
 0x808   :  { %1283 = vmatpush.bf16.msrb.mxu1 %v3967_v12 }
 0x809   :  { %v1171_v27 = vsel %vm377_vm2, %v1167_v18, 0.0 }
 0x80a   :  { %1172 = vadd.xlane.f32.xlu1 %v1171_v27 }
 0x80c   :  { %1284 = vmatpush.bf16.msrb.mxu1 %v3966_v0 }
 0x875   :  { %v1170_v52 = vpop.xlane.xlu1 %1169 }
 0x876   :  { %v1174_v53 = vmul.f32 %v1170_v52, %v5060_v38 }
 0x878   :  { %v1176_v54 = vsub.f32 %v1166_v29, %v1174_v53 }
 0x87a   :  { %v1178_v55 = vmul.f32 %v1176_v54, %v1176_v54 }
 0x87c   :  { %v1180_v56 = vsel %vm377_vm2, %v1178_v55, 0.0 }
 0x87d   :  { %1181 = vadd.xlane.f32.xlu1 %v1180_v56  ;;  %v1173_v11 = vpop.xlane.xlu1 %1172 }
 0x87e   :  { %v1175_v57 = vmul.f32 %v1173_v11, %v5060_v38 }
 0x880   :  { %v1177_v58 = vsub.f32 %v1167_v18, %v1175_v57 }
 0x882   :  { %v1179_v59 = vmul.f32 %v1177_v58, %v1177_v58 }
 0x884   :  { %v1183_v60 = vsel %vm377_vm2, %v1179_v59, 0.0 }
 0x885   :  { %1184 = vadd.xlane.f32.xlu1 %v1183_v60 }
 0x8f0   :  { %v1182_v61 = vpop.xlane.xlu1 %1181 }
 0x8f1   :  { %v1186_v62 = vmul.f32 %v1182_v61, %v5060_v38 }
 0x8f3   :  { %v1188_v63 = vadd.f32 1e-05, %v1186_v62 }
 0x8f5   :  { %4198 = vrsqrt.f32 %v1188_v63  ;;  %vm1196_vm15 = vweird.f32 %v1188_v63 }
 0x8f8   :  { %v1185_v1 = vpop.xlane.xlu1 %1184 }
 0x8f9   :  { %v1187_v2 = vmul.f32 %v1185_v1, %v5060_v38 }
 0x8fb   :  { %v4199_v3 = vpop.eup %4198  ;;  %v1189_v4 = vadd.f32 1e-05, %v1187_v2 }
 0x8fc   :  { %v1191_v5 = vmul.f32 %v4199_v3, %v1188_v63  ;;  %vm1197_vm14 = vweird.f32 %v4199_v3 }
 0x8fd   :  { %4200 = vrsqrt.f32 %v1189_v4  ;;  %vm1198_vm1 = vmor %vm1196_vm15, %vm1197_vm14  ;;  %vm1206_vm8 = vweird.f32 %v1189_v4 }
 0x8fe   :  { %v1192_v6 = vmul.f32 %v4199_v3, %v1191_v5 }
 0x900   :  { %v1193_v7 = vmul.f32 0.5, %v1192_v6 }
 0x902   :  { %v1194_v8 = vsub.f32 1.5, %v1193_v7 }
 0x903   :  { %v4201_v9 = vpop.eup %4200 }
 0x904   :  { %v1195_v33 = vmul.f32 %v4199_v3, %v1194_v8  ;;  %v1201_v24 = vmul.f32 %v4201_v9, %v1189_v4  ;;  %vm1207_vm7 = vweird.f32 %v4201_v9 }
 0x905   :  { %vm1208_vm9 = vmor %vm1206_vm8, %vm1207_vm7 }
 0x906   :  { %v1202_v10 = vmul.f32 %v4201_v9, %v1201_v24  ;;  %v1199_v13 = vsel %vm1198_vm1, %v4199_v3, %v1195_v33 }
 0x907   :  { %v1210_v21 = vmul.f32 %v1199_v13, %v1176_v54 }
 0x908   :  { %v1203_v16 = vmul.f32 0.5, %v1202_v10 }
 0x909   :  { %v1215_v26 = vmul.f32 %v4131_v20, %v1210_v21 }
 0x90a   :  { %v1204_v17 = vsub.f32 1.5, %v1203_v16 }
 0x90b   :  { %v5119_v30 = vadd.f32 %v4132_v25, %v1215_v26 }
 0x90c   :  { %v1205_v22 = vmul.f32 %v4201_v9, %v1204_v17 }
 0x90e   :  { %v1209_v23 = vsel %vm1208_vm9, %v4201_v9, %v1205_v22 }
 0x90f   :  { %v1211_v28 = vmul.f32 %v1209_v23, %v1177_v58 }
 0x911   :  { %v1216_v31 = vmul.f32 %v4131_v20, %v1211_v28 }
 0x913   :  { %v5121_v34 = vadd.f32 %v4132_v25, %v1216_v31 }
 0x915   :  { %v1258_v35 = vpack.c.bf16 %v5121_v34, %v5119_v30 }
 0x917   :  { %3786 = vmatmul.msk.bf16.vlgmr.msrb.gmra.mxu1 %vm377_vm2, %v1258_v35 }
 0x994   :  { %v1286_v37 = vpop.f32.mrf.mxu1 }
 0x995   :  { %v1287_v39 = vadd.f32 %v4133_v36, %v1286_v37 }
 0x997   :  { %v1295_v40 = vpack.c.bf16 %v1287_v39, %v1287_v39  ;;  %v1291_v44 = vmul.f32 0.35355338, %v1287_v39 }
 0x999   :  { %v1298_v41 = vunpack.c.l.b16 %v1295_v40  ;;  %v1293_v29 = vpack.c.bf16 %v1291_v44, %v1291_v44 }
 0x99b   :  { %v5127_v19 = vpack.c.b16 %v1298_v41, %v1298_v41  ;;  %v1412_v18 = vunpack.c.l.b16 %v1293_v29 }
 0x99c   :  { %v1288_v42 = vpop.f32.mrf.mxu1 }
 0x99d   :  { %v1289_v43 = vadd.f32 %v4133_v36, %v1288_v42  ;;  %1416 = vrot.lane.b32.xlu0 %v5127_v19, %s4616_s5  ;;  %1300 = vrot.lane.b32.xlu1 %v5127_v19, %s4617_s9  ;;  %v1413_v27 = vpack.c.b16 %v1412_v18, %v1412_v18 }
 0x99f   :  { %v1292_v45 = vmul.f32 0.35355338, %v1289_v43  ;;  %v1296_v46 = vpack.c.bf16 %v1289_v43, %v1289_v43 }
 0x9a1   :  { %v1294_v47 = vpack.c.bf16 %v1292_v45, %v1292_v45  ;;  %v1322_v48 = vunpack.c.l.b16 %v1296_v46 }
 0x9a3   :  { %v5133_v49 = vpack.c.b16 %v1322_v48, %v1322_v48  ;;  %v1438_v50 = vunpack.c.l.b16 %v1294_v47 }
 0x9a5   :  { %1324 = vrot.lane.b32.xlu2 %v5133_v49, %s4617_s9  ;;  %1442 = vrot.lane.b32.xlu0 %v5133_v49, %s4616_s5  ;;  %v1439_v51 = vpack.c.b16 %v1438_v50, %v1438_v50  ;;  %s5753_s5 = sld [smem:[#allocation34_spill]] }
 0x9a7   :  { %1440 = vrot.lane.b32.xlu1 %v1439_v51, %s4618_s13 }
 0x9ad   :  { %1531 = vrot.lane.b32.xlu0 %v5127_v19, %s4619_s17  ;;  %1414 = vrot.lane.b32.xlu2 %v1413_v27, %s4618_s13  ;;  %s5754_s13 = sld [smem:[#allocation39_spill]] }
 0x9af   :  { %1529 = vrot.lane.b32.xlu1 %v1413_v27, %s4620_s21 }
 0x9b5   :  { %1552 = vrot.lane.b32.xlu0 %v1439_v51, %s4620_s21  ;;  %1554 = vrot.lane.b32.xlu2 %v5133_v49, %s4619_s17  ;;  %s5755_s17 = sld [smem:[#allocation37_spill]] }
 0x9b6   :  { %s5756_s21 = sld [smem:[#allocation40_spill]] }
 0x9b7   :  { %1666 = vrot.lane.b32.xlu1 %v5133_v49, %s4621_s12 }
 0x9bd   :  { %1641 = vrot.lane.b32.xlu0 %v1413_v27, %s4622_s27  ;;  %1643 = vrot.lane.b32.xlu2 %v5127_v19, %s4621_s12  ;;  %s5757_s12 = sld [smem:[#allocation35_spill]] }
 0x9c5   :  { %1390 = vrot.lane.b32.xlu0 %v5133_v49, %s4623_s15  ;;  %1664 = vrot.lane.b32.xlu2 %v1439_v51, %s4622_s27  ;;  %s5758_s27 = sld [smem:[#allocation36_spill]] }
 0x9ff   :  { %v1325_v52 = vpop.permute.xlu2 %1324 }
 0xa00   :  { %v1330_v53 = vsel %vm406_vm3, %v1325_v52, 0 }
 0xa01   :  { %1339 = vmatpush.bf16.xpose.msrb.mxu3 %v1330_v53 }
 0xa07   :  { %v1415_v54 = vpop.permute.xlu2 %1414 }
 0xa08   :  { %3788 = vmatmul.msk.bf16.vlgmr.msrb.gmra.mxu3 %vm406_vm3, %v1294_v47 }
 0xa0f   :  { %v1417_v55 = vpop.permute.xlu0 %1416  ;;  %v1301_v56 = vpop.permute.xlu1 %1300 }
 0xa10   :  { %v1422_v11 = vsel %vm406_vm3, %v1417_v55, 0  ;;  %v1306_v57 = vsel %vm406_vm3, %v1301_v56, 0  ;;  %v1555_v58 = vpop.permute.xlu2 %1554 }
 0xa11   :  { %1315 = vmatpush.bf16.xpose.msrb.mxu2 %v1306_v57  ;;  %1431 = vmatpush.bf16.xpose.msra.mxu3 %v1422_v11  ;;  %v1560_v12 = vsel %vm406_vm3, %v1555_v58, 0 }
 0xa17   :  { %v1443_v59 = vpop.permute.xlu0 %1442 }
 0xa18   :  { %v1448_v60 = vsel %vm406_vm3, %v1443_v59, 0  ;;  %3787 = vmatmul.msk.bf16.vlgmr.msrb.gmra.mxu2 %vm406_vm3, %v1293_v29  ;;  %3791 = vmatmul.msk.bf16.vlgmr.msra.gmra.mxu3 %vm406_vm3, %v1415_v54  ;;  %v1644_v62 = vpop.permute.xlu2 %1643 }
 0xa19   :  { %1457 = vmatpush.bf16.xpose.msra.mxu0 %v1448_v60  ;;  %v1441_v61 = vpop.permute.xlu1 %1440  ;;  %v1649_v1 = vsel %vm406_vm3, %v1644_v62, 0 }
 0xa1f   :  { %v1532_v63 = vpop.permute.xlu0 %1531 }
 0xa20   :  { %v1537_v0 = vsel %vm406_vm3, %v1532_v63, 0  ;;  %3792 = vmatmul.msk.bf16.vlgmr.msra.gmra.mxu0 %vm406_vm3, %v1441_v61  ;;  %v1665_v9 = vpop.permute.xlu2 %1664 }
 0xa21   :  { %1569 = vmatpush.bf16.xpose.msrb.mxu0 %v1560_v12  ;;  %1546 = vmatpush.bf16.xpose.msrb.mxu3 %v1537_v0  ;;  %v1530_v2 = vpop.permute.xlu1 %1529 }
 0xa27   :  { %v1553_v3 = vpop.permute.xlu0 %1552 }
 0xa28   :  { %3795 = vmatmul.msk.bf16.vlgmr.msrb.gmra.mxu3 %vm406_vm3, %v1530_v2 }
 0xa29   :  { %1658 = vmatpush.bf16.xpose.msra.mxu3 %v1649_v1  ;;  %v1667_v4 = vpop.permute.xlu1 %1666 }
 0xa2a   :  { %v1672_v5 = vsel %vm406_vm3, %v1667_v4, 0 }
 0xa2b   :  { %1681 = vmatpush.bf16.xpose.msra.mxu0 %v1672_v5 }
 0xa2f   :  { %v1642_v6 = vpop.permute.xlu0 %1641 }
 0xa30   :  { %3796 = vmatmul.msk.bf16.vlgmr.msrb.gmra.mxu0 %vm406_vm3, %v1553_v3 }
 0xa37   :  { %v1391_v7 = vpop.permute.xlu0 %1390 }
 0xa38   :  { %v1396_v8 = vsel %vm479_vm4, %v1391_v7, 0  ;;  %3799 = vmatmul.msk.bf16.vlgmr.msra.gmra.mxu3 %vm406_vm3, %v1642_v6 }
 0xa39   :  { %1405 = vmatpush.bf16.msra.mxu2 %v1396_v8 }
 0xa40   :  { %3800 = vmatmul.msk.bf16.vlgmr.msra.gmra.mxu0 %vm406_vm3, %v1665_v9 }
 0xa8b   :  { %v1341_v33 = vpop.f32.mrf.mxu3 }
 0xa8c   :  { %v1348_v24 = vsel %vm406_vm3, %v1341_v33, -inf }
 0xa8d   :  { %1349 = vmax.xlane.f32.xlu1 %v1348_v24 }
 0xa93   :  { %v1343_v10 = vpop.f32.mrf.mxu3 }
 0xa9b   :  { %v1317_v13 = vpop.f32.mrf.mxu2  ;;  %v5173_v16 = vpop.f32.mrf.mxu3 }
 0xa9c   :  { %v1463_v17 = vsel %vm406_vm3, %v5173_v16, -inf  ;;  %v1345_v20 = vsel %vm406_vm3, %v1317_v13, -inf }
 0xa9d   :  { %v1459_v21 = vpop.f32.mrf.mxu0  ;;  %1464 = vmax.xlane.f32.xlu1 %v1463_v17  ;;  %1346 = vmax.xlane.f32.xlu0 %v1345_v20 }
 0xa9e   :  { %v1466_v22 = vsel %vm406_vm3, %v1459_v21, -inf }
 0xa9f   :  { %1467 = vmax.xlane.f32.xlu2 %v1466_v22 }
 0xaa3   :  { %v1319_v23 = vpop.f32.mrf.mxu2  ;;  %v1435_v25 = vpop.f32.mrf.mxu3 }
 0xaa5   :  { %v1461_v26 = vpop.f32.mrf.mxu0 }
 0xaab   :  { %v1548_v28 = vpop.f32.mrf.mxu3 }
 0xaac   :  { %v1575_v31 = vsel %vm406_vm3, %v1548_v28, -inf }
 0xaad   :  { %1576 = vmax.xlane.f32.xlu2 %v1575_v31  ;;  %v1571_v35 = vpop.f32.mrf.mxu0 }
 0xaae   :  { %v1578_v36 = vsel %vm406_vm3, %v1571_v35, -inf }
 0xaaf   :  { %1579 = vmax.xlane.f32.xlu0 %v1578_v36 }
 0xab3   :  { %v1550_v37 = vpop.f32.mrf.mxu3 }
 0xab5   :  { %v1573_v39 = vpop.f32.mrf.mxu0 }
 0xabb   :  { %v1660_v40 = vpop.f32.mrf.mxu3 }
 0xabc   :  { %v1687_v41 = vsel %vm406_vm3, %v1660_v40, -inf }
 0xabd   :  { %1688 = vmax.xlane.f32.xlu2 %v1687_v41  ;;  %v5182_v42 = vpop.f32.mrf.mxu0 }
 0xabe   :  { %v1690_v43 = vsel %vm406_vm3, %v5182_v42, -inf }
 0xabf   :  { %1691 = vmax.xlane.f32.xlu1 %v1690_v43 }
 0xac3   :  { %v1662_v44 = vpop.f32.mrf.mxu3 }
 0xac5   :  { %v1685_v45 = vpop.f32.mrf.mxu0 }
 0xad5   :  { %1369 = vrot.lane.b32.xlu2 %v5127_v19, %s4623_s15 }
 0xb00   :  { %v1350_v46 = vpop.xlane.xlu1 %1349 }
 0xb01   :  { %v1352_v47 = vsub.f32 %v1341_v33, %v1350_v46 }
 0xb03   :  { %v1355_v48 = vmul.f32 1.442695, %v1352_v47 }
 0xb05   :  { %4202 = vpow2.f32 %v1355_v48 }
 0xb0b   :  { %v4203_v29 = vpop.eup %4202 }
 0xb0c   :  { %v1360_v50 = vsel %vm406_vm3, %v4203_v29, 0.0 }
 0xb0d   :  { %1361 = vadd.xlane.f32.xlu0 %v1360_v50 }
 0xb10   :  { %v1347_v51 = vpop.xlane.xlu0 %1346  ;;  %v1465_v33 = vpop.xlane.xlu1 %1464 }
 0xb11   :  { %v1351_v18 = vsub.f32 %v1317_v13, %v1347_v51  ;;  %v1469_v24 = vsub.f32 %v5173_v16, %v1465_v33 }
 0xb12   :  { %v1468_v27 = vpop.xlane.xlu2 %1467 }
 0xb13   :  { %v1353_v52 = vmul.f32 1.442695, %v1351_v18  ;;  %v1470_v53 = vsub.f32 %v1459_v21, %v1468_v27  ;;  %v1471_v10 = vmul.f32 1.442695, %v1469_v24 }
 0xb15   :  { %4204 = vpow2.f32 %v1353_v52  ;;  %v1473_v54 = vmul.f32 1.442695, %v1470_v53 }
 0xb17   :  { %4206 = vpow2.f32 %v1473_v54 }
 0xb1b   :  { %v4205_v55 = vpop.eup %4204 }
 0xb1c   :  { %v1357_v56 = vsel %vm406_vm3, %v4205_v55, 0.0 }
 0xb1d   :  { %1358 = vadd.xlane.f32.xlu1 %v1357_v56  ;;  %v4207_v11 = vpop.eup %4206 }
 0xb1e   :  { %v1478_v60 = vsel %vm406_vm3, %v4207_v11, 0.0 }
 0xb20   :  { %v1577_v12 = vpop.xlane.xlu2 %1576 }
 0xb21   :  { %1508 = vrot.lane.b32.xlu0 %v5133_v49, %s4624_s20  ;;  %v1581_v3 = vsub.f32 %v1548_v28, %v1577_v12 }
 0xb22   :  { %v1580_v57 = vpop.xlane.xlu0 %1579 }
 0xb23   :  { %v1582_v58 = vsub.f32 %v1571_v35, %v1580_v57  ;;  %v1583_v7 = vmul.f32 1.442695, %v1581_v3 }
 0xb25   :  { %v1585_v59 = vmul.f32 1.442695, %v1582_v58  ;;  %1479 = vadd.xlane.f32.xlu1 %v1478_v60 }
 0xb27   :  { %4208 = vpow2.f32 %v1585_v59 }
 0xb2d   :  { %v5193_v61 = vpop.eup %4208 }
 0xb2e   :  { %v1590_v62 = vsel %vm406_vm3, %v5193_v61, 0.0 }
 0xb2f   :  { %1591 = vadd.xlane.f32.xlu2 %v1590_v62 }
 0xb30   :  { %v1689_v63 = vpop.xlane.xlu2 %1688 }
 0xb31   :  { %v1693_v0 = vsub.f32 %v1660_v40, %v1689_v63 }
 0xb32   :  { %v1692_v23 = vpop.xlane.xlu1 %1691 }
 0xb33   :  { %v1695_v1 = vmul.f32 1.442695, %v1693_v0  ;;  %v1694_v40 = vsub.f32 %v5182_v42, %v1692_v23 }
 0xb35   :  { %4210 = vpow2.f32 %v1695_v1  ;;  %v1697_v41 = vmul.f32 1.442695, %v1694_v40 }
 0xb36   :  { %4212 = vpow2.f32 %v1583_v7 }
 0xb37   :  { %4214 = vpow2.f32 %v1471_v10 }
 0xb38   :  { %v1370_v2 = vpop.permute.xlu2 %1369 }
 0xb39   :  { %v1375_v4 = vsel %vm479_vm4, %v1370_v2, 0 }
 0xb3a   :  { %1384 = vmatpush.bf16.msra.mxu1 %v1375_v4 }
 0xb3b   :  { %v5198_v5 = vpop.eup %4210 }
 0xb3c   :  { %v1699_v6 = vsel %vm406_vm3, %v5198_v5, 0.0  ;;  %v5204_v8 = vpop.eup %4212 }
 0xb3d   :  { %1700 = vadd.xlane.f32.xlu2 %v1699_v6  ;;  %v1587_v9 = vsel %vm406_vm3, %v5204_v8, 0.0  ;;  %v4215_v13 = vpop.eup %4214 }
 0xb3e   :  { %1487 = vrot.lane.b32.xlu1 %v5127_v19, %s4624_s20  ;;  %v1475_v17 = vsel %vm406_vm3, %v4215_v13, 0.0  ;;  %s5759_s20 = sld [smem:[#allocation38_spill]] }
 0xb46   :  { %1620 = vrot.lane.b32.xlu1 %v5133_v49, %s4625_s11 }
 0xb4b   :  { %1588 = vadd.xlane.f32.xlu0 %v1587_v9 }
 0xb55   :  { %1711 = vrot.lane.b32.xlu2 %v5127_v19, %s4626_s16 }
 0xb5f   :  { %1732 = vrot.lane.b32.xlu0 %v5133_v49, %s4626_s16  ;;  %s5763_s16 = sld [smem:[#allocation41_spill]] }
 0xb70   :  { %1476 = vadd.xlane.f32.xlu1 %v1475_v17 }
 0xb80   :  { %v1362_v20 = vpop.xlane.xlu0 %1361 }
 0xb81   :  { %4216 = vrcp.f32 %v1362_v20 }
 0xb87   :  { %v4217_v21 = vpop.eup %4216 }
 0xb88   :  { %v1366_v22 = vmul.f32 %v4217_v21, %v4203_v29 }
 0xb89   :  { %1599 = vrot.lane.b32.xlu1 %v5127_v19, %s4625_s11  ;;  %s5762_s11 = sld [smem:[#allocation43_spill]] }
 0xb8a   :  { %v1368_v25 = vpack.c.bf16 %v1366_v22, %v1366_v22 }
 0xb8c   :  { %3790 = vmatmul.msk.bf16.vlgmr.msra.gmra.mxu2 %vm406_vm3, %v1368_v25 }
 0xb90   :  { %v1359_v16 = vpop.xlane.xlu1 %1358 }
 0xb91   :  { %4218 = vrcp.f32 %v1359_v16 }
 0xb93   :  { %v1509_v49 = vpop.permute.xlu0 %1508 }
 0xb94   :  { %v1514_v26 = vsel %vm479_vm4, %v1509_v49, 0 }
 0xb95   :  { %1523 = vmatpush.bf16.msrb.mxu2 %v1514_v26 }
 0xb97   :  { %v4219_v28 = vpop.eup %4218 }
 0xb98   :  { %v1365_v31 = vmul.f32 %v4219_v28, %v4205_v55  ;;  %v1480_v35 = vpop.xlane.xlu1 %1479 }
 0xb99   :  { %4220 = vrcp.f32 %v1480_v35  ;;  %v3969_v35 = vld [vmem:[%s5746_s2 + $0x8] sm:$0xff] }
 0xb9a   :  { %v1367_v36 = vpack.c.bf16 %v1365_v31, %v1365_v31  ;;  %4222 = vpow2.f32 %v1697_v41  ;;  %1808 = vmatpush.bf16.msrb.mxu3 %v3969_v35 }
 0xb9c   :  { %3789 = vmatmul.msk.bf16.vlgmr.msra.gmra.mxu1 %vm406_vm3, %v1367_v36  ;;  %v3968_v36 = vld [vmem:[%s5746_s2] sm:$0xff]  ;;  %s4544_s2 = scalar_lea.hbm %s4878_s8, 2 }
 0xb9d   :  { %p4546_p9 = scmp.lt.s32.totalorder %s4544_s2, %s4542_s1 }
 0xb9e   :  { %1809 = vmatpush.bf16.msrb.mxu3 %v3968_v36  ;;  %v4136_v36 = vld [vmem:[%s5750_s0] ss:$0 sm:$0xff] }
 0xb9f   :  { %v4221_v37 = vpop.eup %4220  ;;  %p4547_p10 = por %p4546_p9, %p4545_p8 }
 0xba0   :  { %v1484_v39 = vmul.f32 %v4221_v37, %v4207_v11  ;;  %v4223_v44 = vpop.eup %4222 }
 0xba1   :  { %v1702_v47 = vsel %vm406_vm3, %v4223_v44, 0.0  ;;  %p4548_p11 = pnand %p4547_p10, %p4543_p7 }
 0xba2   :  { %v1486_v19 = vpack.c.bf16 %v1484_v39, %v1484_v39  ;;  %v1592_v43 = vpop.xlane.xlu2 %1591 }
 0xba3   :  { %4224 = vrcp.f32 %v1592_v43 }
 0xba4   :  { %3794 = vmatmul.msk.bf16.vlgmr.msrb.gmra.mxu2 %vm406_vm3, %v1486_v19 }
 0xba9   :  { %v4225_v48 = vpop.eup %4224 }
 0xbaa   :  { %v1596_v29 = vmul.f32 %v4225_v48, %v5193_v61 }
 0xbac   :  { %v1598_v51 = vpack.c.bf16 %v1596_v29, %v1596_v29 }
 0xbb0   :  { %v1488_v45 = vpop.permute.xlu1 %1487  ;;  %v1701_v11 = vpop.xlane.xlu2 %1700 }
 0xbb1   :  { %v1493_v46 = vsel %vm479_vm4, %v1488_v45, 0 }
 0xbb2   :  { %1502 = vmatpush.bf16.msrb.mxu1 %v1493_v46 }
 0xbb3   :  { %1703 = vadd.xlane.f32.xlu1 %v1702_v47 }
 0xbb8   :  { %v1621_v50 = vpop.permute.xlu1 %1620  ;;  %v1712_v58 = vpop.permute.xlu2 %1711 }
 0xbb9   :  { %v1626_v42 = vsel %vm479_vm4, %v1621_v50, 0  ;;  %v1717_v61 = vsel %vm479_vm4, %v1712_v58, 0 }
 0xbba   :  { %1635 = vmatpush.bf16.msra.mxu2 %v1626_v42 }
 0xbbd   :  { %3798 = vmatmul.msk.bf16.vlgmr.msra.gmra.mxu2 %vm406_vm3, %v1598_v51 }
 0xbbe   :  { %v1589_v18 = vpop.xlane.xlu0 %1588 }
 0xbd1   :  { %v1733_v27 = vpop.permute.xlu0 %1732 }
 0xbd2   :  { %v1738_v52 = vsel %vm479_vm4, %v1733_v27, 0  ;;  %v4134_v27 = vld [vmem:[%s5747_s4] ss:$0 sm:$0xff] }
 0xbd3   :  { %1747 = vmatpush.bf16.msrb.mxu2 %v1738_v52 }
 0xbe3   :  { %v1477_v53 = vpop.xlane.xlu1 %1476 }
 0xbe4   :  { %4226 = vrcp.f32 %v1477_v53 }
 0xbe5   :  { %4228 = vrcp.f32 %v1589_v18 }
 0xbe6   :  { %4230 = vrcp.f32 %v1701_v11 }
 0xbea   :  { %v4227_v54 = vpop.eup %4226 }
 0xbeb   :  { %v1483_v55 = vmul.f32 %v4227_v54, %v4215_v13  ;;  %v4229_v57 = vpop.eup %4228 }
 0xbec   :  { %v1595_v59 = vmul.f32 %v4229_v57, %v5204_v8  ;;  %v4231_v63 = vpop.eup %4230 }
 0xbed   :  { %v1485_v56 = vpack.c.bf16 %v1483_v55, %v1483_v55  ;;  %v1707_v0 = vmul.f32 %v4231_v63, %v5198_v5 }
 0xbee   :  { %v1597_v62 = vpack.c.bf16 %v1595_v59, %v1595_v59 }
 0xbef   :  { %3793 = vmatmul.msk.bf16.vlgmr.msrb.gmra.mxu1 %vm406_vm3, %v1485_v56  ;;  %v1709_v1 = vpack.c.bf16 %v1707_v0, %v1707_v0 }
 0xbfb   :  { %v1600_v60 = vpop.permute.xlu1 %1599 }
 0xbfc   :  { %v1605_v12 = vsel %vm479_vm4, %v1600_v60, 0 }
 0xbfd   :  { %1614 = vmatpush.bf16.msra.mxu1 %v1605_v12 }
 0xc00   :  { %3797 = vmatmul.msk.bf16.vlgmr.msra.gmra.mxu1 %vm406_vm3, %v1597_v62 }
 0xc01   :  { %1726 = vmatpush.bf16.msrb.mxu1 %v1717_v61 }
 0xc0f   :  { %v1407_v2 = vpop.f32.mrf.mxu2 }
 0xc10   :  { %3801 = vmatmul.msk.bf16.vlgmr.msrb.gmra.mxu1 %vm406_vm3, %v1709_v1 }
 0xc17   :  { %v1409_v3 = vpop.f32.mrf.mxu2 }
 0xc19   :  { %v1386_v4 = vpop.f32.mrf.mxu1 }
 0xc21   :  { %v1388_v6 = vpop.f32.mrf.mxu1 }
 0xc22   :  { %v3970_v6 = vld [vmem:[%s5748_s6] sm:$0xff] }
 0xc26   :  { %v1704_v7 = vpop.xlane.xlu1 %1703 }
 0xc27   :  { %4232 = vrcp.f32 %v1704_v7  ;;  %v1525_v8 = vpop.f32.mrf.mxu2 }
 0xc2d   :  { %v4233_v9 = vpop.eup %4232 }
 0xc2e   :  { %v1708_v33 = vmul.f32 %v4233_v9, %v4223_v44 }
 0xc2f   :  { %v1527_v24 = vpop.f32.mrf.mxu2 }
 0xc30   :  { %v1710_v10 = vpack.c.bf16 %v1708_v33, %v1708_v33 }
 0xc32   :  { %3802 = vmatmul.msk.bf16.vlgmr.msrb.gmra.mxu2 %vm406_vm3, %v1710_v10 }
 0xc40   :  { %v1637_v13 = vpop.f32.mrf.mxu2 }
 0xc48   :  { %v1639_v17 = vpop.f32.mrf.mxu2 }
 0xc6c   :  { %v1504_v5 = vpop.f32.mrf.mxu1 }
 0xc6d   :  { %v4084_v20 = vpack.i.bf16 %v1525_v8, %v1504_v5 }
 0xc6f   :  { %4085 = vrot.lane.b32.xlu0 %v4084_v20, %s4627_s18  ;;  %s5764_s18 = sld [smem:[#allocation44_spill]] }
 0xc74   :  { %v1506_v21 = vpop.f32.mrf.mxu1 }
 0xc7d   :  { %v1616_v22 = vpop.f32.mrf.mxu1 }
 0xc7e   :  { %v4089_v23 = vpack.i.bf16 %v1637_v13, %v1616_v22 }
 0xc80   :  { %4090 = vrot.lane.b32.xlu2 %v4089_v23, %s4628_s22  ;;  %s5765_s22 = sld [smem:[#allocation42_spill]] }
 0xc85   :  { %v1618_v25 = vpop.f32.mrf.mxu1 }
 0xc8d   :  { %v1728_v16 = vpop.f32.mrf.mxu1 }
 0xc95   :  { %v1730_v49 = vpop.f32.mrf.mxu1 }
 0xcb5   :  { %v1749_v26 = vpop.f32.mrf.mxu2 }
 0xcb6   :  { %v4094_v28 = vpack.i.bf16 %v1749_v26, %v1728_v16  ;;  %v4135_v26 = vld [vmem:[%s5749_s28] ss:$0 sm:$0xff] }
 0xcb8   :  { %4095 = vrot.lane.b32.xlu0 %v4094_v28, %s4629_s23  ;;  %s5766_s23 = sld [smem:[#allocation45_spill]] }
 0xcbd   :  { %v1751_v31 = vpop.f32.mrf.mxu2 }
 0xcda   :  { %v4091_v19 = vpop.permute.xlu2 %4090 }
 0xcdb   :  { %v4093_v44 = vunpack.i.h.bf16 %v4091_v19  ;;  %v4092_v45 = vunpack.i.l.bf16 %v4091_v19 }
 0xce1   :  { %v4086_v37 = vpop.permute.xlu0 %4085 }
 0xce2   :  { %v4088_v39 = vunpack.i.h.bf16 %v4086_v37  ;;  %v4087_v40 = vunpack.i.l.bf16 %v4086_v37 }
 0xce4   :  { %v1778_v41 = vsel %vm406_vm3, %v1407_v2, %v4088_v39  ;;  %v1777_v43 = vsel %vm406_vm3, %v1386_v4, %v4087_v40 }
 0xce5   :  { %v1779_v29 = vsel %vm885_vm5, %v1777_v43, %v4092_v45  ;;  %v1780_v50 = vsel %vm885_vm5, %v1778_v41, %v4093_v44  ;;  %v4137_v44 = vld [vmem:[%s5751_s7] ss:$0 sm:$0xff] }
 0xd2a   :  { %v4096_v46 = vpop.permute.xlu0 %4095 }
 0xd2b   :  { %v4098_v47 = vunpack.i.h.bf16 %v4096_v46  ;;  %v4097_v48 = vunpack.i.l.bf16 %v4096_v46 }
 0xd2d   :  { %v1782_v42 = vsel %vm888_vm6, %v1780_v50, %v4098_v47  ;;  %v1781_v51 = vsel %vm888_vm6, %v1779_v29, %v4097_v48  ;;  %v3979_v48 = vld [vmem:[%s5752_s10 + $0x38] sm:$0xff] }
 0xd2e   :  { %v1783_v18 = vpack.c.bf16 %v1782_v42, %v1781_v51  ;;  %2037 = vmatpush.bf16.msra.mxu1 %v3979_v48  ;;  %v3978_v42 = vld [vmem:[%s5752_s10 + $0x30] sm:$0xff] }
 0xd30   :  { %3811 = vmatmul.msk.bf16.vlgmr.msrb.gmra.mxu3 %vm377_vm2, %v1783_v18 }
 0xd32   :  { %2038 = vmatpush.bf16.msra.mxu1 %v3978_v42 }
 0xdb3   :  { %v1811_v52 = vpop.f32.mrf.mxu3 }
 0xdb4   :  { %v1812_v53 = vadd.f32 %v4134_v27, %v1811_v52  ;;  %v3977_v52 = vld [vmem:[%s5752_s10 + $0x28] sm:$0xff] }
 0xdb5   :  { %2039 = vmatpush.bf16.msra.mxu1 %v3977_v52 }
 0xdb6   :  { %v1816_v54 = vadd.f32 %v1812_v53, %v5119_v30 }
 0xdb8   :  { %v1818_v55 = vsel %vm377_vm2, %v1816_v54, 0.0 }
 0xdb9   :  { %1819 = vadd.xlane.f32.xlu1 %v1818_v55  ;;  %v3976_v55 = vld [vmem:[%s5752_s10 + $0x20] sm:$0xff] }
 0xdba   :  { %2040 = vmatpush.bf16.msra.mxu1 %v3976_v55 }
 0xdbb   :  { %v1813_v56 = vpop.f32.mrf.mxu3 }
 0xdbc   :  { %v1814_v11 = vadd.f32 %v4134_v27, %v1813_v56 }
 0xdbe   :  { %v1817_v57 = vadd.f32 %v1814_v11, %v5121_v34  ;;  %v3971_v34 = vld [vmem:[%s5748_s6 + $0x8] sm:$0xff] }
 0xdbf   :  { %1897 = vmatpush.bf16.msrb.mxu0 %v3971_v34 }
 0xdc0   :  { %v1821_v58 = vsel %vm377_vm2, %v1817_v57, 0.0 }
 0xdc1   :  { %1822 = vadd.xlane.f32.xlu2 %v1821_v58 }
 0xdc3   :  { %1898 = vmatpush.bf16.msrb.mxu0 %v3970_v6 }
 0xe2c   :  { %v1820_v59 = vpop.xlane.xlu1 %1819 }
 0xe2d   :  { %v1824_v60 = vmul.f32 %v1820_v59, %v5060_v38  ;;  %v3975_v59 = vld [vmem:[%s5752_s10 + $0x18] sm:$0xff] }
 0xe2e   :  { %2041 = vmatpush.bf16.msra.mxu1 %v3975_v59 }
 0xe2f   :  { %v1826_v12 = vsub.f32 %v1816_v54, %v1824_v60 }
 0xe31   :  { %v1828_v61 = vmul.f32 %v1826_v12, %v1826_v12 }
 0xe33   :  { %v1830_v62 = vsel %vm377_vm2, %v1828_v61, 0.0 }
 0xe34   :  { %v1823_v30 = vpop.xlane.xlu2 %1822  ;;  %1831 = vadd.xlane.f32.xlu0 %v1830_v62 }
 0xe35   :  { %v1825_v63 = vmul.f32 %v1823_v30, %v5060_v38  ;;  %v3974_v30 = vld [vmem:[%s5752_s10 + $0x10] sm:$0xff] }
 0xe36   :  { %2042 = vmatpush.bf16.msra.mxu1 %v3974_v30 }
 0xe37   :  { %v1827_v0 = vsub.f32 %v1817_v57, %v1825_v63 }
 0xe39   :  { %v1829_v1 = vmul.f32 %v1827_v0, %v1827_v0 }
 0xe3b   :  { %v1833_v2 = vsel %vm377_vm2, %v1829_v1, 0.0 }
 0xe3c   :  { %1834 = vadd.xlane.f32.xlu1 %v1833_v2 }
 0xea7   :  { %v1832_v3 = vpop.xlane.xlu0 %1831 }
 0xea8   :  { %v1836_v4 = vmul.f32 %v1832_v3, %v5060_v38 }
 0xeaa   :  { %v1838_v7 = vadd.f32 1e-05, %v1836_v4  ;;  %v3973_v4 = vld [vmem:[%s5752_s10 + $0x8] sm:$0xff] }
 0xeab   :  { %2043 = vmatpush.bf16.msra.mxu1 %v3973_v4 }
 0xeac   :  { %4234 = vrsqrt.f32 %v1838_v7  ;;  %vm1846_vm5 = vweird.f32 %v1838_v7 }
 0xeaf   :  { %v1835_v8 = vpop.xlane.xlu1 %1834 }
 0xeb0   :  { %v1837_v9 = vmul.f32 %v1835_v8, %v5060_v38 }
 0xeb2   :  { %v4235_v33 = vpop.eup %4234  ;;  %v1839_v24 = vadd.f32 1e-05, %v1837_v9 }
 0xeb3   :  { %v1841_v10 = vmul.f32 %v4235_v33, %v1838_v7  ;;  %vm1847_vm3 = vweird.f32 %v4235_v33 }
 0xeb4   :  { %4236 = vrsqrt.f32 %v1839_v24  ;;  %vm1848_vm6 = vmor %vm1846_vm5, %vm1847_vm3  ;;  %vm1856_vm11 = vweird.f32 %v1839_v24 }
 0xeb5   :  { %v1842_v13 = vmul.f32 %v4235_v33, %v1841_v10 }
 0xeb7   :  { %v1843_v17 = vmul.f32 0.5, %v1842_v13  ;;  %v3972_v13 = vld [vmem:[%s5752_s10] sm:$0xff] }
 0xeb8   :  { %2044 = vmatpush.bf16.msra.mxu1 %v3972_v13 }
 0xeb9   :  { %v1844_v5 = vsub.f32 1.5, %v1843_v17 }
 0xeba   :  { %v4237_v20 = vpop.eup %4236 }
 0xebb   :  { %v1845_v21 = vmul.f32 %v4235_v33, %v1844_v5  ;;  %v1851_v22 = vmul.f32 %v4237_v20, %v1839_v24  ;;  %vm1857_vm10 = vweird.f32 %v4237_v20 }
 0xebc   :  { %vm1858_vm12 = vmor %vm1856_vm11, %vm1857_vm10 }
 0xebd   :  { %v1852_v23 = vmul.f32 %v4237_v20, %v1851_v22  ;;  %v1849_v25 = vsel %vm1848_vm6, %v4235_v33, %v1845_v21 }
 0xebe   :  { %v1860_v28 = vmul.f32 %v1849_v25, %v1826_v12 }
 0xebf   :  { %v1853_v16 = vmul.f32 0.5, %v1852_v23 }
 0xec0   :  { %v1865_v37 = vmul.f32 %v4135_v26, %v1860_v28 }
 0xec1   :  { %v1854_v49 = vsub.f32 1.5, %v1853_v16 }
 0xec2   :  { %v5264_v19 = vadd.f32 %v4136_v36, %v1865_v37 }
 0xec3   :  { %v1855_v31 = vmul.f32 %v4237_v20, %v1854_v49 }
 0xec5   :  { %v1859_v35 = vsel %vm1858_vm12, %v4237_v20, %v1855_v31 }
 0xec6   :  { %v1861_v39 = vmul.f32 %v1859_v35, %v1827_v0 }
 0xec8   :  { %v1866_v40 = vmul.f32 %v4135_v26, %v1861_v39 }
 0xeca   :  { %v5266_v41 = vadd.f32 %v4136_v36, %v1866_v40 }
 0xecc   :  { %v1872_v43 = vpack.c.bf16 %v5266_v41, %v5264_v19 }
 0xece   :  { %3820 = vmatmul.msk.bf16.vlgmr.msrb.gmra.mxu0 %vm377_vm2, %v1872_v43 }
 0xf4b   :  { %v1900_v45 = vpop.f32.mrf.mxu0 }
 0xf4c   :  { %v5272_v46 = vadd.f32 %v4137_v44, %v1900_v45 }
 0xf4e   :  { %v5275_v47 = vmul.f32 0.70710677, %v5272_v46 }
 0xf50   :  { %v1913_v29 = vand.u32 2147483647, %v5275_v47  ;;  %vm1909_vm5 = vcmp.ge.f32.partialorder %v5275_v47, 0.0 }
 0xf52   :  { %v1915_v50 = vmul.f32 0.3275911, %v1913_v29  ;;  %v1967_v7 = vsub.f32 0.0, %v1913_v29 }
 0xf53   :  { %v1902_v51 = vpop.f32.mrf.mxu0 }
 0xf54   :  { %v1917_v18 = vadd.f32 1.0, %v1915_v50  ;;  %v5280_v27 = vadd.f32 %v4137_v44, %v1902_v51  ;;  %v1969_v5 = vmul.f32 %v1967_v7, %v1913_v29  ;;  %v5308_v7 = vld [vmem:[%s5754_s13] sm:$0xff] }
 0xf56   :  { %4238 = vrcp.f32 %v1917_v18  ;;  %v5284_v53 = vmul.f32 0.70710677, %v5280_v27  ;;  %v1930_v12 = vand.u32 2147483648, %v1917_v18  ;;  %v1928_v62 = vand.u32 2147483647, %v1917_v18 }
 0xf57   :  { %vm1924_vm14 = vweird.f32 %v1917_v18  ;;  %v1971_v16 = vmul.f32 1.442695, %v1969_v5  ;;  %v1906_v47 = vmul.f32 0.5, %v5280_v27 }
 0xf58   :  { %v1914_v54 = vand.u32 2147483647, %v5284_v53  ;;  %v1931_v0 = vor.u32 1.1754944e-38, %v1930_v12  ;;  %vm1929_vm1 = vcmp.eq.f32.partialorder %v1928_v62, 8.507059e+37  ;;  %vm1910_vm6 = vcmp.ge.f32.partialorder %v5284_v53, 0.0 }
 0xf59   :  { %v1912_v59 = vsel %vm1910_vm6, 1.0, %v4631_v32 }
 0xf5a   :  { %v1916_v56 = vmul.f32 0.3275911, %v1914_v54  ;;  %v1968_v26 = vsub.f32 0.0, %v1914_v54 }
 0xf5c   :  { %v4239_v11 = vpop.eup %4238  ;;  %v1918_v58 = vadd.f32 1.0, %v1916_v56  ;;  %v1970_v37 = vmul.f32 %v1968_v26, %v1914_v54  ;;  %v1911_v54 = vsel %vm1909_vm5, 1.0, %v4631_v32 }
 0xf5d   :  { %v1920_v57 = vmul.f32 %v4239_v11, %v1917_v18  ;;  %vm1925_vm13 = vweird.f32 %v4239_v11 }
 0xf5e   :  { %4240 = vrcp.f32 %v1918_v58  ;;  %vm1926_vm15 = vmor %vm1924_vm14, %vm1925_vm13  ;;  %v1945_v33 = vand.u32 2147483648, %v1918_v58  ;;  %v1943_v10 = vand.u32 2147483647, %v1918_v58  ;;  %vm1939_vm8 = vweird.f32 %v1918_v58 }
 0xf5f   :  { %v1921_v60 = vsub.f32 1.0, %v1920_v57  ;;  %4242 = vpow2.f32 %v1971_v16  ;;  %v1973_v45 = vmul.f32 1.442695, %v1970_v37  ;;  %v3980_v16 = vld [vmem:[%s5755_s17] sm:$0xff] }
 0xf60   :  { %v1946_v22 = vor.u32 1.1754944e-38, %v1945_v33  ;;  %vm1944_vm3 = vcmp.eq.f32.partialorder %v1943_v10, 8.507059e+37 }
 0xf61   :  { %v1922_v61 = vmul.f32 %v4239_v11, %v1921_v60  ;;  %4244 = vpow2.f32 %v1973_v45 }
 0xf63   :  { %v1923_v63 = vadd.f32 %v4239_v11, %v1922_v61  ;;  %v1905_v61 = vmul.f32 0.5, %v5272_v46 }
 0xf64   :  { %v4241_v1 = vpop.eup %4240 }
 0xf65   :  { %v1927_v2 = vsel %vm1926_vm15, %v4239_v11, %v1923_v63  ;;  %v1935_v3 = vmul.f32 %v4241_v1, %v1918_v58  ;;  %vm1940_vm7 = vweird.f32 %v4241_v1  ;;  %v4243_v29 = vpop.eup %4242 }
 0xf66   :  { %v1932_v34 = vsel %vm1929_vm1, %v1931_v0, %v1927_v2  ;;  %vm1941_vm9 = vmor %vm1939_vm8, %vm1940_vm7  ;;  %vm2155_vm1 = vcmask 1040384   ;;  %vm2158_vm7 = vcmask 1042432   ;;  %vm2161_vm8 = vcmask 1044480  }
 0xf67   :  { %v1949_v6 = vmul.f32 1.0614054, %v1932_v34  ;;  %v1936_v8 = vsub.f32 1.0, %v1935_v3  ;;  %v4245_v56 = vpop.eup %4244 }
 0xf69   :  { %v1951_v9 = vadd.f32 -1.4531521, %v1949_v6  ;;  %v1937_v24 = vmul.f32 %v4241_v1, %v1936_v8  ;;  %v5304_v6 = vld [vmem:[%s5754_s13 + $0x8] sm:$0xff] }
 0xf6a   :  { %2247 = vmatpush.bf16.msra.mxu3 %v5304_v6  ;;  %2309 = vmatpush.bf16.msra.mxu0 %v5304_v6 }
 0xf6b   :  { %v1953_v17 = vmul.f32 %v1951_v9, %v1932_v34  ;;  %v1938_v20 = vadd.f32 %v4241_v1, %v1937_v24  ;;  %2573 = vmatpush.bf16.msrb.mxu1 %v5304_v6 }
 0xf6d   :  { %v1955_v21 = vadd.f32 1.4214138, %v1953_v17  ;;  %v1942_v23 = vsel %vm1941_vm9, %v4241_v1, %v1938_v20  ;;  %v4138_v1 = vld [vmem:[%s5753_s5] ss:$0 sm:$0xff]  ;;  %vm2163_vm9 = vcmask 1045504  }
 0xf6e   :  { %v1947_v49 = vsel %vm1944_vm3, %v1946_v22, %v1942_v23  ;;  %2248 = vmatpush.bf16.msra.mxu3 %v5308_v7  ;;  %2310 = vmatpush.bf16.msra.mxu0 %v5308_v7  ;;  %vm2165_vm3 = vcmask 1046528  }
 0xf6f   :  { %v1957_v25 = vmul.f32 %v1955_v21, %v1932_v34  ;;  %v1950_v28 = vmul.f32 1.0614054, %v1947_v49  ;;  %2574 = vmatpush.bf16.msrb.mxu1 %v5308_v7 }
 0xf71   :  { %v1959_v31 = vadd.f32 -0.28449672, %v1957_v25  ;;  %v1952_v35 = vadd.f32 -1.4531521, %v1950_v28  ;;  %v3981_v25 = vld [vmem:[%s5755_s17 + $0x8] sm:$0xff] }
 0xf72   :  { %2439 = vmatpush.bf16.msrb.mxu3 %v5304_v6  ;;  %2508 = vmatpush.bf16.msrb.mxu0 %v5304_v6 }
 0xf73   :  { %v1961_v36 = vmul.f32 %v1959_v31, %v1932_v34  ;;  %v1954_v39 = vmul.f32 %v1952_v35, %v1947_v49  ;;  %2209 = vmatpush.bf16.msra.mxu2 %v3981_v25 }
 0xf75   :  { %v1963_v40 = vadd.f32 0.2548296, %v1961_v36  ;;  %v1956_v43 = vadd.f32 1.4214138, %v1954_v39 }
 0xf76   :  { %2440 = vmatpush.bf16.msrb.mxu3 %v5308_v7  ;;  %2509 = vmatpush.bf16.msrb.mxu0 %v5308_v7 }
 0xf77   :  { %v1965_v44 = vmul.f32 %v1963_v40, %v1932_v34  ;;  %v1958_v48 = vmul.f32 %v1956_v43, %v1947_v49  ;;  %2210 = vmatpush.bf16.msra.mxu2 %v3980_v16  ;;  %v5333_v43 = vld [vmem:[%s5756_s21] ss:$0 sm:$0xff]  ;;  %v2109_v16 = vlaneseq }
 0xf79   :  { %v1975_v50 = vmul.f32 %v4243_v29, %v1965_v44  ;;  %v1960_v42 = vadd.f32 -0.28449672, %v1958_v48 }
 0xf7b   :  { %v1962_v51 = vmul.f32 %v1960_v42, %v1947_v49  ;;  %v1977_v18 = vsub.f32 1.0, %v1975_v50  ;;  %2374 = vmatpush.bf16.msrb.mxu2 %v5304_v6  ;;  %v4139_v42 = vld [vmem:[%s5757_s12] ss:$0 sm:$0xff] }
 0xf7d   :  { %v1964_v52 = vadd.f32 0.2548296, %v1962_v51  ;;  %v1979_v11 = vmul.f32 %v1977_v18, %v1911_v54 }
 0xf7f   :  { %v1966_v55 = vmul.f32 %v1964_v52, %v1947_v49  ;;  %v1981_v60 = vadd.f32 1.0, %v1979_v11  ;;  %2375 = vmatpush.bf16.msrb.mxu2 %v5308_v7 }
 0xf81   :  { %v1976_v57 = vmul.f32 %v4245_v56, %v1966_v55  ;;  %v1983_v30 = vmul.f32 %v1981_v60, %v1905_v61  ;;  %v4140_v56 = vld [vmem:[%s5758_s27] ss:$0 sm:$0xff] }
 0xf83   :  { %v1978_v58 = vsub.f32 1.0, %v1976_v57 }
 0xf85   :  { %v1980_v12 = vmul.f32 %v1978_v58, %v1912_v59 }
 0xf87   :  { %v1982_v62 = vadd.f32 1.0, %v1980_v12 }
 0xf89   :  { %v1984_v63 = vmul.f32 %v1982_v62, %v1906_v47 }
 0xf8b   :  { %v1985_v0 = vpack.c.bf16 %v1984_v63, %v1983_v30 }
 0xf8d   :  { %2045 = vmatmul.bf16.vlgmr.msra.gmra.mxu1 %v1985_v0 }
0x100a   :  { %v2046_v2 = vpop.f32.mrf.mxu1 }
0x100b   :  { %v2047_v53 = vadd.f32 %v4138_v1, %v2046_v2 }
0x100d   :  { %v2051_v34 = vadd.f32 %v2047_v53, %v5264_v19  ;;  %v4632_v19 = vmov 0  }
0x100e   :  { %2249 = vmatmul.bf16.vlgmr.msra.gmra.mxu3 %v4632_v19 }
0x100f   :  { %v2053_v32 = vsel %vm377_vm2, %v2051_v34, 0.0  ;;  %2703 = vmatpush.bf16.msra.mxu3 %v5304_v6 }
0x1010   :  { %2054 = vadd.xlane.f32.xlu1 %v2053_v32 }
0x1012   :  { %v2048_v3 = vpop.f32.mrf.mxu1 }
0x1013   :  { %v2049_v4 = vadd.f32 %v4138_v1, %v2048_v3  ;;  %2704 = vmatpush.bf16.msra.mxu3 %v5308_v7 }
0x1015   :  { %v2052_v46 = vadd.f32 %v2049_v4, %v5266_v41 }
0x1017   :  { %v2056_v27 = vsel %vm377_vm2, %v2052_v46, 0.0 }
0x1018   :  { %2057 = vadd.xlane.f32.xlu1 %v2056_v27 }
0x1083   :  { %v2055_v41 = vpop.xlane.xlu1 %2054 }
0x1084   :  { %v2059_v8 = vmul.f32 %v2055_v41, %v5060_v38 }
0x1086   :  { %v2061_v9 = vsub.f32 %v2051_v34, %v2059_v8 }
0x1088   :  { %v2063_v33 = vmul.f32 %v2061_v9, %v2061_v9 }
0x108a   :  { %v2065_v24 = vsel %vm377_vm2, %v2063_v33, 0.0 }
0x108b   :  { %2066 = vadd.xlane.f32.xlu1 %v2065_v24  ;;  %v2058_v10 = vpop.xlane.xlu1 %2057 }
0x108c   :  { %v2060_v13 = vmul.f32 %v2058_v10, %v5060_v38 }
0x108e   :  { %v2062_v17 = vsub.f32 %v2052_v46, %v2060_v13 }
0x1090   :  { %v2064_v5 = vmul.f32 %v2062_v17, %v2062_v17 }
0x1091   :  { %v2250_v44 = vpop.f32.mrf.mxu3 }
0x1092   :  { %v2068_v20 = vsel %vm377_vm2, %v2064_v5, 0.0  ;;  %v5336_v48 = vadd.f32 %v5333_v43, %v2250_v44 }
0x1093   :  { %2069 = vadd.xlane.f32.xlu1 %v2068_v20 }
0x1094   :  { %2275 = vrot.lane.b32.xlu2 %v5336_v48, %s4623_s15 }
0x1099   :  { %v2252_v55 = vpop.f32.mrf.mxu3 }
0x10fe   :  { %v2067_v21 = vpop.xlane.xlu1 %2066 }
0x10ff   :  { %v2071_v22 = vmul.f32 %v2067_v21, %v5060_v38 }
0x1101   :  { %v2073_v23 = vadd.f32 1e-05, %v2071_v22 }
0x1103   :  { %4246 = vrsqrt.f32 %v2073_v23  ;;  %vm2081_vm11 = vweird.f32 %v2073_v23 }
0x1106   :  { %v2070_v49 = vpop.xlane.xlu1 %2069 }
0x1107   :  { %v2072_v26 = vmul.f32 %v2070_v49, %v5060_v38 }
0x1109   :  { %v4247_v28 = vpop.eup %4246  ;;  %v2074_v31 = vadd.f32 1e-05, %v2072_v26  ;;  %v5381_v26 = vand.u32 127, %v2109_v16 }
0x110a   :  { %v2076_v35 = vmul.f32 %v4247_v28, %v2073_v23  ;;  %vm2082_vm10 = vweird.f32 %v4247_v28 }
0x110b   :  { %4248 = vrsqrt.f32 %v2074_v31  ;;  %vm2083_vm12 = vmor %vm2081_vm11, %vm2082_vm10  ;;  %vm2091_vm14 = vweird.f32 %v2074_v31 }
0x110c   :  { %v2077_v36 = vmul.f32 %v4247_v28, %v2076_v35 }
0x110e   :  { %v2078_v37 = vmul.f32 0.5, %v2077_v36 }
0x1110   :  { %v2079_v39 = vsub.f32 1.5, %v2078_v37 }
0x1111   :  { %v4249_v40 = vpop.eup %4248 }
0x1112   :  { %v2080_v38 = vmul.f32 %v4247_v28, %v2079_v39  ;;  %v2086_v45 = vmul.f32 %v4249_v40, %v2074_v31  ;;  %vm2092_vm13 = vweird.f32 %v4249_v40  ;;  %v2115_v31 = vand.u32 31, %v5381_v26 }
0x1113   :  { %vm2093_vm15 = vmor %vm2091_vm14, %vm2092_vm13 }
0x1114   :  { %v2084_v29 = vsel %vm2083_vm12, %v4247_v28, %v2080_v38  ;;  %v2087_v50 = vmul.f32 %v4249_v40, %v2086_v45  ;;  %v4142_v28 = vld [vmem:[%s5759_s20] ss:$0 sm:$0xff]  ;;  %vm5385_vm5 = vcmp.lt.s32.totalorder %v2115_v31, 16 }
0x1115   :  { %v2095_v51 = vmul.f32 %v2084_v29, %v2061_v9 }
0x1116   :  { %v2088_v18 = vmul.f32 0.5, %v2087_v50 }
0x1117   :  { %v2100_v54 = vmul.f32 %v4139_v42, %v2095_v51 }
0x1118   :  { %v2089_v52 = vsub.f32 1.5, %v2088_v18 }
0x1119   :  { %v2105_v59 = vadd.f32 %v4140_v56, %v2100_v54 }
0x111a   :  { %v2090_v11 = vmul.f32 %v4249_v40, %v2089_v52 }
0x111b   :  { %v5343_v61 = vadd.f32 %v2105_v59, %v4910_v14 }
0x111c   :  { %v2094_v57 = vsel %vm2093_vm15, %v4249_v40, %v2090_v11 }
0x111d   :  { %v2096_v58 = vmul.f32 %v2094_v57, %v2062_v17  ;;  %v2129_v30 = vrot.slane %v5343_v61, 7  ;;  %v2141_v63 = vrot.slane %v5343_v61, 4  ;;  %v2145_v14 = vrot.slane %v5343_v61, 3 }
0x111e   :  { %v2133_v2 = vrot.slane %v5343_v61, 6  ;;  %v2149_v4 = vrot.slane %v5343_v61, 2  ;;  %v2137_v41 = vrot.slane %v5343_v61, 5  ;;  %v2153_v10 = vrot.slane %v5343_v61, 1 }
0x111f   :  { %v2101_v60 = vmul.f32 %v4139_v42, %v2096_v58 }
0x1121   :  { %v2106_v12 = vadd.f32 %v4140_v56, %v2101_v60  ;;  %v2276_v60 = vpop.permute.xlu2 %2275 }
0x1123   :  { %v5346_v47 = vadd.f32 %v2106_v12, %v4912_v15 }
0x1125   :  { %v2126_v62 = vrot.slane %v5346_v47, 7  ;;  %v2143_v0 = vrot.slane %v5346_v47, 3  ;;  %v2131_v1 = vrot.slane %v5346_v47, 6  ;;  %v2147_v53 = vrot.slane %v5346_v47, 2 }
0x1126   :  { %v2135_v3 = vrot.slane %v5346_v47, 5  ;;  %v2151_v8 = vrot.slane %v5346_v47, 1  ;;  %v2139_v24 = vrot.slane %v5346_v47, 4 }
0x1127   :  { %v2156_v15 = vsel %vm2155_vm1, %v5343_v61, %v2126_v62  ;;  %v2167_v32 = vsel %vm2155_vm1, %v2141_v63, %v2143_v0 }
0x1128   :  { %v2157_v34 = vsel %vm305_vm0, %v2156_v15, %v2129_v30  ;;  %v2168_v27 = vsel %vm305_vm0, %v2167_v32, %v2145_v14 }
0x1129   :  { %v2159_v46 = vsel %vm2158_vm7, %v2157_v34, %v2131_v1  ;;  %v2169_v33 = vsel %vm2158_vm7, %v2168_v27, %v2147_v53 }
0x112a   :  { %v2160_v9 = vsel %vm479_vm4, %v2159_v46, %v2133_v2  ;;  %v2170_v17 = vsel %vm479_vm4, %v2169_v33, %v2149_v4 }
0x112b   :  { %v2162_v13 = vsel %vm2161_vm8, %v2160_v9, %v2135_v3  ;;  %v2171_v20 = vsel %vm2161_vm8, %v2170_v17, %v2151_v8 }
0x112c   :  { %v2164_v5 = vsel %vm2163_vm9, %v2162_v13, %v2137_v41  ;;  %v2172_v22 = vsel %vm2163_vm9, %v2171_v20, %v2153_v10 }
0x112d   :  { %v2166_v21 = vsel %vm2165_vm3, %v2164_v5, %v2139_v24  ;;  %v2173_v23 = vsel %vm2165_vm3, %v2172_v22, %v5346_v47 }
0x112e   :  { %v2184_v25 = vpack.c.bf16 %v2173_v23, %v2166_v21 }
0x1130   :  { %3861 = vmatmul.msk.bf16.vlgmr.msra.gmra.mxu2 %vm377_vm2, %v2184_v25 }
0x1131   :  { %2638 = vmatpush.bf16.msra.mxu2 %v5304_v6 }
0x1135   :  { %2639 = vmatpush.bf16.msra.mxu2 %v5308_v7 }
0x11b3   :  { %v2212_v49 = vpop.f32.mrf.mxu2 }
0x11b4   :  { %v2213_v35 = vadd.f32 %v4142_v28, %v2212_v49 }
0x11b6   :  { %v2491_v39 = vrot.slane %v2213_v35, 6  ;;  %v2557_v40 = vrot.slane %v2213_v35, 2 }
0x11bb   :  { %v2214_v37 = vpop.f32.mrf.mxu2 }
0x11bc   :  { %v2215_v44 = vadd.f32 %v4142_v28, %v2214_v37 }
0x11be   :  { %v2220_v38 = vrot.slane %v2215_v44, 6  ;;  %v2293_v6 = vrot.slane %v2215_v44, 2  ;;  %v5391_v7 = vsel %vm5385_vm5, %v2215_v44, %v2491_v39  ;;  %v5395_v45 = vsel %vm5385_vm5, %v2215_v44, %v2557_v40 }
0x11c0   :  { %v5399_v29 = vsel %vm5385_vm5, %v2213_v35, %v2220_v38  ;;  %v5403_v50 = vsel %vm5385_vm5, %v2213_v35, %v2293_v6 }
0x11c1   :  { %v2254_v42 = vadd.f32 %v5336_v48, %v5399_v29 }
0x11c3   :  { %v3870_v51 = vmul.f32 -1.442695, %v2254_v42 }
0x11c5   :  { %4250 = vpow2.f32 %v3870_v51 }
0x11cb   :  { %v4251_v18 = vpop.eup %4250 }
0x11cc   :  { %v2258_v52 = vadd.f32 1.0, %v4251_v18 }
0x11ce   :  { %4252 = vrcp.f32 %v2258_v52  ;;  %v2270_v11 = vand.u32 2147483648, %v2258_v52  ;;  %v2268_v58 = vand.u32 2147483647, %v2258_v52  ;;  %vm2264_vm10 = vweird.f32 %v2258_v52 }
0x11d0   :  { %v2271_v12 = vor.u32 1.1754944e-38, %v2270_v11  ;;  %vm2269_vm12 = vcmp.eq.f32.partialorder %v2268_v58, 8.507059e+37 }
0x11d4   :  { %v4253_v55 = vpop.eup %4252 }
0x11d5   :  { %v2260_v56 = vmul.f32 %v4253_v55, %v2258_v52  ;;  %vm2265_vm6 = vweird.f32 %v4253_v55 }
0x11d6   :  { %vm2266_vm11 = vmor %vm2264_vm10, %vm2265_vm6 }
0x11d7   :  { %v2261_v54 = vsub.f32 1.0, %v2260_v56 }
0x11d9   :  { %v2262_v57 = vmul.f32 %v4253_v55, %v2261_v54 }
0x11db   :  { %v2263_v59 = vadd.f32 %v4253_v55, %v2262_v57 }
0x11dd   :  { %v2267_v62 = vsel %vm2266_vm11, %v4253_v55, %v2263_v59 }
0x11de   :  { %v2272_v48 = vsel %vm2269_vm12, %v2271_v12, %v2267_v62 }
0x11df   :  { %v2278_v30 = vmul.f32 %v2276_v60, %v2272_v48  ;;  %v2285_v14 = vsub.f32 1.0, %v2272_v48  ;;  %v2291_v2 = vmul.f32 0.0, %v2272_v48 }
0x11e1   :  { %2280 = vrot.lane.b32.xlu0 %v2278_v30, %s4623_s15 }
0x1253   :  { %v2281_v63 = vpop.permute.xlu0 %2280 }
0x1254   :  { %v2283_v0 = vadd.f32 %v2281_v63, %v5399_v29 }
0x1256   :  { %4254 = vtanh.f32 %v2283_v0 }
0x125c   :  { %v4255_v1 = vpop.eup %4254 }
0x125d   :  { %2287 = vrot.lane.b32.xlu1 %v4255_v1, %s4617_s9 }
0x12cf   :  { %v2288_v15 = vpop.permute.xlu1 %2287 }
0x12d0   :  { %v2290_v53 = vmul.f32 %v2288_v15, %v2285_v14 }
0x12d2   :  { %v5410_v34 = vadd.f32 %v2291_v2, %v2290_v53 }
0x12d4   :  { %v2296_v32 = vpack.c.bf16 %v5410_v34, %v5410_v34  ;;  %v2356_v40 = vrot.slane %v5410_v34, 6 }
0x12d6   :  { %2298 = vrot.lane.b32.xlu0 %v2296_v32, %s4617_s9 }
0x1348   :  { %v2299_v3 = vpop.permute.xlu0 %2298 }
0x1349   :  { %3871 = vmatmul.msk.bf16.vlgmr.msra.gmra.mxu0 %vm377_vm2, %v2299_v3 }
0x13c6   :  { %v2312_v4 = vpop.f32.mrf.mxu0 }
0x13c7   :  { %v2313_v46 = vadd.f32 %v5333_v43, %v2312_v4 }
0x13c9   :  { %v2317_v27 = vrot.slane %v2313_v46, 6 }
0x13cb   :  { %2339 = vrot.lane.b32.xlu2 %v2317_v27, %s4623_s15  ;;  %v2319_v8 = vadd.f32 %v2317_v27, %v5403_v50 }
0x13cd   :  { %v3872_v9 = vmul.f32 -1.442695, %v2319_v8 }
0x13ce   :  { %v2314_v41 = vpop.f32.mrf.mxu0 }
0x13cf   :  { %4256 = vpow2.f32 %v3872_v9 }
0x13d5   :  { %v4257_v33 = vpop.eup %4256 }
0x13d6   :  { %v2323_v24 = vadd.f32 1.0, %v4257_v33 }
0x13d8   :  { %4258 = vrcp.f32 %v2323_v24  ;;  %v2335_v21 = vand.u32 2147483648, %v2323_v24  ;;  %vm2329_vm14 = vweird.f32 %v2323_v24  ;;  %v2333_v22 = vand.u32 2147483647, %v2323_v24 }
0x13da   :  { %v2336_v25 = vor.u32 1.1754944e-38, %v2335_v21  ;;  %vm2334_vm7 = vcmp.eq.f32.partialorder %v2333_v22, 8.507059e+37 }
0x13de   :  { %v4259_v10 = vpop.eup %4258 }
0x13df   :  { %v2325_v13 = vmul.f32 %v4259_v10, %v2323_v24  ;;  %vm2330_vm13 = vweird.f32 %v4259_v10 }
0x13e0   :  { %vm2331_vm15 = vmor %vm2329_vm14, %vm2330_vm13 }
0x13e1   :  { %v2326_v17 = vsub.f32 1.0, %v2325_v13 }
0x13e3   :  { %v2327_v5 = vmul.f32 %v4259_v10, %v2326_v17 }
0x13e5   :  { %v2328_v20 = vadd.f32 %v4259_v10, %v2327_v5 }
0x13e7   :  { %v2332_v23 = vsel %vm2331_vm15, %v4259_v10, %v2328_v20 }
0x13e8   :  { %v2337_v49 = vsel %vm2334_vm7, %v2336_v25, %v2332_v23 }
0x13e9   :  { %v2349_v39 = vsub.f32 1.0, %v2337_v49  ;;  %v2358_v38 = vmul.f32 %v2356_v40, %v2337_v49 }
0x1425   :  { %v2340_v16 = vpop.permute.xlu2 %2339 }
0x1426   :  { %v2342_v28 = vmul.f32 %v2340_v16, %v2337_v49 }
0x1428   :  { %2344 = vrot.lane.b32.xlu0 %v2342_v28, %s4623_s15 }
0x149a   :  { %v2345_v31 = vpop.permute.xlu0 %2344 }
0x149b   :  { %v2347_v35 = vadd.f32 %v2345_v31, %v5403_v50 }
0x149d   :  { %4260 = vtanh.f32 %v2347_v35 }
0x14a3   :  { %v4261_v37 = vpop.eup %4260 }
0x14a4   :  { %2351 = vrot.lane.b32.xlu1 %v4261_v37, %s4617_s9 }
0x1516   :  { %v2352_v44 = vpop.permute.xlu1 %2351 }
0x1517   :  { %v2354_v6 = vmul.f32 %v2352_v44, %v2349_v39 }
0x1519   :  { %v5423_v42 = vadd.f32 %v2358_v38, %v2354_v6 }
0x151b   :  { %v2360_v51 = vpack.c.bf16 %v5423_v42, %v5423_v42  ;;  %v2421_v41 = vrot.slane %v5423_v42, 6 }
0x151d   :  { %v2362_v18 = vrot.slane %v2360_v51, 1 }
0x151f   :  { %2363 = vrot.lane.b32.xlu2 %v2362_v18, %s4617_s9 }
0x1579   :  { %v2364_v52 = vpop.permute.xlu2 %2363 }
0x157a   :  { %3873 = vmatmul.msk.bf16.vlgmr.msrb.gmra.mxu2 %vm377_vm2, %v2364_v52 }
0x15fd   :  { %v2377_v55 = vpop.f32.mrf.mxu2 }
0x15fe   :  { %v2378_v56 = vadd.f32 %v5333_v43, %v2377_v55 }
0x1600   :  { %v2382_v54 = vrot.slane %v2378_v56, 4 }
0x1602   :  { %2404 = vrot.lane.b32.xlu0 %v2382_v54, %s4623_s15  ;;  %v2384_v57 = vadd.f32 %v2382_v54, %v5399_v29 }
0x1604   :  { %v3874_v58 = vmul.f32 -1.442695, %v2384_v57 }
0x1605   :  { %v2379_v11 = vpop.f32.mrf.mxu2 }
0x1606   :  { %4262 = vpow2.f32 %v3874_v58 }
0x160c   :  { %v4263_v59 = vpop.eup %4262 }
0x160d   :  { %v2388_v60 = vadd.f32 1.0, %v4263_v59 }
0x160f   :  { %4264 = vrcp.f32 %v2388_v60  ;;  %v2400_v0 = vand.u32 2147483648, %v2388_v60  ;;  %vm2394_vm3 = vweird.f32 %v2388_v60  ;;  %v2398_v1 = vand.u32 2147483647, %v2388_v60 }
0x1611   :  { %v2401_v15 = vor.u32 1.1754944e-38, %v2400_v0  ;;  %vm2399_vm10 = vcmp.eq.f32.partialorder %v2398_v1, 8.507059e+37 }
0x1615   :  { %v4265_v12 = vpop.eup %4264 }
0x1616   :  { %v2390_v62 = vmul.f32 %v4265_v12, %v2388_v60  ;;  %vm2395_vm8 = vweird.f32 %v4265_v12 }
0x1617   :  { %vm2396_vm6 = vmor %vm2394_vm3, %vm2395_vm8 }
0x1618   :  { %v2391_v48 = vsub.f32 1.0, %v2390_v62 }
0x161a   :  { %v2392_v30 = vmul.f32 %v4265_v12, %v2391_v48 }
0x161c   :  { %v2393_v63 = vadd.f32 %v4265_v12, %v2392_v30 }
0x161e   :  { %v2397_v14 = vsel %vm2396_vm6, %v4265_v12, %v2393_v63 }
0x161f   :  { %v2402_v53 = vsel %vm2399_vm10, %v2401_v15, %v2397_v14 }
0x1620   :  { %v2414_v27 = vsub.f32 1.0, %v2402_v53  ;;  %v2423_v9 = vmul.f32 %v2421_v41, %v2402_v53 }
0x1674   :  { %v2405_v2 = vpop.permute.xlu0 %2404 }
0x1675   :  { %v2407_v32 = vmul.f32 %v2405_v2, %v2402_v53 }
0x1677   :  { %2409 = vrot.lane.b32.xlu1 %v2407_v32, %s4623_s15 }
0x16e9   :  { %v2410_v3 = vpop.permute.xlu1 %2409 }
0x16ea   :  { %v2412_v4 = vadd.f32 %v2410_v3, %v5399_v29 }
0x16ec   :  { %4266 = vtanh.f32 %v2412_v4 }
0x16f2   :  { %v4267_v46 = vpop.eup %4266 }
0x16f3   :  { %2416 = vrot.lane.b32.xlu2 %v4267_v46, %s4617_s9 }
0x174d   :  { %v2417_v8 = vpop.permute.xlu2 %2416 }
0x174e   :  { %v2419_v33 = vmul.f32 %v2417_v8, %v2414_v27 }
0x1750   :  { %v5436_v24 = vadd.f32 %v2423_v9, %v2419_v33 }
0x1752   :  { %v2425_v10 = vpack.c.bf16 %v5436_v24, %v5436_v24  ;;  %v2486_v11 = vrot.slane %v5436_v24, 6 }
0x1754   :  { %v2427_v13 = vrot.slane %v2425_v10, 2 }
0x1756   :  { %2428 = vrot.lane.b32.xlu0 %v2427_v13, %s4617_s9 }
0x17c8   :  { %v2429_v17 = vpop.permute.xlu0 %2428 }
0x17c9   :  { %3875 = vmatmul.msk.bf16.vlgmr.msrb.gmra.mxu3 %vm377_vm2, %v2429_v17 }
0x184c   :  { %v2442_v29 = vpop.f32.mrf.mxu3 }
0x184d   :  { %v2443_v5 = vadd.f32 %v5333_v43, %v2442_v29 }
0x184f   :  { %v2447_v20 = vrot.slane %v2443_v5, 2 }
0x1851   :  { %2469 = vrot.lane.b32.xlu1 %v2447_v20, %s4623_s15  ;;  %v2449_v22 = vadd.f32 %v2447_v20, %v5403_v50 }
0x1853   :  { %v3876_v23 = vmul.f32 -1.442695, %v2449_v22 }
0x1854   :  { %v2444_v21 = vpop.f32.mrf.mxu3 }
0x1855   :  { %4268 = vpow2.f32 %v3876_v23 }
0x185b   :  { %v4269_v25 = vpop.eup %4268 }
0x185c   :  { %v2453_v16 = vadd.f32 1.0, %v4269_v25 }
0x185e   :  { %4270 = vrcp.f32 %v2453_v16  ;;  %v2465_v39 = vand.u32 2147483648, %v2453_v16  ;;  %vm2459_vm12 = vweird.f32 %v2453_v16  ;;  %v2463_v40 = vand.u32 2147483647, %v2453_v16 }
0x1860   :  { %v2466_v38 = vor.u32 1.1754944e-38, %v2465_v39  ;;  %vm2464_vm14 = vcmp.eq.f32.partialorder %v2463_v40, 8.507059e+37 }
0x1864   :  { %v4271_v49 = vpop.eup %4270 }
0x1865   :  { %v2455_v28 = vmul.f32 %v4271_v49, %v2453_v16  ;;  %vm2460_vm11 = vweird.f32 %v4271_v49 }
0x1866   :  { %vm2461_vm13 = vmor %vm2459_vm12, %vm2460_vm11 }
0x1867   :  { %v2456_v31 = vsub.f32 1.0, %v2455_v28 }
0x1869   :  { %v2457_v35 = vmul.f32 %v4271_v49, %v2456_v31 }
0x186b   :  { %v2458_v37 = vadd.f32 %v4271_v49, %v2457_v35 }
0x186d   :  { %v2462_v44 = vsel %vm2461_vm13, %v4271_v49, %v2458_v37 }
0x186e   :  { %v2467_v51 = vsel %vm2464_vm14, %v2466_v38, %v2462_v44 }
0x186f   :  { %v2479_v54 = vsub.f32 1.0, %v2467_v51  ;;  %v2488_v58 = vmul.f32 %v2486_v11, %v2467_v51 }
0x18c3   :  { %v2470_v6 = vpop.permute.xlu1 %2469 }
0x18c4   :  { %v2472_v18 = vmul.f32 %v2470_v6, %v2467_v51 }
0x18c6   :  { %2474 = vrot.lane.b32.xlu2 %v2472_v18, %s4623_s15 }
0x1920   :  { %v2475_v52 = vpop.permute.xlu2 %2474 }
0x1921   :  { %v2477_v55 = vadd.f32 %v2475_v52, %v5403_v50 }
0x1923   :  { %4272 = vtanh.f32 %v2477_v55 }
0x1929   :  { %v4273_v56 = vpop.eup %4272 }
0x192a   :  { %2481 = vrot.lane.b32.xlu0 %v4273_v56, %s4617_s9 }
0x199c   :  { %v2482_v57 = vpop.permute.xlu0 %2481 }
0x199d   :  { %v2484_v59 = vmul.f32 %v2482_v57, %v2479_v54 }
0x199f   :  { %v5449_v60 = vadd.f32 %v2488_v58, %v2484_v59 }
0x19a1   :  { %v2494_v12 = vpack.c.bf16 %v5449_v60, %v5449_v60  ;;  %v2553_v5 = vrot.slane %v5449_v60, 6 }
0x19a3   :  { %v2496_v62 = vrot.slane %v2494_v12, 3 }
0x19a5   :  { %2497 = vrot.lane.b32.xlu1 %v2496_v62, %s4617_s9 }
0x1a17   :  { %v2498_v48 = vpop.permute.xlu1 %2497 }
0x1a18   :  { %3877 = vmatmul.msk.bf16.vlgmr.msrb.gmra.mxu0 %vm377_vm2, %v2498_v48 }
0x1a95   :  { %v2511_v50 = vpop.f32.mrf.mxu0 }
0x1a96   :  { %v2512_v30 = vadd.f32 %v5333_v43, %v2511_v50 }
0x1a98   :  { %2536 = vrot.lane.b32.xlu2 %v2512_v30, %s4623_s15  ;;  %v2515_v0 = vadd.f32 %v2512_v30, %v5391_v7 }
0x1a9a   :  { %v3878_v1 = vmul.f32 -1.442695, %v2515_v0 }
0x1a9c   :  { %4274 = vpow2.f32 %v3878_v1 }
0x1a9d   :  { %v2513_v63 = vpop.f32.mrf.mxu0 }
0x1aa2   :  { %v4275_v14 = vpop.eup %4274 }
0x1aa3   :  { %v2519_v15 = vadd.f32 1.0, %v4275_v14 }
0x1aa5   :  { %4276 = vrcp.f32 %v2519_v15  ;;  %v2531_v46 = vand.u32 2147483648, %v2519_v15  ;;  %vm2525_vm7 = vweird.f32 %v2519_v15  ;;  %v2529_v27 = vand.u32 2147483647, %v2519_v15 }
0x1aa7   :  { %v2532_v8 = vor.u32 1.1754944e-38, %v2531_v46  ;;  %vm2530_vm3 = vcmp.eq.f32.partialorder %v2529_v27, 8.507059e+37 }
0x1aab   :  { %v4277_v2 = vpop.eup %4276 }
0x1aac   :  { %v2521_v53 = vmul.f32 %v4277_v2, %v2519_v15  ;;  %vm2526_vm15 = vweird.f32 %v4277_v2 }
0x1aad   :  { %vm2527_vm8 = vmor %vm2525_vm7, %vm2526_vm15 }
0x1aae   :  { %v2522_v32 = vsub.f32 1.0, %v2521_v53  ;;  %v2774_v53 = vrot.slane %v5436_v24, 4 }
0x1ab0   :  { %v2523_v3 = vmul.f32 %v4277_v2, %v2522_v32 }
0x1ab2   :  { %v2524_v4 = vadd.f32 %v4277_v2, %v2523_v3 }
0x1ab4   :  { %v2528_v41 = vsel %vm2527_vm8, %v4277_v2, %v2524_v4 }
0x1ab5   :  { %v2533_v33 = vsel %vm2530_vm3, %v2532_v8, %v2528_v41 }
0x1ab6   :  { %v2546_v20 = vsub.f32 1.0, %v2533_v33  ;;  %v2555_v22 = vmul.f32 %v2553_v5, %v2533_v33 }
0x1af2   :  { %v2537_v9 = vpop.permute.xlu2 %2536 }
0x1af3   :  { %v2539_v10 = vmul.f32 %v2537_v9, %v2533_v33 }
0x1af5   :  { %2541 = vrot.lane.b32.xlu0 %v2539_v10, %s4623_s15 }
0x1b67   :  { %v2542_v13 = vpop.permute.xlu0 %2541 }
0x1b68   :  { %v2544_v17 = vadd.f32 %v2542_v13, %v5391_v7 }
0x1b6a   :  { %4278 = vtanh.f32 %v2544_v17 }
0x1b70   :  { %v4279_v29 = vpop.eup %4278 }
0x1b71   :  { %2548 = vrot.lane.b32.xlu1 %v4279_v29, %s4617_s9 }
0x1be3   :  { %v2549_v21 = vpop.permute.xlu1 %2548 }
0x1be4   :  { %v2551_v23 = vmul.f32 %v2549_v21, %v2546_v20 }
0x1be6   :  { %v5464_v25 = vadd.f32 %v2555_v22, %v2551_v23 }
0x1be8   :  { %v2560_v16 = vpack.c.bf16 %v5464_v25, %v5464_v25  ;;  %v2620_v63 = vrot.slane %v5464_v25, 6 }
0x1bea   :  { %2562 = vrot.lane.b32.xlu2 %v2560_v16, %s4617_s9 }
0x1c44   :  { %v2563_v49 = vpop.permute.xlu2 %2562 }
0x1c45   :  { %3879 = vmatmul.msk.bf16.vlgmr.msrb.gmra.mxu1 %vm377_vm2, %v2563_v49 }
0x1cc2   :  { %v2576_v28 = vpop.f32.mrf.mxu1 }
0x1cc3   :  { %v2577_v31 = vadd.f32 %v5333_v43, %v2576_v28 }
0x1cc5   :  { %v2581_v35 = vrot.slane %v2577_v31, 6 }
0x1cc7   :  { %2603 = vrot.lane.b32.xlu0 %v2581_v35, %s4623_s15  ;;  %v2583_v39 = vadd.f32 %v2581_v35, %v5395_v45 }
0x1cc9   :  { %v3880_v40 = vmul.f32 -1.442695, %v2583_v39 }
0x1cca   :  { %v2578_v37 = vpop.f32.mrf.mxu1 }
0x1ccb   :  { %4280 = vpow2.f32 %v3880_v40 }
0x1cd1   :  { %v4281_v44 = vpop.eup %4280 }
0x1cd2   :  { %v2587_v38 = vadd.f32 1.0, %v4281_v44 }
0x1cd4   :  { %4282 = vrcp.f32 %v2587_v38  ;;  %v2599_v56 = vand.u32 2147483648, %v2587_v38  ;;  %vm2593_vm10 = vweird.f32 %v2587_v38  ;;  %v2597_v54 = vand.u32 2147483647, %v2587_v38 }
0x1cd6   :  { %v2600_v57 = vor.u32 1.1754944e-38, %v2599_v56  ;;  %vm2598_vm12 = vcmp.eq.f32.partialorder %v2597_v54, 8.507059e+37  ;;  %v2765_v54 = vrot.slane %v5423_v42, 2 }
0x1cda   :  { %v4283_v6 = vpop.eup %4282 }
0x1cdb   :  { %v2589_v51 = vmul.f32 %v4283_v6, %v2587_v38  ;;  %vm2594_vm6 = vweird.f32 %v4283_v6 }
0x1cdc   :  { %vm2595_vm11 = vmor %vm2593_vm10, %vm2594_vm6 }
0x1cdd   :  { %v2590_v18 = vsub.f32 1.0, %v2589_v51 }
0x1cdf   :  { %v2591_v52 = vmul.f32 %v4283_v6, %v2590_v18 }
0x1ce1   :  { %v2592_v55 = vadd.f32 %v4283_v6, %v2591_v52 }
0x1ce3   :  { %v2596_v11 = vsel %vm2595_vm11, %v4283_v6, %v2592_v55  ;;  %vm2124_vm11 = vcmp.lt.s32.totalorder %v5381_v26, 16 }
0x1ce4   :  { %v2601_v59 = vsel %vm2598_vm12, %v2600_v57, %v2596_v11 }
0x1ce5   :  { %v2613_v30 = vsub.f32 1.0, %v2601_v59  ;;  %v2622_v1 = vmul.f32 %v2620_v63, %v2601_v59 }
0x1d39   :  { %v2604_v58 = vpop.permute.xlu0 %2603 }
0x1d3a   :  { %v2606_v12 = vmul.f32 %v2604_v58, %v2601_v59 }
0x1d3c   :  { %2608 = vrot.lane.b32.xlu1 %v2606_v12, %s4623_s15 }
0x1dae   :  { %v2609_v62 = vpop.permute.xlu1 %2608 }
0x1daf   :  { %v2611_v48 = vadd.f32 %v2609_v62, %v5395_v45 }
0x1db1   :  { %4284 = vtanh.f32 %v2611_v48 }
0x1db7   :  { %v4285_v50 = vpop.eup %4284 }
0x1db8   :  { %2615 = vrot.lane.b32.xlu2 %v4285_v50, %s4617_s9 }
0x1e12   :  { %v2616_v0 = vpop.permute.xlu2 %2615 }
0x1e13   :  { %v2618_v14 = vmul.f32 %v2616_v0, %v2613_v30  ;;  %v4114_v0 = vpack.i.bf16 %v5464_v25, %v2553_v5 }
0x1e15   :  { %v2623_v15 = vadd.f32 %v2622_v1, %v2618_v14 }
0x1e17   :  { %v2624_v2 = vpack.c.bf16 %v2623_v15, %v2623_v15  ;;  %v2778_v32 = vrot.slane %v2623_v15, 2  ;;  %v2685_v6 = vrot.slane %v2623_v15, 6 }
0x1e19   :  { %v2626_v3 = vrot.slane %v2624_v2, 1  ;;  %v5478_v4 = vpack.i.bf16 %v2778_v32, %v2774_v53 }
0x1e1b   :  { %2627 = vrot.lane.b32.xlu0 %v2626_v3, %s4617_s9 }
0x1e8d   :  { %v2628_v46 = vpop.permute.xlu0 %2627 }
0x1e8e   :  { %3881 = vmatmul.msk.bf16.vlgmr.msra.gmra.mxu2 %vm377_vm2, %v2628_v46 }
0x1f11   :  { %v2641_v27 = vpop.f32.mrf.mxu2 }
0x1f12   :  { %v2642_v41 = vadd.f32 %v5333_v43, %v2641_v27 }
0x1f14   :  { %v2646_v8 = vrot.slane %v2642_v41, 4 }
0x1f16   :  { %2668 = vrot.lane.b32.xlu1 %v2646_v8, %s4623_s15  ;;  %v2648_v33 = vadd.f32 %v2646_v8, %v5391_v7 }
0x1f18   :  { %v3882_v10 = vmul.f32 -1.442695, %v2648_v33 }
0x1f19   :  { %v2643_v9 = vpop.f32.mrf.mxu2 }
0x1f1a   :  { %4286 = vpow2.f32 %v3882_v10  ;;  %v5505_v10 = vld [vmem:[%s5762_s11 + $0x8] sm:$0xff] }
0x1f1b   :  { %2886 = vmatpush.bf16.msra.mxu1 %v5505_v10  ;;  %2948 = vmatpush.bf16.msrb.mxu2 %v5505_v10 }
0x1f1c   :  { %3013 = vmatpush.bf16.msrb.mxu3 %v5505_v10 }
0x1f20   :  { %v4287_v24 = vpop.eup %4286 }
0x1f21   :  { %v2652_v13 = vadd.f32 1.0, %v4287_v24  ;;  %v5509_v24 = vld [vmem:[%s5762_s11] sm:$0xff] }
0x1f22   :  { %2887 = vmatpush.bf16.msra.mxu1 %v5509_v24  ;;  %2949 = vmatpush.bf16.msrb.mxu2 %v5509_v24 }
0x1f23   :  { %4288 = vrcp.f32 %v2652_v13  ;;  %v2664_v23 = vand.u32 2147483648, %v2652_v13  ;;  %vm2658_vm14 = vweird.f32 %v2652_v13  ;;  %v2662_v16 = vand.u32 2147483647, %v2652_v13  ;;  %3014 = vmatpush.bf16.msrb.mxu3 %v5509_v24 }
0x1f25   :  { %v2665_v28 = vor.u32 1.1754944e-38, %v2664_v23  ;;  %vm2663_vm7 = vcmp.eq.f32.partialorder %v2662_v16, 8.507059e+37  ;;  %2888 = vmatmul.bf16.vlgmr.msra.gmra.mxu1 %v4632_v19  ;;  %v5530_v23 = vld [vmem:[%s5764_s18] ss:$0 sm:$0xff] }
0x1f26   :  { %3147 = vmatpush.bf16.msrb.mxu1 %v5505_v10  ;;  %3212 = vmatpush.bf16.msra.mxu2 %v5505_v10 }
0x1f29   :  { %v4289_v17 = vpop.eup %4288 }
0x1f2a   :  { %v2654_v29 = vmul.f32 %v4289_v17, %v2652_v13  ;;  %vm2659_vm13 = vweird.f32 %v4289_v17  ;;  %3148 = vmatpush.bf16.msrb.mxu1 %v5509_v24  ;;  %3213 = vmatpush.bf16.msra.mxu2 %v5509_v24 }
0x1f2b   :  { %vm2660_vm15 = vmor %vm2658_vm14, %vm2659_vm13 }
0x1f2c   :  { %v2655_v20 = vsub.f32 1.0, %v2654_v29 }
0x1f2e   :  { %v2656_v21 = vmul.f32 %v4289_v17, %v2655_v20 }
0x1f30   :  { %v2657_v22 = vadd.f32 %v4289_v17, %v2656_v21  ;;  %v3985_v21 = vld [vmem:[%s5763_s16 + $0x8] sm:$0xff] }
0x1f31   :  { %2853 = vmatpush.bf16.msra.mxu0 %v3985_v21 }
0x1f32   :  { %v2661_v49 = vsel %vm2660_vm15, %v4289_v17, %v2657_v22  ;;  %v3984_v22 = vld [vmem:[%s5763_s16] sm:$0xff] }
0x1f33   :  { %v2666_v35 = vsel %vm2663_vm7, %v2665_v28, %v2661_v49 }
0x1f34   :  { %v2678_v38 = vsub.f32 1.0, %v2666_v35  ;;  %v2687_v18 = vmul.f32 %v2685_v6, %v2666_v35 }
0x1f35   :  { %2854 = vmatpush.bf16.msra.mxu0 %v3984_v22 }
0x1f39   :  { %3078 = vmatpush.bf16.msrb.mxu0 %v5505_v10 }
0x1f3d   :  { %3079 = vmatpush.bf16.msrb.mxu0 %v5509_v24 }
0x1f88   :  { %v2669_v31 = vpop.permute.xlu1 %2668 }
0x1f89   :  { %v2671_v37 = vmul.f32 %v2669_v31, %v2666_v35 }
0x1f8b   :  { %2673 = vrot.lane.b32.xlu2 %v2671_v37, %s4623_s15 }
0x1fa2   :  { %v2889_v49 = vpop.f32.mrf.mxu1 }
0x1fa3   :  { %v2890_v28 = vadd.f32 %v5530_v23, %v2889_v49 }
0x1fe5   :  { %v2674_v39 = vpop.permute.xlu2 %2673 }
0x1fe6   :  { %v2676_v40 = vadd.f32 %v2674_v39, %v5391_v7 }
0x1fe8   :  { %4290 = vtanh.f32 %v2676_v40 }
0x1fee   :  { %v4291_v44 = vpop.eup %4290 }
0x1fef   :  { %2680 = vrot.lane.b32.xlu0 %v4291_v44, %s4617_s9  ;;  %v2891_v44 = vpop.f32.mrf.mxu1 }
0x2061   :  { %v2681_v51 = vpop.permute.xlu0 %2680 }
0x2062   :  { %v2683_v52 = vmul.f32 %v2681_v51, %v2678_v38 }
0x2064   :  { %v2688_v55 = vadd.f32 %v2687_v18, %v2683_v52 }
0x2066   :  { %v2689_v56 = vpack.c.bf16 %v2688_v55, %v2688_v55  ;;  %v2769_v11 = vrot.slane %v2688_v55, 4  ;;  %v2750_v60 = vrot.slane %v2688_v55, 6 }
0x2068   :  { %v2691_v57 = vrot.slane %v2689_v56, 2  ;;  %v4099_v58 = vpack.i.bf16 %v2769_v11, %v2765_v54 }
0x206a   :  { %2692 = vrot.lane.b32.xlu1 %v2691_v57, %s4617_s9 }
0x20dc   :  { %v2693_v59 = vpop.permute.xlu1 %2692 }
0x20dd   :  { %3883 = vmatmul.msk.bf16.vlgmr.msra.gmra.mxu3 %vm377_vm2, %v2693_v59 }
0x20de   :  { %3277 = vmatpush.bf16.msra.mxu3 %v5505_v10 }
0x20e2   :  { %3278 = vmatpush.bf16.msra.mxu3 %v5509_v24 }
0x2160   :  { %v2706_v7 = vpop.f32.mrf.mxu3 }
0x2161   :  { %v2707_v12 = vadd.f32 %v5333_v43, %v2706_v7 }
0x2163   :  { %v2711_v62 = vrot.slane %v2707_v12, 2 }
0x2165   :  { %v2713_v48 = vadd.f32 %v2711_v62, %v5395_v45  ;;  %2733 = vrot.lane.b32.xlu2 %v2711_v62, %s4623_s15 }
0x2167   :  { %v3884_v50 = vmul.f32 -1.442695, %v2713_v48 }
0x2168   :  { %v2708_v30 = vpop.f32.mrf.mxu3 }
0x2169   :  { %4292 = vpow2.f32 %v3884_v50 }
0x216d   :  { %4100 = vrot.lane.b32.xlu2 %v4099_v58, %s4617_s9 }
0x216f   :  { %v4293_v42 = vpop.eup %4292 }
0x2170   :  { %v2717_v63 = vadd.f32 1.0, %v4293_v42 }
0x2172   :  { %4294 = vrcp.f32 %v2717_v63  ;;  %v2729_v15 = vand.u32 2147483648, %v2717_v63  ;;  %v2727_v53 = vand.u32 2147483647, %v2717_v63  ;;  %vm2723_vm3 = vweird.f32 %v2717_v63 }
0x2174   :  { %v2730_v3 = vor.u32 1.1754944e-38, %v2729_v15  ;;  %vm2728_vm10 = vcmp.eq.f32.partialorder %v2727_v53, 8.507059e+37  ;;  %v4144_v53 = vld [vmem:[%s5765_s22] ss:$0 sm:$0xff] }
0x2175   :  { %4115 = vrot.lane.b32.xlu2 %v4114_v0, %s4617_s9 }
0x2178   :  { %v4295_v43 = vpop.eup %4294 }
0x2179   :  { %v2719_v1 = vmul.f32 %v4295_v43, %v2717_v63  ;;  %vm2724_vm8 = vweird.f32 %v4295_v43 }
0x217a   :  { %vm2725_vm6 = vmor %vm2723_vm3, %vm2724_vm8 }
0x217b   :  { %v2720_v14 = vsub.f32 1.0, %v2719_v1 }
0x217d   :  { %v2721_v2 = vmul.f32 %v4295_v43, %v2720_v14 }
0x217f   :  { %v2722_v32 = vadd.f32 %v4295_v43, %v2721_v2 }
0x2181   :  { %v2726_v46 = vsel %vm2725_vm6, %v4295_v43, %v2722_v32 }
0x2182   :  { %v2731_v27 = vsel %vm2728_vm10, %v2730_v3, %v2726_v46 }
0x2183   :  { %v2752_v5 = vmul.f32 %v2750_v60, %v2731_v27 }
0x21bf   :  { %v2734_v25 = vpop.permute.xlu2 %2733 }
0x21c0   :  { %v2736_v41 = vmul.f32 %v2734_v25, %v2731_v27 }
0x21c2   :  { %2738 = vrot.lane.b32.xlu0 %v2736_v41, %s4623_s15 }
0x21c7   :  { %v4101_v19 = vpop.permute.xlu2 %4100 }
0x21c8   :  { %v4103_v37 = vunpack.i.h.bf16 %v4101_v19  ;;  %v4102_v39 = vunpack.i.l.bf16 %v4101_v19 }
0x21ca   :  { %4105 = vrot.lane.b32.xlu0 %v5478_v4, %s4617_s9  ;;  %v2773_v18 = vsel %vm2124_vm11, %v4102_v39, %v4103_v37  ;;  %v2792_v52 = vsel %vm2124_vm11, %v4103_v37, %v4102_v39 }
0x21cb   :  { %v2795_v59 = vrot.slane %v2773_v18, 6  ;;  %v2807_v12 = vrot.slane %v2792_v52, 4 }
0x21d2   :  { %2914 = vrot.lane.b32.xlu0 %v2890_v28, %s4623_s15 }
0x2234   :  { %v2739_v8 = vpop.permute.xlu0 %2738 }
0x2235   :  { %v2741_v9 = vadd.f32 %v2739_v8, %v5395_v45  ;;  %v2743_v45 = vsub.f32 1.0, %v2731_v27 }
0x2237   :  { %4296 = vtanh.f32 %v2741_v9 }
0x223c   :  { %v4106_v16 = vpop.permute.xlu0 %4105 }
0x223d   :  { %v4297_v33 = vpop.eup %4296  ;;  %v4108_v31 = vunpack.i.h.bf16 %v4106_v16  ;;  %v4107_v35 = vunpack.i.l.bf16 %v4106_v16 }
0x223e   :  { %2745 = vrot.lane.b32.xlu1 %v4297_v33, %s4617_s9 }
0x223f   :  { %v2791_v40 = vsel %vm2124_vm11, %v4108_v31, %v4107_v35  ;;  %v2782_v55 = vsel %vm2124_vm11, %v4107_v35, %v4108_v31 }
0x2240   :  { %v2804_v51 = vrot.slane %v2791_v40, 6  ;;  %v2798_v62 = vrot.slane %v2782_v55, 4 }
0x2244   :  { %v2915_v16 = vpop.permute.xlu0 %2914 }
0x22b0   :  { %v2746_v4 = vpop.permute.xlu1 %2745 }
0x22b1   :  { %v2748_v13 = vmul.f32 %v2746_v4, %v2743_v45 }
0x22b3   :  { %v2753_v17 = vadd.f32 %v2752_v5, %v2748_v13 }
0x22b5   :  { %v2760_v29 = vrot.slane %v2753_v17, 6 }
0x22b7   :  { %v4109_v20 = vpack.i.bf16 %v2760_v29, %v5410_v34  ;;  %v4116_v34 = vpop.permute.xlu2 %4115 }
0x22b8   :  { %v4118_v38 = vunpack.i.h.bf16 %v4116_v34  ;;  %v4117_v6 = vunpack.i.l.bf16 %v4116_v34 }
0x22b9   :  { %4110 = vrot.lane.b32.xlu1 %v4109_v20, %s4617_s9 }
0x22ba   :  { %v2789_v54 = vsel %vm2124_vm11, %v4117_v6, %v4118_v38  ;;  %v2790_v11 = vsel %vm2124_vm11, %v4118_v38, %v4117_v6 }
0x22bb   :  { %v2815_v7 = vsel %vm305_vm0, %v2790_v11, %v2804_v51  ;;  %v2801_v30 = vrot.slane %v2789_v54, 2 }
0x22bc   :  { %v2816_v43 = vsel %vm479_vm4, %v2815_v7, %v2807_v12 }
0x232b   :  { %v4111_v56 = vpop.permute.xlu1 %4110 }
0x232c   :  { %v4113_v57 = vunpack.i.h.bf16 %v4111_v56  ;;  %v4112_v58 = vunpack.i.l.bf16 %v4111_v56 }
0x232e   :  { %v2764_v48 = vsel %vm2124_vm11, %v4112_v58, %v4113_v57  ;;  %v2793_v50 = vsel %vm2124_vm11, %v4113_v57, %v4112_v58 }
0x232f   :  { %v2810_v42 = vrot.slane %v2793_v50, 2  ;;  %v2812_v63 = vsel %vm305_vm0, %v2764_v48, %v2795_v59 }
0x2330   :  { %v2813_v0 = vsel %vm479_vm4, %v2812_v63, %v2798_v62 }
0x2331   :  { %v2814_v1 = vsel %vm2163_vm9, %v2813_v0, %v2801_v30  ;;  %v2817_v14 = vsel %vm2163_vm9, %v2816_v43, %v2810_v42 }
0x2332   :  { %v2828_v15 = vpack.c.bf16 %v2817_v14, %v2814_v1 }
0x2334   :  { %3893 = vmatmul.msk.bf16.vlgmr.msra.gmra.mxu0 %vm377_vm2, %v2828_v15 }
0x2335   :  { %3342 = vmatpush.bf16.msra.mxu0 %v5505_v10 }
0x2339   :  { %3343 = vmatpush.bf16.msra.mxu0 %v5509_v24 }
0x23b1   :  { %v2856_v2 = vpop.f32.mrf.mxu0 }
0x23b2   :  { %v2857_v32 = vadd.f32 %v4144_v53, %v2856_v2 }
0x23b4   :  { %v3130_v46 = vrot.slane %v2857_v32, 6  ;;  %v3196_v60 = vrot.slane %v2857_v32, 2 }
0x23b9   :  { %v2858_v3 = vpop.f32.mrf.mxu0 }
0x23ba   :  { %v2859_v27 = vadd.f32 %v4144_v53, %v2858_v3 }
0x23bc   :  { %v2862_v5 = vrot.slane %v2859_v27, 6  ;;  %v2932_v25 = vrot.slane %v2859_v27, 2  ;;  %v5563_v41 = vsel %vm5385_vm5, %v2859_v27, %v3130_v46  ;;  %v5567_v8 = vsel %vm5385_vm5, %v2859_v27, %v3196_v60 }
0x23be   :  { %v5571_v9 = vsel %vm5385_vm5, %v2857_v32, %v2862_v5  ;;  %v5575_v33 = vsel %vm5385_vm5, %v2857_v32, %v2932_v25 }
0x23bf   :  { %v2893_v10 = vadd.f32 %v2890_v28, %v5571_v9 }
0x23c1   :  { %v3902_v24 = vmul.f32 -1.442695, %v2893_v10 }
0x23c3   :  { %4298 = vpow2.f32 %v3902_v24 }
0x23c9   :  { %v4299_v45 = vpop.eup %4298 }
0x23ca   :  { %v2897_v4 = vadd.f32 1.0, %v4299_v45 }
0x23cc   :  { %4300 = vrcp.f32 %v2897_v4  ;;  %v2909_v20 = vand.u32 2147483648, %v2897_v4  ;;  %v2907_v22 = vand.u32 2147483647, %v2897_v4  ;;  %vm2903_vm4 = vweird.f32 %v2897_v4 }
0x23ce   :  { %v2910_v36 = vor.u32 1.1754944e-38, %v2909_v20  ;;  %vm2908_vm5 = vcmp.eq.f32.partialorder %v2907_v22, 8.507059e+37 }
0x23d2   :  { %v4301_v13 = vpop.eup %4300 }
0x23d3   :  { %v2899_v17 = vmul.f32 %v4301_v13, %v2897_v4  ;;  %vm2904_vm0 = vweird.f32 %v4301_v13 }
0x23d4   :  { %vm2905_vm9 = vmor %vm2903_vm4, %vm2904_vm0 }
0x23d5   :  { %v2900_v29 = vsub.f32 1.0, %v2899_v17 }
0x23d7   :  { %v2901_v21 = vmul.f32 %v4301_v13, %v2900_v29 }
0x23d9   :  { %v2902_v19 = vadd.f32 %v4301_v13, %v2901_v21 }
0x23db   :  { %v2906_v49 = vsel %vm2905_vm9, %v4301_v13, %v2902_v19 }
0x23dc   :  { %v2911_v28 = vsel %vm2908_vm5, %v2910_v36, %v2906_v49 }
0x23dd   :  { %v2917_v31 = vmul.f32 %v2915_v16, %v2911_v28  ;;  %v2924_v39 = vsub.f32 1.0, %v2911_v28  ;;  %v2930_v44 = vmul.f32 0.0, %v2911_v28 }
0x23df   :  { %2919 = vrot.lane.b32.xlu1 %v2917_v31, %s4623_s15 }
0x2451   :  { %v2920_v35 = vpop.permute.xlu1 %2919 }
0x2452   :  { %v2922_v34 = vadd.f32 %v2920_v35, %v5571_v9 }
0x2454   :  { %4302 = vtanh.f32 %v2922_v34 }
0x245a   :  { %v4303_v37 = vpop.eup %4302 }
0x245b   :  { %2926 = vrot.lane.b32.xlu2 %v4303_v37, %s4617_s9 }
0x24b5   :  { %v2927_v40 = vpop.permute.xlu2 %2926 }
0x24b6   :  { %v2929_v38 = vmul.f32 %v2927_v40, %v2924_v39 }
0x24b8   :  { %v5581_v6 = vadd.f32 %v2930_v44, %v2929_v38 }
0x24ba   :  { %v2935_v51 = vpack.c.bf16 %v5581_v6, %v5581_v6  ;;  %v2995_v3 = vrot.slane %v5581_v6, 6 }
0x24bc   :  { %2937 = vrot.lane.b32.xlu0 %v2935_v51, %s4617_s9 }
0x252e   :  { %v2938_v18 = vpop.permute.xlu0 %2937 }
0x252f   :  { %3903 = vmatmul.msk.bf16.vlgmr.msrb.gmra.mxu2 %vm377_vm2, %v2938_v18 }
0x25b2   :  { %v2951_v52 = vpop.f32.mrf.mxu2 }
0x25b3   :  { %v2952_v55 = vadd.f32 %v5530_v23, %v2951_v52 }
0x25b5   :  { %v2956_v56 = vrot.slane %v2952_v55, 6 }
0x25b7   :  { %2978 = vrot.lane.b32.xlu1 %v2956_v56, %s4623_s15  ;;  %v2958_v11 = vadd.f32 %v2956_v56, %v5575_v33 }
0x25b9   :  { %v3904_v57 = vmul.f32 -1.442695, %v2958_v11 }
0x25ba   :  { %v2953_v54 = vpop.f32.mrf.mxu2 }
0x25bb   :  { %4304 = vpow2.f32 %v3904_v57 }
0x25c1   :  { %v4305_v58 = vpop.eup %4304 }
0x25c2   :  { %v2962_v59 = vadd.f32 1.0, %v4305_v58 }
0x25c4   :  { %4306 = vrcp.f32 %v2962_v59  ;;  %v2974_v30 = vand.u32 2147483648, %v2962_v59  ;;  %vm2968_vm13 = vweird.f32 %v2962_v59  ;;  %v2972_v42 = vand.u32 2147483647, %v2962_v59 }
0x25c6   :  { %v2975_v0 = vor.u32 1.1754944e-38, %v2974_v30  ;;  %vm2973_vm15 = vcmp.eq.f32.partialorder %v2972_v42, 8.507059e+37 }
0x25ca   :  { %v4307_v7 = vpop.eup %4306 }
0x25cb   :  { %v2964_v12 = vmul.f32 %v4307_v7, %v2962_v59  ;;  %vm2969_vm12 = vweird.f32 %v4307_v7 }
0x25cc   :  { %vm2970_vm14 = vmor %vm2968_vm13, %vm2969_vm12 }
0x25cd   :  { %v2965_v62 = vsub.f32 1.0, %v2964_v12 }
0x25cf   :  { %v2966_v48 = vmul.f32 %v4307_v7, %v2965_v62 }
0x25d1   :  { %v2967_v50 = vadd.f32 %v4307_v7, %v2966_v48 }
0x25d3   :  { %v2971_v63 = vsel %vm2970_vm14, %v4307_v7, %v2967_v50 }
0x25d4   :  { %v2976_v1 = vsel %vm2973_vm15, %v2975_v0, %v2971_v63 }
0x25d5   :  { %v2988_v32 = vsub.f32 1.0, %v2976_v1  ;;  %v2997_v60 = vmul.f32 %v2995_v3, %v2976_v1 }
0x2629   :  { %v2979_v43 = vpop.permute.xlu1 %2978 }
0x262a   :  { %v2981_v14 = vmul.f32 %v2979_v43, %v2976_v1 }
0x262c   :  { %2983 = vrot.lane.b32.xlu2 %v2981_v14, %s4623_s15 }
0x2686   :  { %v2984_v15 = vpop.permute.xlu2 %2983 }
0x2687   :  { %v2986_v2 = vadd.f32 %v2984_v15, %v5575_v33 }
0x2689   :  { %4308 = vtanh.f32 %v2986_v2 }
0x268f   :  { %v4309_v53 = vpop.eup %4308 }
0x2690   :  { %2990 = vrot.lane.b32.xlu0 %v4309_v53, %s4617_s9 }
0x2702   :  { %v2991_v46 = vpop.permute.xlu0 %2990 }
0x2703   :  { %v2993_v27 = vmul.f32 %v2991_v46, %v2988_v32 }
0x2705   :  { %v2998_v5 = vadd.f32 %v2997_v60, %v2993_v27 }
0x2707   :  { %v2999_v25 = vpack.c.bf16 %v2998_v5, %v2998_v5  ;;  %v3060_v37 = vrot.slane %v2998_v5, 6 }
0x2709   :  { %v3001_v10 = vrot.slane %v2999_v25, 1 }
0x270b   :  { %3002 = vrot.lane.b32.xlu1 %v3001_v10, %s4617_s9 }
0x277d   :  { %v3003_v24 = vpop.permute.xlu1 %3002 }
0x277e   :  { %3905 = vmatmul.msk.bf16.vlgmr.msrb.gmra.mxu3 %vm377_vm2, %v3003_v24 }
0x2801   :  { %v3016_v45 = vpop.f32.mrf.mxu3 }
0x2802   :  { %v3017_v4 = vadd.f32 %v5530_v23, %v3016_v45 }
0x2804   :  { %v3021_v13 = vrot.slane %v3017_v4, 4 }
0x2806   :  { %v3023_v17 = vadd.f32 %v3021_v13, %v5571_v9  ;;  %3043 = vrot.lane.b32.xlu2 %v3021_v13, %s4623_s15 }
0x2808   :  { %v3906_v29 = vmul.f32 -1.442695, %v3023_v17 }
0x2809   :  { %v3018_v20 = vpop.f32.mrf.mxu3 }
0x280a   :  { %4310 = vpow2.f32 %v3906_v29 }
0x2810   :  { %v4311_v21 = vpop.eup %4310 }
0x2811   :  { %v3027_v22 = vadd.f32 1.0, %v4311_v21 }
0x2813   :  { %4312 = vrcp.f32 %v3027_v22  ;;  %v3039_v49 = vand.u32 2147483648, %v3027_v22  ;;  %v3037_v31 = vand.u32 2147483647, %v3027_v22  ;;  %vm3033_vm8 = vweird.f32 %v3027_v22 }
0x2815   :  { %v3040_v34 = vor.u32 1.1754944e-38, %v3039_v49  ;;  %vm3038_vm6 = vcmp.eq.f32.partialorder %v3037_v31, 8.507059e+37 }
0x2819   :  { %v4313_v19 = vpop.eup %4312 }
0x281a   :  { %v3029_v16 = vmul.f32 %v4313_v19, %v3027_v22  ;;  %vm3034_vm7 = vweird.f32 %v4313_v19  ;;  %v3989_v22 = vld [vmem:[%s5766_s23 + $0x8] sm:$0xff] }
0x281b   :  { %vm3035_vm3 = vmor %vm3033_vm8, %vm3034_vm7  ;;  %3433 = vmatpush.bf16.msra.mxu1 %v3989_v22 }
0x281c   :  { %v3030_v36 = vsub.f32 1.0, %v3029_v16  ;;  %v3408_v16 = vpack.c.bf16 %v5346_v47, %v5343_v61 }
0x281e   :  { %v3031_v28 = vmul.f32 %v4313_v19, %v3030_v36 }
0x2820   :  { %v3032_v35 = vadd.f32 %v4313_v19, %v3031_v28 }
0x2822   :  { %v3036_v39 = vsel %vm3035_vm3, %v4313_v19, %v3032_v35  ;;  %v3988_v19 = vld [vmem:[%s5766_s23] sm:$0xff] }
0x2823   :  { %v3041_v40 = vsel %vm3038_vm6, %v3040_v34, %v3036_v39  ;;  %3434 = vmatpush.bf16.msra.mxu1 %v3988_v19  ;;  %v5622_v35 = vld [vmem:[%s5767_s29] ss:$0 sm:$0xff] }
0x2824   :  { %v3062_v44 = vmul.f32 %v3060_v37, %v3041_v40  ;;  %v3053_v56 = vsub.f32 1.0, %v3041_v40  ;;  %v5626_v39 = vld [vmem:[%s5768_s3] ss:$0 sm:$0xff] }
0x2860   :  { %v3044_v38 = vpop.permute.xlu2 %3043 }
0x2861   :  { %v3046_v51 = vmul.f32 %v3044_v38, %v3041_v40 }
0x2863   :  { %3048 = vrot.lane.b32.xlu0 %v3046_v51, %s4623_s15 }
0x28d5   :  { %v3049_v18 = vpop.permute.xlu0 %3048 }
0x28d6   :  { %v3051_v52 = vadd.f32 %v3049_v18, %v5571_v9 }
0x28d8   :  { %4314 = vtanh.f32 %v3051_v52 }
0x28de   :  { %v4315_v55 = vpop.eup %4314 }
0x28df   :  { %3055 = vrot.lane.b32.xlu1 %v4315_v55, %s4617_s9 }
0x2951   :  { %v3056_v54 = vpop.permute.xlu1 %3055 }
0x2952   :  { %v3058_v11 = vmul.f32 %v3056_v54, %v3053_v56 }
0x2954   :  { %v3063_v57 = vadd.f32 %v3062_v44, %v3058_v11 }
0x2956   :  { %v3064_v58 = vpack.c.bf16 %v3063_v57, %v3063_v57  ;;  %v3125_v24 = vrot.slane %v3063_v57, 6 }
0x2958   :  { %v3066_v59 = vrot.slane %v3064_v58, 2 }
0x295a   :  { %3067 = vrot.lane.b32.xlu2 %v3066_v59, %s4617_s9 }
0x29b4   :  { %v3068_v7 = vpop.permute.xlu2 %3067 }
0x29b5   :  { %3907 = vmatmul.msk.bf16.vlgmr.msrb.gmra.mxu0 %vm377_vm2, %v3068_v7 }
0x2a32   :  { %v3081_v12 = vpop.f32.mrf.mxu0 }
0x2a33   :  { %v3082_v62 = vadd.f32 %v5530_v23, %v3081_v12 }
0x2a35   :  { %v3086_v48 = vrot.slane %v3082_v62, 2 }
0x2a37   :  { %3108 = vrot.lane.b32.xlu0 %v3086_v48, %s4623_s15  ;;  %v3088_v50 = vadd.f32 %v3086_v48, %v5575_v33 }
0x2a39   :  { %v3908_v30 = vmul.f32 -1.442695, %v3088_v50 }
0x2a3a   :  { %v3083_v9 = vpop.f32.mrf.mxu0 }
0x2a3b   :  { %4316 = vpow2.f32 %v3908_v30 }
0x2a41   :  { %v4317_v42 = vpop.eup %4316 }
0x2a42   :  { %v3092_v63 = vadd.f32 1.0, %v4317_v42 }
0x2a44   :  { %4318 = vrcp.f32 %v3092_v63  ;;  %v3104_v2 = vand.u32 2147483648, %v3092_v63  ;;  %vm3098_vm0 = vweird.f32 %v3092_v63  ;;  %v3102_v53 = vand.u32 2147483647, %v3092_v63 }
0x2a46   :  { %v3105_v3 = vor.u32 1.1754944e-38, %v3104_v2  ;;  %vm3103_vm9 = vcmp.eq.f32.partialorder %v3102_v53, 8.507059e+37 }
0x2a4a   :  { %v4319_v0 = vpop.eup %4318 }
0x2a4b   :  { %v3094_v43 = vmul.f32 %v4319_v0, %v3092_v63  ;;  %vm3099_vm10 = vweird.f32 %v4319_v0 }
0x2a4c   :  { %vm3100_vm4 = vmor %vm3098_vm0, %vm3099_vm10 }
0x2a4d   :  { %v3095_v1 = vsub.f32 1.0, %v3094_v43 }
0x2a4f   :  { %v3096_v14 = vmul.f32 %v4319_v0, %v3095_v1 }
0x2a51   :  { %v3097_v15 = vadd.f32 %v4319_v0, %v3096_v14 }
0x2a53   :  { %v3101_v32 = vsel %vm3100_vm4, %v4319_v0, %v3097_v15 }
0x2a54   :  { %v3106_v60 = vsel %vm3103_vm9, %v3105_v3, %v3101_v32 }
0x2a55   :  { %v3118_v45 = vsub.f32 1.0, %v3106_v60  ;;  %v3127_v13 = vmul.f32 %v3125_v24, %v3106_v60 }
0x2aa9   :  { %v3109_v46 = vpop.permute.xlu0 %3108 }
0x2aaa   :  { %v3111_v27 = vmul.f32 %v3109_v46, %v3106_v60 }
0x2aac   :  { %3113 = vrot.lane.b32.xlu1 %v3111_v27, %s4623_s15 }
0x2b1e   :  { %v3114_v5 = vpop.permute.xlu1 %3113 }
0x2b1f   :  { %v3116_v25 = vadd.f32 %v3114_v5, %v5575_v33 }
0x2b21   :  { %4320 = vtanh.f32 %v3116_v25 }
0x2b27   :  { %v4321_v10 = vpop.eup %4320 }
0x2b28   :  { %3120 = vrot.lane.b32.xlu2 %v4321_v10, %s4617_s9 }
0x2b82   :  { %v3121_v4 = vpop.permute.xlu2 %3120 }
0x2b83   :  { %v3123_v17 = vmul.f32 %v3121_v4, %v3118_v45 }
0x2b85   :  { %v3128_v29 = vadd.f32 %v3127_v13, %v3123_v17 }
0x2b87   :  { %v3133_v20 = vpack.c.bf16 %v3128_v29, %v3128_v29  ;;  %v3192_v63 = vrot.slane %v3128_v29, 6 }
0x2b89   :  { %v3135_v21 = vrot.slane %v3133_v20, 3 }
0x2b8b   :  { %3136 = vrot.lane.b32.xlu0 %v3135_v21, %s4617_s9 }
0x2bfd   :  { %v3137_v33 = vpop.permute.xlu0 %3136 }
0x2bfe   :  { %3909 = vmatmul.msk.bf16.vlgmr.msrb.gmra.mxu1 %vm377_vm2, %v3137_v33 }
0x2c0e   :  { %3925 = vmatmul.msk.bf16.vlgmr.msra.gmra.mxu1 %vm377_vm2, %v3408_v16 }
0x2c7b   :  { %v3150_v36 = vpop.f32.mrf.mxu1 }
0x2c7c   :  { %v3151_v49 = vadd.f32 %v5530_v23, %v3150_v36 }
0x2c7e   :  { %3175 = vrot.lane.b32.xlu1 %v3151_v49, %s4623_s15  ;;  %v3154_v38 = vadd.f32 %v3151_v49, %v5563_v41 }
0x2c80   :  { %v3910_v51 = vmul.f32 -1.442695, %v3154_v38 }
0x2c83   :  { %v3152_v28 = vpop.f32.mrf.mxu1 }
0x2c8b   :  { %v5619_v31 = vpop.f32.mrf.mxu1 }
0x2c93   :  { %v3438_v34 = vpop.f32.mrf.mxu1 }
0x2c94   :  { %v3439_v37 = vadd.f32 %v5622_v35, %v3438_v34 }
0x2c96   :  { %4322 = vtanh.f32 %v3439_v37 }
0x2c97   :  { %4324 = vpow2.f32 %v3910_v51 }
0x2c9c   :  { %v4323_v40 = vpop.eup %4322 }
0x2c9d   :  { %v5629_v44 = vmul.f32 %v4323_v40, %v5626_v39  ;;  %v4325_v18 = vpop.eup %4324 }
0x2c9e   :  { %v3158_v52 = vadd.f32 1.0, %v4325_v18 }
0x2ca0   :  { %4326 = vrcp.f32 %v3158_v52  ;;  %v3170_v58 = vand.u32 2147483648, %v3158_v52  ;;  %vm3164_vm12 = vweird.f32 %v3158_v52  ;;  %v3168_v59 = vand.u32 2147483647, %v3158_v52 }
0x2ca2   :  { %v3171_v12 = vor.u32 1.1754944e-38, %v3170_v58  ;;  %vm3169_vm14 = vcmp.eq.f32.partialorder %v3168_v59, 8.507059e+37 }
0x2ca6   :  { %v4327_v55 = vpop.eup %4326 }
0x2ca7   :  { %v3160_v56 = vmul.f32 %v4327_v55, %v3158_v52  ;;  %vm3165_vm5 = vweird.f32 %v4327_v55 }
0x2ca8   :  { %vm3166_vm13 = vmor %vm3164_vm12, %vm3165_vm5 }
0x2ca9   :  { %v3161_v54 = vsub.f32 1.0, %v3160_v56 }
0x2cab   :  { %v3162_v11 = vmul.f32 %v4327_v55, %v3161_v54 }
0x2cad   :  { %v3163_v57 = vadd.f32 %v4327_v55, %v3162_v11 }
0x2caf   :  { %v3167_v7 = vsel %vm3166_vm13, %v4327_v55, %v3163_v57 }
0x2cb0   :  { %v3172_v48 = vsel %vm3169_vm14, %v3171_v12, %v3167_v7 }
0x2cb1   :  { %v3185_v0 = vsub.f32 1.0, %v3172_v48  ;;  %v3194_v1 = vmul.f32 %v3192_v63, %v3172_v48 }
0x2cf0   :  { %v3176_v62 = vpop.permute.xlu1 %3175 }
0x2cf1   :  { %v3178_v9 = vmul.f32 %v3176_v62, %v3172_v48 }
0x2cf3   :  { %3180 = vrot.lane.b32.xlu2 %v3178_v9, %s4623_s15 }
0x2d4d   :  { %v3181_v50 = vpop.permute.xlu2 %3180 }
0x2d4e   :  { %v3183_v30 = vadd.f32 %v3181_v50, %v5563_v41 }
0x2d50   :  { %4328 = vtanh.f32 %v3183_v30 }
0x2d56   :  { %v4329_v42 = vpop.eup %4328 }
0x2d57   :  { %3187 = vrot.lane.b32.xlu0 %v4329_v42, %s4617_s9 }
0x2dc9   :  { %v3188_v43 = vpop.permute.xlu0 %3187 }
0x2dca   :  { %v3190_v14 = vmul.f32 %v3188_v43, %v3185_v0 }
0x2dcc   :  { %v3195_v15 = vadd.f32 %v3194_v1, %v3190_v14 }
0x2dce   :  { %v3199_v2 = vpack.c.bf16 %v3195_v15, %v3195_v15  ;;  %v3259_v22 = vrot.slane %v3195_v15, 6 }
0x2dd0   :  { %3201 = vrot.lane.b32.xlu1 %v3199_v2, %s4617_s9 }
0x2e42   :  { %v3202_v53 = vpop.permute.xlu1 %3201 }
0x2e43   :  { %3911 = vmatmul.msk.bf16.vlgmr.msra.gmra.mxu2 %vm377_vm2, %v3202_v53 }
0x2ec6   :  { %v3215_v32 = vpop.f32.mrf.mxu2 }
0x2ec7   :  { %v3216_v3 = vadd.f32 %v5530_v23, %v3215_v32 }
0x2ec9   :  { %v3220_v46 = vrot.slane %v3216_v3, 6 }
0x2ecb   :  { %v3222_v60 = vadd.f32 %v3220_v46, %v5567_v8  ;;  %3242 = vrot.lane.b32.xlu2 %v3220_v46, %s4623_s15  ;;  %v3437_v46 = vadd.f32 %v5622_v35, %v5619_v31  ;;  %v3476_v31 = vsel %vm377_vm2, %v5629_v44, 0.0 }
0x2ecd   :  { %v3912_v27 = vmul.f32 -1.442695, %v3222_v60 }
0x2ece   :  { %v3217_v5 = vpop.f32.mrf.mxu2 }
0x2ecf   :  { %4330 = vpow2.f32 %v3912_v27 }
0x2ed5   :  { %v4331_v25 = vpop.eup %4330 }
0x2ed6   :  { %v3226_v10 = vadd.f32 1.0, %v4331_v25 }
0x2ed8   :  { %4332 = vrcp.f32 %v3226_v10  ;;  %v3238_v13 = vand.u32 2147483648, %v3226_v10  ;;  %v3236_v29 = vand.u32 2147483647, %v3226_v10  ;;  %vm3232_vm7 = vweird.f32 %v3226_v10 }
0x2eda   :  { %v3239_v21 = vor.u32 1.1754944e-38, %v3238_v13  ;;  %vm3237_vm3 = vcmp.eq.f32.partialorder %v3236_v29, 8.507059e+37 }
0x2ede   :  { %v4333_v24 = vpop.eup %4332 }
0x2edf   :  { %v3228_v45 = vmul.f32 %v4333_v24, %v3226_v10  ;;  %vm3233_vm15 = vweird.f32 %v4333_v24 }
0x2ee0   :  { %vm3234_vm8 = vmor %vm3232_vm7, %vm3233_vm15  ;;  %vm3633_vm7 = vcmask 17408  }
0x2ee1   :  { %v3229_v4 = vsub.f32 1.0, %v3228_v45 }
0x2ee3   :  { %v3230_v17 = vmul.f32 %v4333_v24, %v3229_v4 }
0x2ee5   :  { %v3231_v20 = vadd.f32 %v4333_v24, %v3230_v17 }
0x2ee7   :  { %v3235_v19 = vsel %vm3234_vm8, %v4333_v24, %v3231_v20 }
0x2ee8   :  { %v3240_v33 = vsel %vm3237_vm3, %v3239_v21, %v3235_v19 }
0x2ee9   :  { %v3261_v16 = vmul.f32 %v3259_v22, %v3240_v33  ;;  %v3252_v40 = vsub.f32 1.0, %v3240_v33 }
0x2f25   :  { %v3243_v36 = vpop.permute.xlu2 %3242 }
0x2f26   :  { %v3245_v49 = vmul.f32 %v3243_v36, %v3240_v33 }
0x2f28   :  { %3247 = vrot.lane.b32.xlu0 %v3245_v49, %s4623_s15 }
0x2f9a   :  { %v3248_v28 = vpop.permute.xlu0 %3247 }
0x2f9b   :  { %v3250_v34 = vadd.f32 %v3248_v28, %v5567_v8 }
0x2f9d   :  { %4334 = vtanh.f32 %v3250_v34 }
0x2fa3   :  { %v4335_v37 = vpop.eup %4334 }
0x2fa4   :  { %3254 = vrot.lane.b32.xlu1 %v4335_v37, %s4617_s9 }
0x3016   :  { %v3255_v38 = vpop.permute.xlu1 %3254 }
0x3017   :  { %v3257_v51 = vmul.f32 %v3255_v38, %v3252_v40 }
0x3019   :  { %v3262_v18 = vadd.f32 %v3261_v16, %v3257_v51 }
0x301b   :  { %v3263_v52 = vpack.c.bf16 %v3262_v18, %v3262_v18  ;;  %v3324_v25 = vrot.slane %v3262_v18, 6 }
0x301d   :  { %v3265_v55 = vrot.slane %v3263_v52, 1 }
0x301f   :  { %3266 = vrot.lane.b32.xlu2 %v3265_v55, %s4617_s9 }
0x3079   :  { %v3267_v56 = vpop.permute.xlu2 %3266 }
0x307a   :  { %3913 = vmatmul.msk.bf16.vlgmr.msra.gmra.mxu3 %vm377_vm2, %v3267_v56 }
0x30fd   :  { %v3280_v54 = vpop.f32.mrf.mxu3 }
0x30fe   :  { %v3281_v11 = vadd.f32 %v5530_v23, %v3280_v54 }
0x3100   :  { %v3285_v57 = vrot.slane %v3281_v11, 4 }
0x3102   :  { %3307 = vrot.lane.b32.xlu0 %v3285_v57, %s4623_s15  ;;  %v3287_v59 = vadd.f32 %v3285_v57, %v5563_v41 }
0x3104   :  { %v3914_v7 = vmul.f32 -1.442695, %v3287_v59 }
0x3105   :  { %v3282_v58 = vpop.f32.mrf.mxu3 }
0x3106   :  { %4336 = vpow2.f32 %v3914_v7 }
0x310c   :  { %v4337_v12 = vpop.eup %4336 }
0x310d   :  { %v3291_v62 = vadd.f32 1.0, %v4337_v12 }
0x310f   :  { %4338 = vrcp.f32 %v3291_v62  ;;  %v3303_v63 = vand.u32 2147483648, %v3291_v62  ;;  %vm3297_vm10 = vweird.f32 %v3291_v62  ;;  %v3301_v0 = vand.u32 2147483647, %v3291_v62 }
0x3111   :  { %v3304_v1 = vor.u32 1.1754944e-38, %v3303_v63  ;;  %vm3302_vm4 = vcmp.eq.f32.partialorder %v3301_v0, 8.507059e+37 }
0x3115   :  { %v4339_v48 = vpop.eup %4338 }
0x3116   :  { %v3293_v9 = vmul.f32 %v4339_v48, %v3291_v62  ;;  %vm3298_vm6 = vweird.f32 %v4339_v48 }
0x3117   :  { %vm3299_vm0 = vmor %vm3297_vm10, %vm3298_vm6 }
0x3118   :  { %v3294_v50 = vsub.f32 1.0, %v3293_v9 }
0x311a   :  { %v3295_v30 = vmul.f32 %v4339_v48, %v3294_v50 }
0x311c   :  { %v3296_v42 = vadd.f32 %v4339_v48, %v3295_v30 }
0x311e   :  { %v3300_v43 = vsel %vm3299_vm0, %v4339_v48, %v3296_v42 }
0x311f   :  { %v3305_v15 = vsel %vm3302_vm4, %v3304_v1, %v3300_v43 }
0x3120   :  { %v3317_v10 = vsub.f32 1.0, %v3305_v15  ;;  %v3326_v45 = vmul.f32 %v3324_v25, %v3305_v15 }
0x3174   :  { %v3308_v14 = vpop.permute.xlu0 %3307 }
0x3175   :  { %v3310_v2 = vmul.f32 %v3308_v14, %v3305_v15 }
0x3177   :  { %3312 = vrot.lane.b32.xlu1 %v3310_v2, %s4623_s15 }
0x31e9   :  { %v3313_v53 = vpop.permute.xlu1 %3312 }
0x31ea   :  { %v3315_v32 = vadd.f32 %v3313_v53, %v5563_v41 }
0x31ec   :  { %4340 = vtanh.f32 %v3315_v32 }
0x31ed   :  { %4342 = vtanh.f32 %v3437_v46 }
0x31f2   :  { %v4341_v3 = vpop.eup %4340 }
0x31f3   :  { %3319 = vrot.lane.b32.xlu2 %v4341_v3, %s4617_s9  ;;  %v4343_v60 = vpop.eup %4342 }
0x31f4   :  { %v3446_v27 = vmul.f32 %v4343_v60, %v5626_v39 }
0x31f6   :  { %v3447_v5 = vsel %vm377_vm2, %v3446_v27, 0.0 }
0x321c   :  { %3448 = vadd.xlane.f32.xlu2 %v3447_v5 }
0x324d   :  { %v3320_v24 = vpop.permute.xlu2 %3319 }
0x324e   :  { %v3322_v4 = vmul.f32 %v3320_v24, %v3317_v10 }
0x3250   :  { %v5655_v41 = vadd.f32 %v3326_v45, %v3322_v4 }
0x3252   :  { %v3328_v13 = vpack.c.bf16 %v5655_v41, %v5655_v41 }
0x3254   :  { %v3330_v17 = vrot.slane %v3328_v13, 2 }
0x3256   :  { %3331 = vrot.lane.b32.xlu0 %v3330_v17, %s4617_s9 }
0x3280   :  { %3477 = vadd.xlane.f32.xlu0 %v3476_v31 }
0x328f   :  { %v3449_v57 = vpop.xlane.xlu2 %3448 }
0x3290   :  { %v3450_v59 = vrot.slane %v3449_v57, 4 }
0x3292   :  { %v3451_v12 = vmax.f32 %v3449_v57, %v3450_v59 }
0x3294   :  { %v3452_v48 = vrot.slane %v3451_v12, 2 }
0x3296   :  { %v3453_v50 = vmax.f32 %v3451_v12, %v3452_v48 }
0x3298   :  { %v3454_v42 = vrot.slane %v3453_v50, 1 }
0x329a   :  { %v3455_v0 = vmax.f32 %v3453_v50, %v3454_v42  ;;  %v3517_v50 = vld [vmem:[#allocation13] sm:$0x1] }
0x329b   :  { %v3995_v42 = vld [vmem:[%s4868_s30 + $0x8] sm:$0xff] }
0x329c   :  { %3626 = vmatpush.bf16.msrb.mxu3 %v3995_v42 }
0x32c8   :  { %v3332_v35 = vpop.permute.xlu0 %3331 }
0x32c9   :  { %3915 = vmatmul.msk.bf16.vlgmr.msra.gmra.mxu0 %vm377_vm2, %v3332_v35 }
0x32f3   :  { %v3478_v11 = vpop.xlane.xlu0 %3477 }
0x32f4   :  { %v3479_v58 = vrot.slane %v3478_v11, 4 }
0x32f6   :  { %v3480_v7 = vmax.f32 %v3478_v11, %v3479_v58 }
0x32f8   :  { %v3481_v62 = vrot.slane %v3480_v7, 2 }
0x32fa   :  { %v3482_v9 = vmax.f32 %v3480_v7, %v3481_v62 }
0x32fc   :  { %v3483_v30 = vrot.slane %v3482_v9, 1 }
0x32fe   :  { %v3484_v63 = vmax.f32 %v3482_v9, %v3483_v30  ;;  %v3577_v30 = vadd.f32 1e-05, %v3517_v50 }
0x3300   :  { %v3485_v43 = vsub.f32 %v3478_v11, %v3484_v63 }
0x3302   :  { %v3486_v1 = vmul.f32 1.442695, %v3485_v43  ;;  %v3994_v43 = vld [vmem:[%s4868_s30] sm:$0xff]  ;;  %s4634_s30 = smov [#allocation14]  }
0x3303   :  { %3627 = vmatpush.bf16.msrb.mxu3 %v3994_v43  ;;  %s3640_s25 = sshll.u32 %s4634_s30, 4  ;;  %s3641_s25 = int_to_ptr.vmem [resolvable:$true] %s3640_s25 }
0x3346   :  { %v3345_v39 = vpop.f32.mrf.mxu0 }
0x3347   :  { %v3346_v29 = vadd.f32 %v5530_v23, %v3345_v39 }
0x3349   :  { %v3350_v20 = vrot.slane %v3346_v29, 2 }
0x334b   :  { %3372 = vrot.lane.b32.xlu1 %v3350_v20, %s4623_s15  ;;  %v3352_v22 = vadd.f32 %v3350_v20, %v5567_v8 }
0x334d   :  { %v3916_v19 = vmul.f32 -1.442695, %v3352_v22 }
0x334e   :  { %v3347_v21 = vpop.f32.mrf.mxu0 }
0x334f   :  { %4344 = vpow2.f32 %v3916_v19 }
0x3355   :  { %v4345_v33 = vpop.eup %4344 }
0x3356   :  { %v3356_v16 = vadd.f32 1.0, %v4345_v33 }
0x3358   :  { %4346 = vrcp.f32 %v3356_v16  ;;  %v3368_v37 = vand.u32 2147483648, %v3356_v16  ;;  %vm3362_vm5 = vweird.f32 %v3356_v16  ;;  %v3366_v23 = vand.u32 2147483647, %v3356_v16 }
0x335a   :  { %v3369_v38 = vor.u32 1.1754944e-38, %v3368_v37  ;;  %vm3367_vm13 = vcmp.eq.f32.partialorder %v3366_v23, 8.507059e+37 }
0x335e   :  { %v4347_v36 = vpop.eup %4346 }
0x335f   :  { %v3358_v44 = vmul.f32 %v4347_v36, %v3356_v16  ;;  %vm3363_vm9 = vweird.f32 %v4347_v36 }
0x3360   :  { %vm3364_vm12 = vmor %vm3362_vm5, %vm3363_vm9 }
0x3361   :  { %v3359_v49 = vsub.f32 1.0, %v3358_v44  ;;  %v3389_v44 = vrot.slane %v5655_v41, 6 }
0x3363   :  { %v3360_v28 = vmul.f32 %v4347_v36, %v3359_v49 }
0x3365   :  { %v3361_v34 = vadd.f32 %v4347_v36, %v3360_v28 }
0x3367   :  { %v3365_v40 = vsel %vm3364_vm12, %v4347_v36, %v3361_v34 }
0x3368   :  { %v5666_v18 = vsel %vm3367_vm13, %v3369_v38, %v3365_v40 }
0x3369   :  { %v3382_v49 = vsub.f32 1.0, %v5666_v18 }
0x33bd   :  { %v3373_v51 = vpop.permute.xlu1 %3372 }
0x33be   :  { %v3375_v52 = vmul.f32 %v3373_v51, %v5666_v18 }
0x33c0   :  { %3377 = vrot.lane.b32.xlu1 %v3375_v52, %s4623_s15  ;;  %s5769_s15 = sld [smem:[#allocation48_spill]] }
0x33c6   :  { %v3993_v29 = vld [vmem:[%s5769_s15 + $0x18] sm:$0xff]  ;;  %v3990_v58 = vld [vmem:[%s5769_s15] sm:$0xff] }
0x33c7   :  { %3564 = vmatpush.bf16.msrb.mxu2 %v3993_v29 }
0x3432   :  { %v3378_v55 = vpop.permute.xlu1 %3377 }
0x3433   :  { %v3380_v56 = vadd.f32 %v3378_v55, %v5567_v8  ;;  %v3456_v8 = vsub.f32 %v3449_v57, %v3455_v0  ;;  %v3991_v57 = vld [vmem:[%s5769_s15 + $0x8] sm:$0xff] }
0x3435   :  { %4348 = vtanh.f32 %v3380_v56  ;;  %v3457_v14 = vmul.f32 1.442695, %v3456_v8 }
0x3436   :  { %4350 = vpow2.f32 %v3486_v1 }
0x3437   :  { %4352 = vpow2.f32 %v3457_v14 }
0x343b   :  { %v4349_v54 = vpop.eup %4348 }
0x343c   :  { %3384 = vrot.lane.b32.xlu1 %v4349_v54, %s4617_s9  ;;  %v4351_v15 = vpop.eup %4350 }
0x343d   :  { %v4353_v2 = vpop.eup %4352  ;;  %v3488_v53 = vrot.slane %v4351_v15, 4 }
0x343e   :  { %v3459_v32 = vrot.slane %v4353_v2, 4 }
0x343f   :  { %v3489_v3 = vadd.f32 %v4351_v15, %v3488_v53  ;;  %v4148_v53 = vld [vmem:[#allocation11] ss:$0 sm:$0xff] }
0x3440   :  { %v3460_v46 = vadd.f32 %v4353_v2, %v3459_v32 }
0x3441   :  { %v3490_v60 = vrot.slane %v3489_v3, 2 }
0x3442   :  { %v3461_v27 = vrot.slane %v3460_v46, 2 }
0x3443   :  { %v3491_v5 = vadd.f32 %v3490_v60, %v3489_v3 }
0x3444   :  { %v3462_v25 = vadd.f32 %v3461_v27, %v3460_v46  ;;  %v4149_v27 = vld [vmem:[#allocation8] ss:$0 sm:$0xff] }
0x3445   :  { %v3492_v10 = vrot.slane %v3491_v5, 1 }
0x3446   :  { %v3463_v24 = vrot.slane %v3462_v25, 1 }
0x3447   :  { %v3493_v45 = vadd.f32 %v3492_v10, %v3491_v5 }
0x3448   :  { %v3464_v4 = vadd.f32 %v3463_v24, %v3462_v25  ;;  %v4150_v25 = vld [vmem:[#allocation10] ss:$0 sm:$0xff] }
0x3449   :  { %4354 = vrcp.f32 %v3493_v45 }
0x344a   :  { %4356 = vrcp.f32 %v3464_v4 }
0x344b   :  { %4358 = vrsqrt.f32 %v3577_v30 }
0x344f   :  { %v4355_v13 = vpop.eup %4354 }
0x3450   :  { %v4357_v17 = vpop.eup %4356  ;;  %v3495_v31 = vmul.f32 %v4355_v13, %v4351_v15 }
0x3451   :  { %v3466_v35 = vmul.f32 %v4357_v17, %v4353_v2  ;;  %v4359_v63 = vpop.eup %4358  ;;  %v4151_v17 = vld [vmem:[%s4873_s14] ss:$0 sm:$0xff] }
0x3452   :  { %v3496_v39 = vmul.f32 %v3495_v31, %v5346_v47  ;;  %v3391_v47 = vmul.f32 %v3389_v44, %v5666_v18  ;;  %v3992_v18 = vld [vmem:[%s5769_s15 + $0x10] sm:$0xff]  ;;  %v3579_v0 = vmul.f32 %v4359_v63, %v3577_v30  ;;  %vm3585_vm14 = vweird.f32 %v4359_v63 }
0x3453   :  { %v3467_v20 = vmul.f32 %v3466_v35, %v5343_v61  ;;  %3565 = vmatpush.bf16.msrb.mxu2 %v3992_v18 }
0x3454   :  { %v3497_v21 = vsel %vm377_vm2, %v3496_v39, 0.0  ;;  %v3580_v8 = vmul.f32 %v4359_v63, %v3579_v0 }
0x3455   :  { %v3468_v22 = vsel %vm377_vm2, %v3467_v20, 0.0  ;;  %v3498_v19 = vrot.slane %v3497_v21, 4 }
0x3456   :  { %v3469_v33 = vrot.slane %v3468_v22, 4  ;;  %v3581_v1 = vmul.f32 0.5, %v3580_v8 }
0x3457   :  { %v3499_v16 = vadd.f32 %v3498_v19, %v3497_v21  ;;  %3566 = vmatpush.bf16.msrb.mxu2 %v3991_v57 }
0x3458   :  { %v3470_v36 = vadd.f32 %v3469_v33, %v3468_v22  ;;  %v3582_v26 = vsub.f32 1.5, %v3581_v1 }
0x3459   :  { %v3500_v34 = vrot.slane %v3499_v16, 2 }
0x345a   :  { %v3471_v61 = vrot.slane %v3470_v36, 2  ;;  %v3583_v14 = vmul.f32 %v4359_v63, %v3582_v26 }
0x345b   :  { %v3501_v40 = vadd.f32 %v3500_v34, %v3499_v16  ;;  %3567 = vmatpush.bf16.msrb.mxu2 %v3990_v58 }
0x345c   :  { %v3472_v51 = vadd.f32 %v3471_v61, %v3470_v36 }
0x345d   :  { %v3502_v55 = vrot.slane %v3501_v40, 1 }
0x345e   :  { %v3473_v41 = vrot.slane %v3472_v51, 1 }
0x345f   :  { %v3503_v56 = vadd.f32 %v3502_v55, %v3501_v40 }
0x3460   :  { %v3474_v54 = vadd.f32 %v3473_v41, %v3472_v51 }
0x3462   :  { %v3504_v11 = vsel %vm2155_vm1, %v3474_v54, %v3503_v56  ;;  %vm3556_vm1 = vcmask 523264  }
0x34ae   :  { %v3385_v28 = vpop.permute.xlu1 %3384 }
0x34af   :  { %v3387_v37 = vmul.f32 %v3385_v28, %v3382_v49 }
0x34b1   :  { %v3392_v23 = vadd.f32 %v3391_v47, %v3387_v37 }
0x34b3   :  { %v3394_v38 = vrot.slane %v3392_v23, 6 }
0x34b5   :  { %v4119_v52 = vpack.i.bf16 %v5581_v6, %v3394_v38 }
0x34b7   :  { %4120 = vrot.lane.b32.xlu1 %v4119_v52, %s4617_s9  ;;  %s5770_s9 = sld [smem:[#allocation49_spill]] }
0x34bd   :  { %v4147_v15 = vld [vmem:[%s5770_s9] ss:$0 sm:$0xff] }
0x34bf   :  { %3524 = vrot.lane.b32.xlu1 %v3504_v11, %s4633_s19 }
0x3529   :  { %v4121_v59 = vpop.permute.xlu1 %4120 }
0x352a   :  { %v4123_v6 = vunpack.i.h.bf16 %v4121_v59  ;;  %v4122_v7 = vunpack.i.l.bf16 %v4121_v59 }
0x352c   :  { %v3401_v12 = vsel %vm2124_vm11, %v4122_v7, %v4123_v6  ;;  %vm3584_vm11 = vweird.f32 %v3577_v30 }
0x352d   :  { %vm3586_vm15 = vmor %vm3584_vm11, %vm3585_vm14 }
0x352e   :  { %v3587_v2 = vsel %vm3586_vm15, %v4359_v63, %v3583_v14 }
0x352f   :  { %v3589_v46 = vperm.slane %v3587_v2, 0 }
0x3531   :  { %v3525_v62 = vpop.permute.xlu1 %3524 }
0x3532   :  { %v3527_v48 = vsel %vm377_vm2, %v3401_v12, %v3525_v62 }
0x3533   :  { %v3528_v9 = vpack.c.bf16 %v3527_v48, %v3527_v48 }
0x3535   :  { %3942 = vmatmul.msk.bf16.vlgmr.msrb.gmra.mxu2 %vm3556_vm1, %v3528_v9 }
0x35b8   :  { %v3569_v32 = vpop.f32.mrf.mxu2 }
0x35b9   :  { %v3570_v3 = vadd.f32 %v4147_v15, %v3569_v32 }
0x35bb   :  { %v3576_v60 = vsub.f32 %v3570_v3, %v4148_v53 }
0x35bd   :  { %v3591_v5 = vmul.f32 %v3589_v46, %v3576_v60 }
0x35bf   :  { %v3595_v10 = vmul.f32 %v4149_v27, %v3591_v5 }
0x35c0   :  { %v3571_v24 = vpop.f32.mrf.mxu2 }
0x35c1   :  { %v3599_v45 = vadd.f32 %v4150_v25, %v3595_v10 }
0x35c3   :  { %v3600_v4 = vmax.f32 %v3599_v45, 0.0 }
0x35c5   :  { %v3601_v13 = vpack.c.bf16 %v3600_v4, %v3600_v4 }
0x35c7   :  { %3951 = vmatmul.msk.bf16.vlgmr.msrb.gmra.mxu3 %vm377_vm2, %v3601_v13 }
0x364a   :  { %v3629_v31 = vpop.f32.mrf.mxu3 }
0x364b   :  { %v3630_v35 = vadd.f32 %v4151_v17, %v3629_v31 }
0x364d   :  { %3634 = vst.msk [vmem:[#allocation14] sm:$0x3] %vm3633_vm7, %v3630_v35 }
0x364e   :  { %4551 = shalt.err (!%p4548_p11)
}
0x364f   :  { %3645 = dma.vmem_to_hbm [thread:$0]  %s3641_s25, 32, %s3643_s24, [#allocation4]  }
0x3652   :  { %v3631_v39 = vpop.f32.mrf.mxu3 }
0x3653   :  { %4560 = dma.done.wait [#allocation4], 32  }
0x3654   :  { %4561 = vsyncadd [#allocation4], 4294967264 }
0x3655   :  { %3650 = vsyncpa [#allocation3], 1 }
0x3656   :  { %3651 = vsyncpa [#allocation6], 1 }
0x3657   :  { %3652 = vsyncpa [#allocation9], 1 }
0x3658   :  { %3653 = vsyncpa [#allocation12], 1 }
0x3659   :  { %3654 = vsyncpa [#allocation4], 1 }

</bundles_post_ra>
